<compile_context>
chip_gen: v5e
topology: v5e:2x2
jax: 0.10.0
libtpu: 0.0.40
codegen_flags: <defaults>
</compile_context>

<pallas_src>
import functools

import jax
import jax.numpy as jnp
from jax.experimental import pallas as pl
from jax.experimental.pallas import tpu as pltpu

_VMEM = pl.BlockSpec(memory_space=pltpu.MemorySpace.VMEM)
_BF16 = jnp.bfloat16


def _pick_tile(dim, candidates):
    for c in candidates:
        if dim % c == 0:
            return c
    return dim


def _ln(x, g, b, eps):
    mean = jnp.mean(x, axis=-1, keepdims=True)
    c = x - mean
    var = jnp.mean(c * c, axis=-1, keepdims=True)
    return (c * jax.lax.rsqrt(var + eps)) * g + b


def _silu(x):
    return x * jax.nn.sigmoid(x)


# ----------------------- fused BERT encoder layer ---------------------------

def _bert_layer_kernel(x_ref, wqkv_ref, bqkv_ref, wo_ref, bo_ref,
                       ln1g_ref, ln1b_ref, wi_ref, bi_ref,
                       wo2_ref, bo2_ref, ln2g_ref, ln2b_ref,
                       o_ref, ctx_scr, *, num_heads):
    _, L, D = x_ref.shape
    H = num_heads
    Dh = D // H
    scale = 1.0 / (Dh ** 0.5)

    x = x_ref[...]                                   # (1, L, D) f32
    xb = x.astype(_BF16)

    # fused Q/K/V projection: one MXU matmul with (D, 3D) weight
    qkv = jnp.einsum("bld,de->ble", xb, wqkv_ref[...],
                     preferred_element_type=jnp.float32) + bqkv_ref[...]

    # per-head attention, context written into a VMEM scratch (no HBM transposes)
    for h in range(H):
        sl = slice(h * Dh, (h + 1) * Dh)
        qh = qkv[:, :, h * Dh:(h + 1) * Dh].astype(_BF16)
        kh = qkv[:, :, D + h * Dh:D + (h + 1) * Dh].astype(_BF16)
        vh = qkv[:, :, 2 * D + h * Dh:2 * D + (h + 1) * Dh].astype(_BF16)
        s = jnp.einsum("bqd,bkd->bqk", qh, kh,
                       preferred_element_type=jnp.float32) * scale
        s = s - jnp.max(s, axis=-1, keepdims=True)
        p = jnp.exp(s)
        p = p * pl.reciprocal(jnp.sum(p, axis=-1, keepdims=True), approx=True)
        ctx_scr[:, :, sl] = jnp.einsum("bqk,bkd->bqd", p.astype(_BF16), vh,
                                       preferred_element_type=jnp.float32)

    ctx = ctx_scr[...].astype(_BF16)
    attn = jnp.einsum("bld,de->ble", ctx, wo_ref[...],
                      preferred_element_type=jnp.float32) + bo_ref[...]
    h1 = _ln(attn + x, ln1g_ref[...], ln1b_ref[...], 1e-12)

    inter = jnp.einsum("bld,de->ble", h1.astype(_BF16), wi_ref[...],
                       preferred_element_type=jnp.float32) + bi_ref[...]
    # TODO(synk): HF BERT uses exact erf-GELU; tanh approximation kept for robust TPU lowering.
    inter = jax.nn.gelu(inter, approximate=True)
    out = jnp.einsum("bld,de->ble", inter.astype(_BF16), wo2_ref[...],
                     preferred_element_type=jnp.float32) + bo2_ref[...]
    o_ref[...] = _ln(out + h1, ln2g_ref[...], ln2b_ref[...], 1e-12)


def bert_layer(x, lp, num_heads):
    B, L, D = x.shape
    wqkv = jnp.concatenate([lp["wq"], lp["wk"], lp["wv"]], axis=1).astype(_BF16)
    bqkv = jnp.concatenate([lp["bq"], lp["bk"], lp["bv"]]).reshape(1, 1, 3 * D)
    return pl.pallas_call(
        functools.partial(_bert_layer_kernel, num_heads=num_heads),
        out_shape=jax.ShapeDtypeStruct((B, L, D), jnp.float32),
        grid=(B,),
        in_specs=[pl.BlockSpec((1, L, D), lambda i: (i, 0, 0))] + [_VMEM] * 12,
        out_specs=pl.BlockSpec((1, L, D), lambda i: (i, 0, 0)),
        scratch_shapes=[pltpu.VMEM((1, L, D), jnp.float32)],
        compiler_params=pltpu.CompilerParams(dimension_semantics=("parallel",)),
    )(x, wqkv, bqkv,
      lp["wo"].astype(_BF16), lp["bo"].reshape(1, 1, D),
      lp["ln1_g"].reshape(1, 1, D), lp["ln1_b"].reshape(1, 1, D),
      lp["wi"].astype(_BF16), lp["bi"].reshape(1, 1, -1),
      lp["wo2"].astype(_BF16), lp["bo2"].reshape(1, 1, D),
      lp["ln2_g"].reshape(1, 1, D), lp["ln2_b"].reshape(1, 1, D))


# -------------------- UNet building-block kernels ---------------------------

def _time_embed_add_kernel(x_ref, t_ref, w1_ref, b1_ref, w2_ref, b2_ref, o_ref):
    t = t_ref[...]                                    # (B, 1) f32
    h = t * w1_ref[...] + b1_ref[...]                 # (B, D/4)   K=1 matmul as broadcast-mul
    h = _silu(h)
    temb = jnp.dot(h.astype(_BF16), w2_ref[...],
                   preferred_element_type=jnp.float32) + b2_ref[...]   # (B, D)
    o_ref[...] = x_ref[...] + temb[:, None, :]


def time_embed_add(x, t, w1, b1, w2, b2):
    B, L, D = x.shape
    Dq = w1.shape[1]
    return pl.pallas_call(
        _time_embed_add_kernel,
        out_shape=jax.ShapeDtypeStruct((B, L, D), jnp.float32),
        in_specs=[_VMEM] * 6,
        out_specs=_VMEM,
    )(x, t, w1, b1.reshape(1, Dq), w2.astype(_BF16), b2.reshape(1, D))


def _down_block_kernel(xe_ref, xo_ref, w_ref, b_ref, o_ref):
    # Fused conv(k=3, pad=1) + SiLU + maxpool(2).  Inputs are the even / odd rows of the padded
    # input, so every tap is a contiguous slice; the max of the two output phases == maxpool.
    Lh = o_ref.shape[1]
    xe0 = xe_ref[:, :Lh, :].astype(_BF16)
    xe1 = xe_ref[:, 1:Lh + 1, :].astype(_BF16)
    xo0 = xo_ref[:, :Lh, :].astype(_BF16)
    xo1 = xo_ref[:, 1:Lh + 1, :].astype(_BF16)
    w0, w1, w2 = w_ref[0], w_ref[1], w_ref[2]

    def conv(t0, t1, t2):
        return (jnp.einsum("blc,cd->bld", t0, w0, preferred_element_type=jnp.float32)
                + jnp.einsum("blc,cd->bld", t1, w1, preferred_element_type=jnp.float32)
                + jnp.einsum("blc,cd->bld", t2, w2, preferred_element_type=jnp.float32)
                + b_ref[...])

    y_even = _silu(conv(xe0, xo0, xe1))   # output rows 2j
    y_odd = _silu(conv(xo0, xe1, xo1))    # output rows 2j+1
    o_ref[...] = jnp.maximum(y_even, y_odd)


def down_block(x, w, b):
    B, L, Cin = x.shape
    Cout = w.shape[2]
    xpad = jnp.pad(x, ((0, 0), (1, 1), (0, 0)))
    x_even = xpad[:, 0::2, :]   # (B, L//2 + 1, Cin)
    x_odd = xpad[:, 1::2, :]
    Lh = L // 2
    return pl.pallas_call(
        _down_block_kernel,
        out_shape=jax.ShapeDtypeStruct((B, Lh, Cout), jnp.float32),
        grid=(B,),
        in_specs=[pl.BlockSpec((1, Lh + 1, Cin), lambda i: (i, 0, 0)),
                  pl.BlockSpec((1, Lh + 1, Cin), lambda i: (i, 0, 0)),
                  _VMEM, _VMEM],
        out_specs=pl.BlockSpec((1, Lh, Cout), lambda i: (i, 0, 0)),
        compiler_params=pltpu.CompilerParams(dimension_semantics=("parallel",)),
    )(x_even, x_odd, w.astype(_BF16), b.reshape(1, 1, Cout))


def _mid_block_kernel(x_ref, w1_ref, b1_ref, w2_ref, b2_ref, o_ref, y_scr):
    # conv(k=3, dil=2, pad=2) + SiLU + conv(k=3, pad=1), fused; the intermediate is zero-padded
    # inside a VMEM scratch so it never leaves the chip.
    L = o_ref.shape[1]
    acc = b1_ref[...]
    for k in range(3):
        xt = x_ref[:, 2 * k:2 * k + L, :].astype(_BF16)
        acc = acc + jnp.einsum("blc,cd->bld", xt, w1_ref[k],
                               preferred_element_type=jnp.float32)
    y = _silu(acc)

    y_scr[...] = jnp.zeros_like(y_scr)
    y_scr[:, 1:L + 1, :] = y
    acc2 = b2_ref[...]
    for k in range(3):
        yt = y_scr[:, k:k + L, :].astype(_BF16)
        acc2 = acc2 + jnp.einsum("blc,cd->bld", yt, w2_ref[k],
                                 preferred_element_type=jnp.float32)
    o_ref[...] = acc2


def mid_block(x, w1, b1, w2, b2):
    B, L, C = x.shape
    xpad = jnp.pad(x, ((0, 0), (2, 2), (0, 0)))
    return pl.pallas_call(
        _mid_block_kernel,
        out_shape=jax.ShapeDtypeStruct((B, L, C), jnp.float32),
        grid=(B,),
        in_specs=[pl.BlockSpec((1, L + 4, C), lambda i: (i, 0, 0)),
                  _VMEM, _VMEM, _VMEM, _VMEM],
        out_specs=pl.BlockSpec((1, L, C), lambda i: (i, 0, 0)),
        scratch_shapes=[pltpu.VMEM((1, L + 2, C), jnp.float32)],
        compiler_params=pltpu.CompilerParams(dimension_semantics=("parallel",)),
    )(xpad, w1.astype(_BF16), b1.reshape(1, 1, C),
      w2.astype(_BF16), b2.reshape(1, 1, C))


def _up_block_kernel(xa_ref, xb_ref, wa_ref, wb_ref, b_ref, o_ref):
    # Phase-split ConvTranspose(k=3, s=2, p=1, op=1) + SiLU.  For the channel-concat input the
    # weight is split into (wa, wb) so no concatenated tensor is materialized.
    #   even out[2j]   = x[j]   @ W[:, :, 1]
    #   odd  out[2j+1] = x[j]   @ W[:, :, 2] + x[j+1] @ W[:, :, 0]
    L = o_ref.shape[1]
    Cout = o_ref.shape[2] // 2
    xa0 = xa_ref[:, :L, :].astype(_BF16)
    xa1 = xa_ref[:, 1:L + 1, :].astype(_BF16)
    xb0 = xb_ref[:, :L, :].astype(_BF16)
    xb1 = xb_ref[:, 1:L + 1, :].astype(_BF16)

    def ein(x, w):
        return jnp.einsum("blc,cd->bld", x, w, preferred_element_type=jnp.float32)

    even = ein(xa0, wa_ref[1]) + ein(xb0, wb_ref[1]) + b_ref[...]
    odd = (ein(xa0, wa_ref[2]) + ein(xa1, wa_ref[0])
           + ein(xb0, wb_ref[2]) + ein(xb1, wb_ref[0]) + b_ref[...])
    o_ref[:, :, :Cout] = _silu(even)
    o_ref[:, :, Cout:] = _silu(odd)


def up_block(xa, xb, w, b):
    """xa/xb are the two channel-concat halves; w is the PyTorch ConvTranspose2d weight
    (Cin, Cout, K) with Cin = Ca + Cb.  Returns (B, 2L, Cout)."""
    B, L, Ca = xa.shape
    Cout = w.shape[1]
    wa = jnp.transpose(w[:Ca], (2, 0, 1)).astype(_BF16)   # (3, Ca, Cout)
    wb = jnp.transpose(w[Ca:], (2, 0, 1)).astype(_BF16)   # (3, Cb, Cout)
    xa_p = jnp.pad(xa, ((0, 0), (0, 1), (0, 0)))
    xb_p = jnp.pad(xb, ((0, 0), (0, 1), (0, 0)))
    Cb = xb.shape[2]
    out = pl.pallas_call(
        _up_block_kernel,
        out_shape=jax.ShapeDtypeStruct((B, L, 2 * Cout), jnp.float32),
        grid=(B,),
        in_specs=[pl.BlockSpec((1, L + 1, Ca), lambda i: (i, 0, 0)),
                  pl.BlockSpec((1, L + 1, Cb), lambda i: (i, 0, 0)),
                  _VMEM, _VMEM, _VMEM],
        out_specs=pl.BlockSpec((1, L, 2 * Cout), lambda i: (i, 0, 0)),
        compiler_params=pltpu.CompilerParams(dimension_semantics=("parallel",)),
    )(xa_p, xb_p, wa, wb, b.reshape(1, 1, Cout))
    # interleave even/odd phases: (B, L, 2, Cout) -> (B, 2L, Cout)
    return out.reshape(B, 2 * L, Cout)


def _concat_linear_kernel(a_ref, b_ref, wa_ref, wb_ref, bias_ref, o_ref):
    y = (jnp.dot(a_ref[...].astype(_BF16), wa_ref[...], preferred_element_type=jnp.float32)
         + jnp.dot(b_ref[...].astype(_BF16), wb_ref[...], preferred_element_type=jnp.float32)
         + bias_ref[...])
    o_ref[...] = y


def concat_linear(a, b, w, bias):
    """1x1 conv on channel-concat([a, b]) without materializing the concat. w: (1, Ca+Cb, Cout)."""
    M, Ca = a.shape
    Cout = w.shape[2]
    return pl.pallas_call(
        _concat_linear_kernel,
        out_shape=jax.ShapeDtypeStruct((M, Cout), jnp.float32),
        in_specs=[_VMEM] * 5,
        out_specs=_VMEM,
    )(a, b, w[0, :Ca, :].astype(_BF16), w[0, Ca:, :].astype(_BF16), bias.reshape(1, Cout))


# ---------------- fused final LayerNorm + to_logits (tiled) -----------------

def _norm_logits_kernel(x_ref, g_ref, b_ref, w_ref, bias_ref, o_ref, *, eps):
    x = x_ref[...]
    mean = jnp.mean(x, axis=-1, keepdims=True)
    c = x - mean
    var = jnp.mean(c * c, axis=-1, keepdims=True)
    xn = (c * jax.lax.rsqrt(var + eps)) * g_ref[...] + b_ref[...]
    o_ref[...] = jnp.dot(xn.astype(_BF16), w_ref[...],
                         preferred_element_type=jnp.float32) + bias_ref[...]


def norm_logits(x, gamma, beta, w, bias, eps=1e-5):
    M, D = x.shape
    N = w.shape[1]
    tm = _pick_tile(M, (256, 128, 64, 32, 16, 8))
    tn = _pick_tile(N, (512, 256, 128))
    return pl.pallas_call(
        functools.partial(_norm_logits_kernel, eps=eps),
        out_shape=jax.ShapeDtypeStruct((M, N), jnp.float32),
        grid=(M // tm, N // tn),
        in_specs=[pl.BlockSpec((tm, D), lambda i, j: (i, 0)),
                  pl.BlockSpec((1, D), lambda i, j: (0, 0)),
                  pl.BlockSpec((1, D), lambda i, j: (0, 0)),
                  pl.BlockSpec((D, tn), lambda i, j: (0, j)),
                  pl.BlockSpec((1, tn), lambda i, j: (0, j))],
        out_specs=pl.BlockSpec((tm, tn), lambda i, j: (i, j)),
        compiler_params=pltpu.CompilerParams(
            dimension_semantics=("parallel", "parallel"),
            vmem_limit_bytes=32 * 1024 * 1024),
    )(x, gamma.reshape(1, D), beta.reshape(1, D), w.astype(_BF16), bias.reshape(1, N))


# ------------------------------- model glue --------------------------------

def unet_forward(p, x, timesteps):
    # x: (B, L, D)  <->  PyTorch NCHW (B, D, 1, L)
    B, L, D = x.shape
    t = timesteps.astype(jnp.float32).reshape(B, 1)
    skip1 = time_embed_add(x, t, p["te_w1"], p["te_b1"], p["te_w2"], p["te_b2"])
    skip2 = down_block(skip1, p["d1_w"], p["d1_b"])                 # (B, L/2, 2D)
    x2 = down_block(skip2, p["d2_w"], p["d2_b"])                    # (B, L/4, 4D)
    x2 = mid_block(x2, p["m1_w"], p["m1_b"], p["m2_w"], p["m2_b"])  # (B, L/4, 4D)
    u1 = up_block(x2, x2, p["u1_w"], p["u1_b"])                     # cat([x2, x2]) -> (B, L/2, 2D)
    u2 = up_block(u1, skip2, p["u2_w"], p["u2_b"])                  # cat([u1, skip2]) -> (B, L, D)
    out = concat_linear(u2.reshape(B * L, D), skip1.reshape(B * L, D),
                        p["f_w"], p["f_b"])                         # cat([u2, skip1]) 1x1 conv
    return out.reshape(B, L, D)


def text_diffusion_forward(params, tokens, timesteps, *, num_heads):
    B, L = tokens.shape
    D = params["token_emb"].shape[1]
    # token path of forward(): x.dtype == long
    x = jnp.take(params["token_emb"], tokens, axis=0) + params["pos_emb"][:, :L, :]
    x = x + jnp.take(params["timestep_emb"], timesteps, axis=0)[:, None, :]
    for lp in params["layers"]:
        x = bert_layer(x, lp, num_heads)
    # permute(0,2,1).unsqueeze(2) is a no-op in our channel-last layout (see header comment).
    x = unet_forward(params["unet"], x, timesteps)
    logits = norm_logits(x.reshape(B * L, D), params["norm_g"], params["norm_b"],
                         params["to_logits_w"], params["to_logits_b"])
    return logits.reshape(B, L, -1)


# --------------------------- deterministic init -----------------------------

def init_params(key, *, vocab_size, seq_length, embed_dim, num_layers, num_timesteps):
    d = embed_dim
    inter = 4 * d
    keys = iter(jax.random.split(key, 256))

    def w(shape, scale=0.02):
        return (scale * jax.random.normal(next(keys), shape)).astype(jnp.float32)

    zeros = lambda s: jnp.zeros(s, jnp.float32)
    ones = lambda s: jnp.ones(s, jnp.float32)

    params = dict(
        token_emb=w((vocab_size, d)),
        pos_emb=w((1, seq_length, d), 1.0),                 # torch.randn
        timestep_emb=w((num_timesteps, d)),
        to_logits_w=w((d, vocab_size)), to_logits_b=zeros((vocab_size,)),
        norm_g=ones((d,)), norm_b=zeros((d,)),
    )
    layers = []
    for _ in range(num_layers):
        layers.append(dict(
            wq=w((d, d)), bq=zeros((d,)),
            wk=w((d, d)), bk=zeros((d,)),
            wv=w((d, d)), bv=zeros((d,)),
            wo=w((d, d)), bo=zeros((d,)),
            ln1_g=ones((d,)), ln1_b=zeros((d,)),
            wi=w((d, inter)), bi=zeros((inter,)),
            wo2=w((inter, d)), bo2=zeros((d,)),
            ln2_g=ones((d,)), ln2_b=zeros((d,)),
        ))
    params["layers"] = layers
    params["unet"] = dict(
        te_w1=w((1, d // 4)), te_b1=zeros((d // 4,)),
        te_w2=w((d // 4, d)), te_b2=zeros((d,)),
        d1_w=w((3, d, 2 * d)), d1_b=zeros((2 * d,)),        # (K, Cin, Cout)
        d2_w=w((3, 2 * d, 4 * d)), d2_b=zeros((4 * d,)),
        m1_w=w((3, 4 * d, 4 * d)), m1_b=zeros((4 * d,)),
        m2_w=w((3, 4 * d, 4 * d)), m2_b=zeros((4 * d,)),
        u1_w=w((8 * d, 2 * d, 3)), u1_b=zeros((2 * d,)),    # PyTorch ConvT layout (Cin, Cout, K)
        u2_w=w((4 * d, d, 3)), u2_b=zeros((d,)),
        f_w=w((1, 2 * d, d)), f_b=zeros((d,)),
    )
    return params


# ---------------------------------- main ------------------------------------

if __name__ == "__main__":
    VOCAB, SEQ, DIM, LAYERS, HEADS, NUM_T = 128, 8, 32, 2, 4, 16
    BATCH = 2

    key = jax.random.PRNGKey(0)
    pkey, tok_key, ts_key = jax.random.split(key, 3)
    params = init_params(pkey, vocab_size=VOCAB, seq_length=SEQ,
                         embed_dim=DIM, num_layers=LAYERS, num_timesteps=NUM_T)

    tokens = jax.random.randint(tok_key, (BATCH, SEQ), 0, VOCAB, dtype=jnp.int32)
    timesteps = jax.random.randint(ts_key, (BATCH,), 0, NUM_T, dtype=jnp.int32)

    fwd = jax.jit(functools.partial(text_diffusion_forward, num_heads=HEADS))
    logits = fwd(params, tokens, timesteps)
    jax.block_until_ready(logits)

    assert logits.shape == (BATCH, SEQ, VOCAB), logits.shape
    assert bool(jnp.all(jnp.isfinite(logits)))
    print("KERNEL_OK")
</pallas_src>

<mosaic_0001>
module attributes {stable_mosaic.version = 11 : i64} {
  func.func @_time_embed_add_kernel(%arg0: memref<2x8x32xf32, #tpu.memory_space<vmem>>, %arg1: memref<2x1xf32, #tpu.memory_space<vmem>>, %arg2: memref<1x8xf32, #tpu.memory_space<vmem>>, %arg3: memref<1x8xf32, #tpu.memory_space<vmem>>, %arg4: memref<8x32xbf16, #tpu.memory_space<vmem>>, %arg5: memref<1x32xf32, #tpu.memory_space<vmem>>, %arg6: memref<2x8x32xf32, #tpu.memory_space<vmem>>) attributes {dimension_semantics = [], scalar_prefetch = 0 : i64, scratch_operands = 0 : i64, tpu.core_type = #tpu.core_type<tc>} {
    %c0 = arith.constant 0 : index
    %c0_0 = arith.constant 0 : index
    %0 = vector.load %arg1[%c0, %c0_0] : memref<2x1xf32, #tpu.memory_space<vmem>>, vector<2x1xf32>
    %c0_1 = arith.constant 0 : index
    %c0_2 = arith.constant 0 : index
    %1 = vector.load %arg2[%c0_1, %c0_2] : memref<1x8xf32, #tpu.memory_space<vmem>>, vector<1x8xf32>
    %2 = vector.broadcast %0 : vector<2x1xf32> to vector<2x8xf32>
    %3 = vector.broadcast %1 : vector<1x8xf32> to vector<2x8xf32>
    %4 = arith.mulf %2, %3 : vector<2x8xf32>
    %c0_3 = arith.constant 0 : index
    %c0_4 = arith.constant 0 : index
    %5 = vector.load %arg3[%c0_3, %c0_4] : memref<1x8xf32, #tpu.memory_space<vmem>>, vector<1x8xf32>
    %6 = vector.broadcast %5 : vector<1x8xf32> to vector<2x8xf32>
    %7 = arith.addf %4, %6 : vector<2x8xf32>
    %8 = arith.negf %7 : vector<2x8xf32>
    %9 = math.exp %8 : vector<2x8xf32>
    %cst = arith.constant 1.000000e+00 : f32
    %10 = vector.broadcast %cst : f32 to vector<2x8xf32>
    %11 = arith.addf %10, %9 : vector<2x8xf32>
    %12 = arith.divf %10, %11 : vector<2x8xf32>
    %13 = arith.mulf %7, %12 : vector<2x8xf32>
    %14 = arith.truncf %13 : vector<2x8xf32> to vector<2x8xbf16>
    %c0_5 = arith.constant 0 : index
    %c0_6 = arith.constant 0 : index
    %15 = vector.load %arg4[%c0_5, %c0_6] : memref<8x32xbf16, #tpu.memory_space<vmem>>, vector<8x32xbf16>
    %cst_7 = arith.constant dense<0.000000e+00> : vector<2x32xf32>
    %16 = tpu.matmul %14, %15, %cst_7 {dimension_numbers = #tpu.dot_dimension_numbers<[1], [0], [0], [1], [0, 0, 1, 1], [], []>} : vector<2x8xbf16>, vector<8x32xbf16>, vector<2x32xf32> -> vector<2x32xf32>
    %c0_8 = arith.constant 0 : index
    %c0_9 = arith.constant 0 : index
    %17 = vector.load %arg5[%c0_8, %c0_9] : memref<1x32xf32, #tpu.memory_space<vmem>>, vector<1x32xf32>
    %18 = vector.broadcast %17 : vector<1x32xf32> to vector<2x32xf32>
    %19 = arith.addf %16, %18 : vector<2x32xf32>
    %c0_10 = arith.constant 0 : index
    %c0_11 = arith.constant 0 : index
    %c0_12 = arith.constant 0 : index
    %20 = vector.load %arg0[%c0_10, %c0_11, %c0_12] : memref<2x8x32xf32, #tpu.memory_space<vmem>>, vector<2x8x32xf32>
    %21 = vector.shape_cast %19 : vector<2x32xf32> to vector<2x1x32xf32>
    %22 = vector.broadcast %21 : vector<2x1x32xf32> to vector<2x8x32xf32>
    %23 = arith.addf %20, %22 : vector<2x8x32xf32>
    %c0_13 = arith.constant 0 : index
    %c0_14 = arith.constant 0 : index
    %c0_15 = arith.constant 0 : index
    %24 = vector.load %arg6[%c0_13, %c0_14, %c0_15] : memref<2x8x32xf32, #tpu.memory_space<vmem>>, vector<2x8x32xf32>
    tpu.vector_store %arg6[%c0_13, %c0_14, %c0_15], %23 {strides = array<i32>} : memref<2x8x32xf32, #tpu.memory_space<vmem>>, vector<2x8x32xf32>,
    return
  }
}

module attributes {stable_mosaic.version = 11 : i64} {
  func.func @_bert_layer_kernel(%arg0: i32, %arg1: memref<1x8x32xf32, #tpu.memory_space<vmem>>, %arg2: memref<32x96xbf16, #tpu.memory_space<vmem>>, %arg3: memref<1x1x96xf32, #tpu.memory_space<vmem>>, %arg4: memref<32x32xbf16, #tpu.memory_space<vmem>>, %arg5: memref<1x1x32xf32, #tpu.memory_space<vmem>>, %arg6: memref<1x1x32xf32, #tpu.memory_space<vmem>>, %arg7: memref<1x1x32xf32, #tpu.memory_space<vmem>>, %arg8: memref<32x128xbf16, #tpu.memory_space<vmem>>, %arg9: memref<1x1x128xf32, #tpu.memory_space<vmem>>, %arg10: memref<128x32xbf16, #tpu.memory_space<vmem>>, %arg11: memref<1x1x32xf32, #tpu.memory_space<vmem>>, %arg12: memref<1x1x32xf32, #tpu.memory_space<vmem>>, %arg13: memref<1x1x32xf32, #tpu.memory_space<vmem>>, %arg14: memref<1x8x32xf32, #tpu.memory_space<vmem>>, %arg15: memref<1x8x32xf32, #tpu.memory_space<vmem>>) attributes {dimension_semantics = [#tpu.dimension_semantics<parallel>], iteration_bounds = array<i64: 2>, scalar_prefetch = 0 : i64, scratch_operands = 1 : i64, tpu.core_type = #tpu.core_type<tc>, window_params = [{transform_indices = @transform_0, window_bounds = array<i64: 1, 8, 32>}, {pipeline_mode = #tpu.pipeline_mode<synchronous>, transform_indices = @transform_1, window_bounds = array<i64: 32, 96>}, {pipeline_mode = #tpu.pipeline_mode<synchronous>, transform_indices = @transform_2, window_bounds = array<i64: 1, 1, 96>}, {pipeline_mode = #tpu.pipeline_mode<synchronous>, transform_indices = @transform_3, window_bounds = array<i64: 32, 32>}, {pipeline_mode = #tpu.pipeline_mode<synchronous>, transform_indices = @transform_4, window_bounds = array<i64: 1, 1, 32>}, {pipeline_mode = #tpu.pipeline_mode<synchronous>, transform_indices = @transform_5, window_bounds = array<i64: 1, 1, 32>}, {pipeline_mode = #tpu.pipeline_mode<synchronous>, transform_indices = @transform_6, window_bounds = array<i64: 1, 1, 32>}, {pipeline_mode = #tpu.pipeline_mode<synchronous>, transform_indices = @transform_7, window_bounds = array<i64: 32, 128>}, {pipeline_mode = #tpu.pipeline_mode<synchronous>, transform_indices = @transform_8, window_bounds = array<i64: 1, 1, 128>}, {pipeline_mode = #tpu.pipeline_mode<synchronous>, transform_indices = @transform_9, window_bounds = array<i64: 128, 32>}, {pipeline_mode = #tpu.pipeline_mode<synchronous>, transform_indices = @transform_10, window_bounds = array<i64: 1, 1, 32>}, {pipeline_mode = #tpu.pipeline_mode<synchronous>, transform_indices = @transform_11, window_bounds = array<i64: 1, 1, 32>}, {pipeline_mode = #tpu.pipeline_mode<synchronous>, transform_indices = @transform_12, window_bounds = array<i64: 1, 1, 32>}, {transform_indices = @transform_13, window_bounds = array<i64: 1, 8, 32>}]} {
    %c0 = arith.constant 0 : index
    %c0_0 = arith.constant 0 : index
    %c0_1 = arith.constant 0 : index
    %0 = vector.load %arg1[%c0, %c0_0, %c0_1] : memref<1x8x32xf32, #tpu.memory_space<vmem>>, vector<1x8x32xf32>
    %1 = arith.truncf %0 : vector<1x8x32xf32> to vector<1x8x32xbf16>
    %c0_2 = arith.constant 0 : index
    %c0_3 = arith.constant 0 : index
    %2 = vector.load %arg2[%c0_2, %c0_3] : memref<32x96xbf16, #tpu.memory_space<vmem>>, vector<32x96xbf16>
    "tpu.trace_start"() <{level = 10 : i32, message = "bld,de->ble"}> : () -> ()
    %cst = arith.constant dense<0.000000e+00> : vector<1x8x96xf32>
    %3 = tpu.matmul %1, %2, %cst {dimension_numbers = #tpu.dot_dimension_numbers<[2], [0], [0, 1], [1], [0, 0, 0, 1, 1, 1], [], []>} : vector<1x8x32xbf16>, vector<32x96xbf16>, vector<1x8x96xf32> -> vector<1x8x96xf32>
    "tpu.trace_stop"() : () -> ()
    %c0_4 = arith.constant 0 : index
    %c0_5 = arith.constant 0 : index
    %c0_6 = arith.constant 0 : index
    %4 = vector.load %arg3[%c0_4, %c0_5, %c0_6] : memref<1x1x96xf32, #tpu.memory_space<vmem>>, vector<1x1x96xf32>
    %5 = vector.broadcast %4 : vector<1x1x96xf32> to vector<1x8x96xf32>
    %6 = arith.addf %3, %5 : vector<1x8x96xf32>
    %7 = vector.extract_strided_slice %6 {offsets = [0, 0, 0], sizes = [1, 8, 8], strides = [1, 1, 1]} : vector<1x8x96xf32> to vector<1x8x8xf32>
    %8 = arith.truncf %7 : vector<1x8x8xf32> to vector<1x8x8xbf16>
    %9 = vector.extract_strided_slice %6 {offsets = [0, 0, 32], sizes = [1, 8, 8], strides = [1, 1, 1]} : vector<1x8x96xf32> to vector<1x8x8xf32>
    %10 = arith.truncf %9 : vector<1x8x8xf32> to vector<1x8x8xbf16>
    %11 = vector.extract_strided_slice %6 {offsets = [0, 0, 64], sizes = [1, 8, 8], strides = [1, 1, 1]} : vector<1x8x96xf32> to vector<1x8x8xf32>
    %12 = arith.truncf %11 : vector<1x8x8xf32> to vector<1x8x8xbf16>
    "tpu.trace_start"() <{level = 10 : i32, message = "bqd,bkd->bqk"}> : () -> ()
    %cst_7 = arith.constant dense<0.000000e+00> : vector<1x8x8xf32>
    %13 = tpu.matmul %8, %10, %cst_7 {dimension_numbers = #tpu.dot_dimension_numbers<[2], [2], [1], [1], [0, 0, 0, 1, 1, 1], [0], [0]>} : vector<1x8x8xbf16>, vector<1x8x8xbf16>, vector<1x8x8xf32> -> vector<1x8x8xf32>
    "tpu.trace_stop"() : () -> ()
    %cst_8 = arith.constant 0.353553385 : f32
    %14 = vector.broadcast %cst_8 : f32 to vector<1x8x8xf32>
    %15 = arith.mulf %13, %14 : vector<1x8x8xf32>
    %cst_9 = arith.constant dense<0xFF800000> : vector<1x8xf32>
    %16 = vector.multi_reduction <maximumf>, %15, %cst_9 [2] : vector<1x8x8xf32> to vector<1x8xf32>
    %17 = vector.shape_cast %16 : vector<1x8xf32> to vector<1x8x1xf32>
    %18 = vector.broadcast %17 : vector<1x8x1xf32> to vector<1x8x8xf32>
    %19 = arith.subf %15, %18 : vector<1x8x8xf32>
    %20 = math.exp %19 : vector<1x8x8xf32>
    %cst_10 = arith.constant dense<0.000000e+00> : vector<1x8xf32>
    %21 = vector.multi_reduction <add>, %20, %cst_10 [2] : vector<1x8x8xf32> to vector<1x8xf32>
    %22 = vector.shape_cast %21 : vector<1x8xf32> to vector<1x8x1xf32>
    %23 = tpu.reciprocal %22 {approx = true} : vector<1x8x1xf32> -> vector<1x8x1xf32>
    %24 = vector.broadcast %23 : vector<1x8x1xf32> to vector<1x8x8xf32>
    %25 = arith.mulf %20, %24 : vector<1x8x8xf32>
    %26 = arith.truncf %25 : vector<1x8x8xf32> to vector<1x8x8xbf16>
    "tpu.trace_start"() <{level = 10 : i32, message = "bqk,bkd->bqd"}> : () -> ()
    %cst_11 = arith.constant dense<0.000000e+00> : vector<1x8x8xf32>
    %27 = tpu.matmul %26, %12, %cst_11 {dimension_numbers = #tpu.dot_dimension_numbers<[2], [1], [1], [2], [0, 0, 0, 1, 1, 2], [0], [0]>} : vector<1x8x8xbf16>, vector<1x8x8xbf16>, vector<1x8x8xf32> -> vector<1x8x8xf32>
    "tpu.trace_stop"() : () -> ()
    %c0_12 = arith.constant 0 : index
    %c0_13 = arith.constant 0 : index
    %c0_14 = arith.constant 0 : index
    %28 = vector.load %arg15[%c0_12, %c0_13, %c0_14] : memref<1x8x32xf32, #tpu.memory_space<vmem>>, vector<1x8x8xf32>
    tpu.vector_store %arg15[%c0_12, %c0_13, %c0_14], %27 {strides = array<i32>} : memref<1x8x32xf32, #tpu.memory_space<vmem>>, vector<1x8x8xf32>,
    %29 = vector.extract_strided_slice %6 {offsets = [0, 0, 8], sizes = [1, 8, 8], strides = [1, 1, 1]} : vector<1x8x96xf32> to vector<1x8x8xf32>
    %30 = arith.truncf %29 : vector<1x8x8xf32> to vector<1x8x8xbf16>
    %31 = vector.extract_strided_slice %6 {offsets = [0, 0, 40], sizes = [1, 8, 8], strides = [1, 1, 1]} : vector<1x8x96xf32> to vector<1x8x8xf32>
    %32 = arith.truncf %31 : vector<1x8x8xf32> to vector<1x8x8xbf16>
    %33 = vector.extract_strided_slice %6 {offsets = [0, 0, 72], sizes = [1, 8, 8], strides = [1, 1, 1]} : vector<1x8x96xf32> to vector<1x8x8xf32>
    %34 = arith.truncf %33 : vector<1x8x8xf32> to vector<1x8x8xbf16>
    "tpu.trace_start"() <{level = 10 : i32, message = "bqd,bkd->bqk"}> : () -> ()
    %cst_15 = arith.constant dense<0.000000e+00> : vector<1x8x8xf32>
    %35 = tpu.matmul %30, %32, %cst_15 {dimension_numbers = #tpu.dot_dimension_numbers<[2], [2], [1], [1], [0, 0, 0, 1, 1, 1], [0], [0]>} : vector<1x8x8xbf16>, vector<1x8x8xbf16>, vector<1x8x8xf32> -> vector<1x8x8xf32>
    "tpu.trace_stop"() : () -> ()
    %cst_16 = arith.constant 0.353553385 : f32
    %36 = vector.broadcast %cst_16 : f32 to vector<1x8x8xf32>
    %37 = arith.mulf %35, %36 : vector<1x8x8xf32>
    %cst_17 = arith.constant dense<0xFF800000> : vector<1x8xf32>
    %38 = vector.multi_reduction <maximumf>, %37, %cst_17 [2] : vector<1x8x8xf32> to vector<1x8xf32>
    %39 = vector.shape_cast %38 : vector<1x8xf32> to vector<1x8x1xf32>
    %40 = vector.broadcast %39 : vector<1x8x1xf32> to vector<1x8x8xf32>
    %41 = arith.subf %37, %40 : vector<1x8x8xf32>
    %42 = math.exp %41 : vector<1x8x8xf32>
    %cst_18 = arith.constant dense<0.000000e+00> : vector<1x8xf32>
    %43 = vector.multi_reduction <add>, %42, %cst_18 [2] : vector<1x8x8xf32> to vector<1x8xf32>
    %44 = vector.shape_cast %43 : vector<1x8xf32> to vector<1x8x1xf32>
    %45 = tpu.reciprocal %44 {approx = true} : vector<1x8x1xf32> -> vector<1x8x1xf32>
    %46 = vector.broadcast %45 : vector<1x8x1xf32> to vector<1x8x8xf32>
    %47 = arith.mulf %42, %46 : vector<1x8x8xf32>
    %48 = arith.truncf %47 : vector<1x8x8xf32> to vector<1x8x8xbf16>
    "tpu.trace_start"() <{level = 10 : i32, message = "bqk,bkd->bqd"}> : () -> ()
    %cst_19 = arith.constant dense<0.000000e+00> : vector<1x8x8xf32>
    %49 = tpu.matmul %48, %34, %cst_19 {dimension_numbers = #tpu.dot_dimension_numbers<[2], [1], [1], [2], [0, 0, 0, 1, 1, 2], [0], [0]>} : vector<1x8x8xbf16>, vector<1x8x8xbf16>, vector<1x8x8xf32> -> vector<1x8x8xf32>
    "tpu.trace_stop"() : () -> ()
    %c0_20 = arith.constant 0 : index
    %c0_21 = arith.constant 0 : index
    %c8 = arith.constant 8 : index
    %50 = vector.load %arg15[%c0_20, %c0_21, %c8] : memref<1x8x32xf32, #tpu.memory_space<vmem>>, vector<1x8x8xf32>
    tpu.vector_store %arg15[%c0_20, %c0_21, %c8], %49 {strides = array<i32>} : memref<1x8x32xf32, #tpu.memory_space<vmem>>, vector<1x8x8xf32>,
    %51 = vector.extract_strided_slice %6 {offsets = [0, 0, 16], sizes = [1, 8, 8], strides = [1, 1, 1]} : vector<1x8x96xf32> to vector<1x8x8xf32>
    %52 = arith.truncf %51 : vector<1x8x8xf32> to vector<1x8x8xbf16>
    %53 = vector.extract_strided_slice %6 {offsets = [0, 0, 48], sizes = [1, 8, 8], strides = [1, 1, 1]} : vector<1x8x96xf32> to vector<1x8x8xf32>
    %54 = arith.truncf %53 : vector<1x8x8xf32> to vector<1x8x8xbf16>
    %55 = vector.extract_strided_slice %6 {offsets = [0, 0, 80], sizes = [1, 8, 8], strides = [1, 1, 1]} : vector<1x8x96xf32> to vector<1x8x8xf32>
    %56 = arith.truncf %55 : vector<1x8x8xf32> to vector<1x8x8xbf16>
    "tpu.trace_start"() <{level = 10 : i32, message = "bqd,bkd->bqk"}> : () -> ()
    %cst_22 = arith.constant dense<0.000000e+00> : vector<1x8x8xf32>
    %57 = tpu.matmul %52, %54, %cst_22 {dimension_numbers = #tpu.dot_dimension_numbers<[2], [2], [1], [1], [0, 0, 0, 1, 1, 1], [0], [0]>} : vector<1x8x8xbf16>, vector<1x8x8xbf16>, vector<1x8x8xf32> -> vector<1x8x8xf32>
    "tpu.trace_stop"() : () -> ()
    %cst_23 = arith.constant 0.353553385 : f32
    %58 = vector.broadcast %cst_23 : f32 to vector<1x8x8xf32>
    %59 = arith.mulf %57, %58 : vector<1x8x8xf32>
    %cst_24 = arith.constant dense<0xFF800000> : vector<1x8xf32>
    %60 = vector.multi_reduction <maximumf>, %59, %cst_24 [2] : vector<1x8x8xf32> to vector<1x8xf32>
    %61 = vector.shape_cast %60 : vector<1x8xf32> to vector<1x8x1xf32>
    %62 = vector.broadcast %61 : vector<1x8x1xf32> to vector<1x8x8xf32>
    %63 = arith.subf %59, %62 : vector<1x8x8xf32>
    %64 = math.exp %63 : vector<1x8x8xf32>
    %cst_25 = arith.constant dense<0.000000e+00> : vector<1x8xf32>
    %65 = vector.multi_reduction <add>, %64, %cst_25 [2] : vector<1x8x8xf32> to vector<1x8xf32>
    %66 = vector.shape_cast %65 : vector<1x8xf32> to vector<1x8x1xf32>
    %67 = tpu.reciprocal %66 {approx = true} : vector<1x8x1xf32> -> vector<1x8x1xf32>
    %68 = vector.broadcast %67 : vector<1x8x1xf32> to vector<1x8x8xf32>
    %69 = arith.mulf %64, %68 : vector<1x8x8xf32>
    %70 = arith.truncf %69 : vector<1x8x8xf32> to vector<1x8x8xbf16>
    "tpu.trace_start"() <{level = 10 : i32, message = "bqk,bkd->bqd"}> : () -> ()
    %cst_26 = arith.constant dense<0.000000e+00> : vector<1x8x8xf32>
    %71 = tpu.matmul %70, %56, %cst_26 {dimension_numbers = #tpu.dot_dimension_numbers<[2], [1], [1], [2], [0, 0, 0, 1, 1, 2], [0], [0]>} : vector<1x8x8xbf16>, vector<1x8x8xbf16>, vector<1x8x8xf32> -> vector<1x8x8xf32>
    "tpu.trace_stop"() : () -> ()
    %c0_27 = arith.constant 0 : index
    %c0_28 = arith.constant 0 : index
    %c16 = arith.constant 16 : index
    %72 = vector.load %arg15[%c0_27, %c0_28, %c16] : memref<1x8x32xf32, #tpu.memory_space<vmem>>, vector<1x8x8xf32>
    tpu.vector_store %arg15[%c0_27, %c0_28, %c16], %71 {strides = array<i32>} : memref<1x8x32xf32, #tpu.memory_space<vmem>>, vector<1x8x8xf32>,
    %73 = vector.extract_strided_slice %6 {offsets = [0, 0, 24], sizes = [1, 8, 8], strides = [1, 1, 1]} : vector<1x8x96xf32> to vector<1x8x8xf32>
    %74 = arith.truncf %73 : vector<1x8x8xf32> to vector<1x8x8xbf16>
    %75 = vector.extract_strided_slice %6 {offsets = [0, 0, 56], sizes = [1, 8, 8], strides = [1, 1, 1]} : vector<1x8x96xf32> to vector<1x8x8xf32>
    %76 = arith.truncf %75 : vector<1x8x8xf32> to vector<1x8x8xbf16>
    %77 = vector.extract_strided_slice %6 {offsets = [0, 0, 88], sizes = [1, 8, 8], strides = [1, 1, 1]} : vector<1x8x96xf32> to vector<1x8x8xf32>
    %78 = arith.truncf %77 : vector<1x8x8xf32> to vector<1x8x8xbf16>
    "tpu.trace_start"() <{level = 10 : i32, message = "bqd,bkd->bqk"}> : () -> ()
    %cst_29 = arith.constant dense<0.000000e+00> : vector<1x8x8xf32>
    %79 = tpu.matmul %74, %76, %cst_29 {dimension_numbers = #tpu.dot_dimension_numbers<[2], [2], [1], [1], [0, 0, 0, 1, 1, 1], [0], [0]>} : vector<1x8x8xbf16>, vector<1x8x8xbf16>, vector<1x8x8xf32> -> vector<1x8x8xf32>
    "tpu.trace_stop"() : () -> ()
    %cst_30 = arith.constant 0.353553385 : f32
    %80 = vector.broadcast %cst_30 : f32 to vector<1x8x8xf32>
    %81 = arith.mulf %79, %80 : vector<1x8x8xf32>
    %cst_31 = arith.constant dense<0xFF800000> : vector<1x8xf32>
    %82 = vector.multi_reduction <maximumf>, %81, %cst_31 [2] : vector<1x8x8xf32> to vector<1x8xf32>
    %83 = vector.shape_cast %82 : vector<1x8xf32> to vector<1x8x1xf32>
    %84 = vector.broadcast %83 : vector<1x8x1xf32> to vector<1x8x8xf32>
    %85 = arith.subf %81, %84 : vector<1x8x8xf32>
    %86 = math.exp %85 : vector<1x8x8xf32>
    %cst_32 = arith.constant dense<0.000000e+00> : vector<1x8xf32>
    %87 = vector.multi_reduction <add>, %86, %cst_32 [2] : vector<1x8x8xf32> to vector<1x8xf32>
    %88 = vector.shape_cast %87 : vector<1x8xf32> to vector<1x8x1xf32>
    %89 = tpu.reciprocal %88 {approx = true} : vector<1x8x1xf32> -> vector<1x8x1xf32>
    %90 = vector.broadcast %89 : vector<1x8x1xf32> to vector<1x8x8xf32>
    %91 = arith.mulf %86, %90 : vector<1x8x8xf32>
    %92 = arith.truncf %91 : vector<1x8x8xf32> to vector<1x8x8xbf16>
    "tpu.trace_start"() <{level = 10 : i32, message = "bqk,bkd->bqd"}> : () -> ()
    %cst_33 = arith.constant dense<0.000000e+00> : vector<1x8x8xf32>
    %93 = tpu.matmul %92, %78, %cst_33 {dimension_numbers = #tpu.dot_dimension_numbers<[2], [1], [1], [2], [0, 0, 0, 1, 1, 2], [0], [0]>} : vector<1x8x8xbf16>, vector<1x8x8xbf16>, vector<1x8x8xf32> -> vector<1x8x8xf32>
    "tpu.trace_stop"() : () -> ()
    %c0_34 = arith.constant 0 : index
    %c0_35 = arith.constant 0 : index
    %c24 = arith.constant 24 : index
    %94 = vector.load %arg15[%c0_34, %c0_35, %c24] : memref<1x8x32xf32, #tpu.memory_space<vmem>>, vector<1x8x8xf32>
    tpu.vector_store %arg15[%c0_34, %c0_35, %c24], %93 {strides = array<i32>} : memref<1x8x32xf32, #tpu.memory_space<vmem>>, vector<1x8x8xf32>,
    %c0_36 = arith.constant 0 : index
    %c0_37 = arith.constant 0 : index
    %c0_38 = arith.constant 0 : index
    %95 = vector.load %arg15[%c0_36, %c0_37, %c0_38] : memref<1x8x32xf32, #tpu.memory_space<vmem>>, vector<1x8x32xf32>
    %96 = arith.truncf %95 : vector<1x8x32xf32> to vector<1x8x32xbf16>
    %c0_39 = arith.constant 0 : index
    %c0_40 = arith.constant 0 : index
    %97 = vector.load %arg4[%c0_39, %c0_40] : memref<32x32xbf16, #tpu.memory_space<vmem>>, vector<32x32xbf16>
    "tpu.trace_start"() <{level = 10 : i32, message = "bld,de->ble"}> : () -> ()
    %cst_41 = arith.constant dense<0.000000e+00> : vector<1x8x32xf32>
    %98 = tpu.matmul %96, %97, %cst_41 {dimension_numbers = #tpu.dot_dimension_numbers<[2], [0], [0, 1], [1], [0, 0, 0, 1, 1, 1], [], []>} : vector<1x8x32xbf16>, vector<32x32xbf16>, vector<1x8x32xf32> -> vector<1x8x32xf32>
    "tpu.trace_stop"() : () -> ()
    %c0_42 = arith.constant 0 : index
    %c0_43 = arith.constant 0 : index
    %c0_44 = arith.constant 0 : index
    %99 = vector.load %arg5[%c0_42, %c0_43, %c0_44] : memref<1x1x32xf32, #tpu.memory_space<vmem>>, vector<1x1x32xf32>
    %100 = vector.broadcast %99 : vector<1x1x32xf32> to vector<1x8x32xf32>
    %101 = arith.addf %98, %100 : vector<1x8x32xf32>
    %102 = arith.addf %101, %0 : vector<1x8x32xf32>
    %c0_45 = arith.constant 0 : index
    %c0_46 = arith.constant 0 : index
    %c0_47 = arith.constant 0 : index
    %103 = vector.load %arg6[%c0_45, %c0_46, %c0_47] : memref<1x1x32xf32, #tpu.memory_space<vmem>>, vector<1x1x32xf32>
    %c0_48 = arith.constant 0 : index
    %c0_49 = arith.constant 0 : index
    %c0_50 = arith.constant 0 : index
    %104 = vector.load %arg7[%c0_48, %c0_49, %c0_50] : memref<1x1x32xf32, #tpu.memory_space<vmem>>, vector<1x1x32xf32>
    %cst_51 = arith.constant dense<0.000000e+00> : vector<1x8xf32>
    %105 = vector.multi_reduction <add>, %102, %cst_51 [2] : vector<1x8x32xf32> to vector<1x8xf32>
    %106 = vector.shape_cast %105 : vector<1x8xf32> to vector<1x8x1xf32>
    %cst_52 = arith.constant 3.200000e+01 : f32
    %107 = vector.broadcast %cst_52 : f32 to vector<1x8x1xf32>
    %108 = arith.divf %106, %107 : vector<1x8x1xf32>
    %109 = vector.broadcast %108 : vector<1x8x1xf32> to vector<1x8x32xf32>
    %110 = arith.subf %102, %109 : vector<1x8x32xf32>
    %111 = arith.mulf %110, %110 : vector<1x8x32xf32>
    %cst_53 = arith.constant dense<0.000000e+00> : vector<1x8xf32>
    %112 = vector.multi_reduction <add>, %111, %cst_53 [2] : vector<1x8x32xf32> to vector<1x8xf32>
    %113 = vector.shape_cast %112 : vector<1x8xf32> to vector<1x8x1xf32>
    %cst_54 = arith.constant 3.200000e+01 : f32
    %114 = vector.broadcast %cst_54 : f32 to vector<1x8x1xf32>
    %115 = arith.divf %113, %114 : vector<1x8x1xf32>
    %cst_55 = arith.constant 9.99999996E-13 : f32
    %116 = vector.broadcast %cst_55 : f32 to vector<1x8x1xf32>
    %117 = arith.addf %115, %116 : vector<1x8x1xf32>
    %118 = math.rsqrt %117 : vector<1x8x1xf32>
    %119 = vector.broadcast %118 : vector<1x8x1xf32> to vector<1x8x32xf32>
    %120 = arith.mulf %110, %119 : vector<1x8x32xf32>
    %121 = vector.broadcast %103 : vector<1x1x32xf32> to vector<1x8x32xf32>
    %122 = arith.mulf %120, %121 : vector<1x8x32xf32>
    %123 = vector.broadcast %104 : vector<1x1x32xf32> to vector<1x8x32xf32>
    %124 = arith.addf %122, %123 : vector<1x8x32xf32>
    %125 = arith.truncf %124 : vector<1x8x32xf32> to vector<1x8x32xbf16>
    %c0_56 = arith.constant 0 : index
    %c0_57 = arith.constant 0 : index
    %126 = vector.load %arg8[%c0_56, %c0_57] : memref<32x128xbf16, #tpu.memory_space<vmem>>, vector<32x128xbf16>
    "tpu.trace_start"() <{level = 10 : i32, message = "bld,de->ble"}> : () -> ()
    %cst_58 = arith.constant dense<0.000000e+00> : vector<1x8x128xf32>
    %127 = tpu.matmul %125, %126, %cst_58 {dimension_numbers = #tpu.dot_dimension_numbers<[2], [0], [0, 1], [1], [0, 0, 0, 1, 1, 1], [], []>} : vector<1x8x32xbf16>, vector<32x128xbf16>, vector<1x8x128xf32> -> vector<1x8x128xf32>
    "tpu.trace_stop"() : () -> ()
    %c0_59 = arith.constant 0 : index
    %c0_60 = arith.constant 0 : index
    %c0_61 = arith.constant 0 : index
    %128 = vector.load %arg9[%c0_59, %c0_60, %c0_61] : memref<1x1x128xf32, #tpu.memory_space<vmem>>, vector<1x1x128xf32>
    %129 = vector.broadcast %128 : vector<1x1x128xf32> to vector<1x8x128xf32>
    %130 = arith.addf %127, %129 : vector<1x8x128xf32>
    %131 = arith.mulf %130, %130 : vector<1x8x128xf32>
    %132 = arith.mulf %130, %131 : vector<1x8x128xf32>
    %cst_62 = arith.constant 4.471500e-02 : f32
    %133 = vector.broadcast %cst_62 : f32 to vector<1x8x128xf32>
    %134 = arith.mulf %133, %132 : vector<1x8x128xf32>
    %135 = arith.addf %130, %134 : vector<1x8x128xf32>
    %cst_63 = arith.constant 0.797884583 : f32
    %136 = vector.broadcast %cst_63 : f32 to vector<1x8x128xf32>
    %137 = arith.mulf %136, %135 : vector<1x8x128xf32>
    %138 = math.tanh %137 : vector<1x8x128xf32>
    %cst_64 = arith.constant 1.000000e+00 : f32
    %139 = vector.broadcast %cst_64 : f32 to vector<1x8x128xf32>
    %140 = arith.addf %139, %138 : vector<1x8x128xf32>
    %cst_65 = arith.constant 5.000000e-01 : f32
    %141 = vector.broadcast %cst_65 : f32 to vector<1x8x128xf32>
    %142 = arith.mulf %141, %140 : vector<1x8x128xf32>
    %143 = arith.mulf %130, %142 : vector<1x8x128xf32>
    %144 = arith.truncf %143 : vector<1x8x128xf32> to vector<1x8x128xbf16>
    %c0_66 = arith.constant 0 : index
    %c0_67 = arith.constant 0 : index
    %145 = vector.load %arg10[%c0_66, %c0_67] : memref<128x32xbf16, #tpu.memory_space<vmem>>, vector<128x32xbf16>
    "tpu.trace_start"() <{level = 10 : i32, message = "bld,de->ble"}> : () -> ()
    %cst_68 = arith.constant dense<0.000000e+00> : vector<1x8x32xf32>
    %146 = tpu.matmul %144, %145, %cst_68 {dimension_numbers = #tpu.dot_dimension_numbers<[2], [0], [0, 1], [1], [0, 0, 0, 1, 1, 1], [], []>} : vector<1x8x128xbf16>, vector<128x32xbf16>, vector<1x8x32xf32> -> vector<1x8x32xf32>
    "tpu.trace_stop"() : () -> ()
    %c0_69 = arith.constant 0 : index
    %c0_70 = arith.constant 0 : index
    %c0_71 = arith.constant 0 : index
    %147 = vector.load %arg11[%c0_69, %c0_70, %c0_71] : memref<1x1x32xf32, #tpu.memory_space<vmem>>, vector<1x1x32xf32>
    %148 = vector.broadcast %147 : vector<1x1x32xf32> to vector<1x8x32xf32>
    %149 = arith.addf %146, %148 : vector<1x8x32xf32>
    %150 = arith.addf %149, %124 : vector<1x8x32xf32>
    %c0_72 = arith.constant 0 : index
    %c0_73 = arith.constant 0 : index
    %c0_74 = arith.constant 0 : index
    %151 = vector.load %arg12[%c0_72, %c0_73, %c0_74] : memref<1x1x32xf32, #tpu.memory_space<vmem>>, vector<1x1x32xf32>
    %c0_75 = arith.constant 0 : index
    %c0_76 = arith.constant 0 : index
    %c0_77 = arith.constant 0 : index
    %152 = vector.load %arg13[%c0_75, %c0_76, %c0_77] : memref<1x1x32xf32, #tpu.memory_space<vmem>>, vector<1x1x32xf32>
    %cst_78 = arith.constant dense<0.000000e+00> : vector<1x8xf32>
    %153 = vector.multi_reduction <add>, %150, %cst_78 [2] : vector<1x8x32xf32> to vector<1x8xf32>
    %154 = vector.shape_cast %153 : vector<1x8xf32> to vector<1x8x1xf32>
    %cst_79 = arith.constant 3.200000e+01 : f32
    %155 = vector.broadcast %cst_79 : f32 to vector<1x8x1xf32>
    %156 = arith.divf %154, %155 : vector<1x8x1xf32>
    %157 = vector.broadcast %156 : vector<1x8x1xf32> to vector<1x8x32xf32>
    %158 = arith.subf %150, %157 : vector<1x8x32xf32>
    %159 = arith.mulf %158, %158 : vector<1x8x32xf32>
    %cst_80 = arith.constant dense<0.000000e+00> : vector<1x8xf32>
    %160 = vector.multi_reduction <add>, %159, %cst_80 [2] : vector<1x8x32xf32> to vector<1x8xf32>
    %161 = vector.shape_cast %160 : vector<1x8xf32> to vector<1x8x1xf32>
    %cst_81 = arith.constant 3.200000e+01 : f32
    %162 = vector.broadcast %cst_81 : f32 to vector<1x8x1xf32>
    %163 = arith.divf %161, %162 : vector<1x8x1xf32>
    %cst_82 = arith.constant 9.99999996E-13 : f32
    %164 = vector.broadcast %cst_82 : f32 to vector<1x8x1xf32>
    %165 = arith.addf %163, %164 : vector<1x8x1xf32>
    %166 = math.rsqrt %165 : vector<1x8x1xf32>
    %167 = vector.broadcast %166 : vector<1x8x1xf32> to vector<1x8x32xf32>
    %168 = arith.mulf %158, %167 : vector<1x8x32xf32>
    %169 = vector.broadcast %151 : vector<1x1x32xf32> to vector<1x8x32xf32>
    %170 = arith.mulf %168, %169 : vector<1x8x32xf32>
    %171 = vector.broadcast %152 : vector<1x1x32xf32> to vector<1x8x32xf32>
    %172 = arith.addf %170, %171 : vector<1x8x32xf32>
    %c0_83 = arith.constant 0 : index
    %c0_84 = arith.constant 0 : index
    %c0_85 = arith.constant 0 : index
    %173 = vector.load %arg14[%c0_83, %c0_84, %c0_85] : memref<1x8x32xf32, #tpu.memory_space<vmem>>, vector<1x8x32xf32>
    tpu.vector_store %arg14[%c0_83, %c0_84, %c0_85], %172 {strides = array<i32>} : memref<1x8x32xf32, #tpu.memory_space<vmem>>, vector<1x8x32xf32>,
    return
  }
  func.func @transform_0(%arg0: i32) -> (i32, i32, i32) {
    %c0_i32 = arith.constant 0 : i32
    %c0_i32_0 = arith.constant 0 : i32
    %c0_i32_1 = arith.constant 0 : i32
    return %arg0, %c0_i32, %c0_i32_0 : i32, i32, i32
  }
  func.func @transform_1(%arg0: i32) -> (i32, i32) {
    %c0_i32 = arith.constant 0 : i32
    %c0_i32_0 = arith.constant 0 : i32
    %c0_i32_1 = arith.constant 0 : i32
    return %c0_i32, %c0_i32_0 : i32, i32
  }
  func.func @transform_2(%arg0: i32) -> (i32, i32, i32) {
    %c0_i32 = arith.constant 0 : i32
    %c0_i32_0 = arith.constant 0 : i32
    %c0_i32_1 = arith.constant 0 : i32
    %c0_i32_2 = arith.constant 0 : i32
    return %c0_i32, %c0_i32_0, %c0_i32_1 : i32, i32, i32
  }
  func.func @transform_3(%arg0: i32) -> (i32, i32) {
    %c0_i32 = arith.constant 0 : i32
    %c0_i32_0 = arith.constant 0 : i32
    %c0_i32_1 = arith.constant 0 : i32
    return %c0_i32, %c0_i32_0 : i32, i32
  }
  func.func @transform_4(%arg0: i32) -> (i32, i32, i32) {
    %c0_i32 = arith.constant 0 : i32
    %c0_i32_0 = arith.constant 0 : i32
    %c0_i32_1 = arith.constant 0 : i32
    %c0_i32_2 = arith.constant 0 : i32
    return %c0_i32, %c0_i32_0, %c0_i32_1 : i32, i32, i32
  }
  func.func @transform_5(%arg0: i32) -> (i32, i32, i32) {
    %c0_i32 = arith.constant 0 : i32
    %c0_i32_0 = arith.constant 0 : i32
    %c0_i32_1 = arith.constant 0 : i32
    %c0_i32_2 = arith.constant 0 : i32
    return %c0_i32, %c0_i32_0, %c0_i32_1 : i32, i32, i32
  }
  func.func @transform_6(%arg0: i32) -> (i32, i32, i32) {
    %c0_i32 = arith.constant 0 : i32
    %c0_i32_0 = arith.constant 0 : i32
    %c0_i32_1 = arith.constant 0 : i32
    %c0_i32_2 = arith.constant 0 : i32
    return %c0_i32, %c0_i32_0, %c0_i32_1 : i32, i32, i32
  }
  func.func @transform_7(%arg0: i32) -> (i32, i32) {
    %c0_i32 = arith.constant 0 : i32
    %c0_i32_0 = arith.constant 0 : i32
    %c0_i32_1 = arith.constant 0 : i32
    return %c0_i32, %c0_i32_0 : i32, i32
  }
  func.func @transform_8(%arg0: i32) -> (i32, i32, i32) {
    %c0_i32 = arith.constant 0 : i32
    %c0_i32_0 = arith.constant 0 : i32
    %c0_i32_1 = arith.constant 0 : i32
    %c0_i32_2 = arith.constant 0 : i32
    return %c0_i32, %c0_i32_0, %c0_i32_1 : i32, i32, i32
  }
  func.func @transform_9(%arg0: i32) -> (i32, i32) {
    %c0_i32 = arith.constant 0 : i32
    %c0_i32_0 = arith.constant 0 : i32
    %c0_i32_1 = arith.constant 0 : i32
    return %c0_i32, %c0_i32_0 : i32, i32
  }
  func.func @transform_10(%arg0: i32) -> (i32, i32, i32) {
    %c0_i32 = arith.constant 0 : i32
    %c0_i32_0 = arith.constant 0 : i32
    %c0_i32_1 = arith.constant 0 : i32
    %c0_i32_2 = arith.constant 0 : i32
    return %c0_i32, %c0_i32_0, %c0_i32_1 : i32, i32, i32
  }
  func.func @transform_11(%arg0: i32) -> (i32, i32, i32) {
    %c0_i32 = arith.constant 0 : i32
    %c0_i32_0 = arith.constant 0 : i32
    %c0_i32_1 = arith.constant 0 : i32
    %c0_i32_2 = arith.constant 0 : i32
    return %c0_i32, %c0_i32_0, %c0_i32_1 : i32, i32, i32
  }
  func.func @transform_12(%arg0: i32) -> (i32, i32, i32) {
    %c0_i32 = arith.constant 0 : i32
    %c0_i32_0 = arith.constant 0 : i32
    %c0_i32_1 = arith.constant 0 : i32
    %c0_i32_2 = arith.constant 0 : i32
    return %c0_i32, %c0_i32_0, %c0_i32_1 : i32, i32, i32
  }
  func.func @transform_13(%arg0: i32) -> (i32, i32, i32) {
    %c0_i32 = arith.constant 0 : i32
    %c0_i32_0 = arith.constant 0 : i32
    %c0_i32_1 = arith.constant 0 : i32
    return %arg0, %c0_i32, %c0_i32_0 : i32, i32, i32
  }
}

module attributes {stable_mosaic.version = 11 : i64} {
  func.func @_down_block_kernel(%arg0: i32, %arg1: memref<1x5x32xf32, #tpu.memory_space<vmem>>, %arg2: memref<1x5x32xf32, #tpu.memory_space<vmem>>, %arg3: memref<3x32x64xbf16, #tpu.memory_space<vmem>>, %arg4: memref<1x1x64xf32, #tpu.memory_space<vmem>>, %arg5: memref<1x4x64xf32, #tpu.memory_space<vmem>>) attributes {dimension_semantics = [#tpu.dimension_semantics<parallel>], iteration_bounds = array<i64: 2>, scalar_prefetch = 0 : i64, scratch_operands = 0 : i64, tpu.core_type = #tpu.core_type<tc>, window_params = [{transform_indices = @transform_0, window_bounds = array<i64: 1, 5, 32>}, {transform_indices = @transform_1, window_bounds = array<i64: 1, 5, 32>}, {pipeline_mode = #tpu.pipeline_mode<synchronous>, transform_indices = @transform_2, window_bounds = array<i64: 3, 32, 64>}, {pipeline_mode = #tpu.pipeline_mode<synchronous>, transform_indices = @transform_3, window_bounds = array<i64: 1, 1, 64>}, {transform_indices = @transform_4, window_bounds = array<i64: 1, 4, 64>}]} {
    %c0 = arith.constant 0 : index
    %c0_0 = arith.constant 0 : index
    %c0_1 = arith.constant 0 : index
    %0 = vector.load %arg1[%c0, %c0_0, %c0_1] : memref<1x5x32xf32, #tpu.memory_space<vmem>>, vector<1x4x32xf32>
    %1 = arith.truncf %0 : vector<1x4x32xf32> to vector<1x4x32xbf16>
    %c0_2 = arith.constant 0 : index
    %c1 = arith.constant 1 : index
    %c0_3 = arith.constant 0 : index
    %2 = vector.load %arg1[%c0_2, %c1, %c0_3] : memref<1x5x32xf32, #tpu.memory_space<vmem>>, vector<1x4x32xf32>
    %3 = arith.truncf %2 : vector<1x4x32xf32> to vector<1x4x32xbf16>
    %c0_4 = arith.constant 0 : index
    %c0_5 = arith.constant 0 : index
    %c0_6 = arith.constant 0 : index
    %4 = vector.load %arg2[%c0_4, %c0_5, %c0_6] : memref<1x5x32xf32, #tpu.memory_space<vmem>>, vector<1x4x32xf32>
    %5 = arith.truncf %4 : vector<1x4x32xf32> to vector<1x4x32xbf16>
    %c0_7 = arith.constant 0 : index
    %c1_8 = arith.constant 1 : index
    %c0_9 = arith.constant 0 : index
    %6 = vector.load %arg2[%c0_7, %c1_8, %c0_9] : memref<1x5x32xf32, #tpu.memory_space<vmem>>, vector<1x4x32xf32>
    %7 = arith.truncf %6 : vector<1x4x32xf32> to vector<1x4x32xbf16>
    %c0_10 = arith.constant 0 : index
    %c0_11 = arith.constant 0 : index
    %c0_12 = arith.constant 0 : index
    %8 = vector.load %arg3[%c0_10, %c0_11, %c0_12] : memref<3x32x64xbf16, #tpu.memory_space<vmem>>, vector<1x32x64xbf16>
    %9 = vector.shape_cast %8 : vector<1x32x64xbf16> to vector<32x64xbf16>
    %c1_13 = arith.constant 1 : index
    %c0_14 = arith.constant 0 : index
    %c0_15 = arith.constant 0 : index
    %10 = vector.load %arg3[%c1_13, %c0_14, %c0_15] : memref<3x32x64xbf16, #tpu.memory_space<vmem>>, vector<1x32x64xbf16>
    %11 = vector.shape_cast %10 : vector<1x32x64xbf16> to vector<32x64xbf16>
    %c2 = arith.constant 2 : index
    %c0_16 = arith.constant 0 : index
    %c0_17 = arith.constant 0 : index
    %12 = vector.load %arg3[%c2, %c0_16, %c0_17] : memref<3x32x64xbf16, #tpu.memory_space<vmem>>, vector<1x32x64xbf16>
    %13 = vector.shape_cast %12 : vector<1x32x64xbf16> to vector<32x64xbf16>
    "tpu.trace_start"() <{level = 10 : i32, message = "blc,cd->bld"}> : () -> ()
    %cst = arith.constant dense<0.000000e+00> : vector<1x4x64xf32>
    %14 = tpu.matmul %1, %9, %cst {dimension_numbers = #tpu.dot_dimension_numbers<[2], [0], [0, 1], [1], [0, 0, 0, 1, 1, 1], [], []>} : vector<1x4x32xbf16>, vector<32x64xbf16>, vector<1x4x64xf32> -> vector<1x4x64xf32>
    %cst_18 = arith.constant dense<0.000000e+00> : vector<1x4x64xf32>
    %15 = tpu.matmul %5, %11, %cst_18 {dimension_numbers = #tpu.dot_dimension_numbers<[2], [0], [0, 1], [1], [0, 0, 0, 1, 1, 1], [], []>} : vector<1x4x32xbf16>, vector<32x64xbf16>, vector<1x4x64xf32> -> vector<1x4x64xf32>
    "tpu.trace_stop"() : () -> ()
    %16 = arith.addf %14, %15 : vector<1x4x64xf32>
    "tpu.trace_start"() <{level = 10 : i32, message = "blc,cd->bld"}> : () -> ()
    %cst_19 = arith.constant dense<0.000000e+00> : vector<1x4x64xf32>
    %17 = tpu.matmul %3, %13, %cst_19 {dimension_numbers = #tpu.dot_dimension_numbers<[2], [0], [0, 1], [1], [0, 0, 0, 1, 1, 1], [], []>} : vector<1x4x32xbf16>, vector<32x64xbf16>, vector<1x4x64xf32> -> vector<1x4x64xf32>
    "tpu.trace_stop"() : () -> ()
    %18 = arith.addf %16, %17 : vector<1x4x64xf32>
    %c0_20 = arith.constant 0 : index
    %c0_21 = arith.constant 0 : index
    %c0_22 = arith.constant 0 : index
    %19 = vector.load %arg4[%c0_20, %c0_21, %c0_22] : memref<1x1x64xf32, #tpu.memory_space<vmem>>, vector<1x1x64xf32>
    %20 = vector.broadcast %19 : vector<1x1x64xf32> to vector<1x4x64xf32>
    %21 = arith.addf %18, %20 : vector<1x4x64xf32>
    %22 = arith.negf %21 : vector<1x4x64xf32>
    %23 = math.exp %22 : vector<1x4x64xf32>
    %cst_23 = arith.constant 1.000000e+00 : f32
    %24 = vector.broadcast %cst_23 : f32 to vector<1x4x64xf32>
    %25 = arith.addf %24, %23 : vector<1x4x64xf32>
    %26 = arith.divf %24, %25 : vector<1x4x64xf32>
    %27 = arith.mulf %21, %26 : vector<1x4x64xf32>
    "tpu.trace_start"() <{level = 10 : i32, message = "blc,cd->bld"}> : () -> ()
    %cst_24 = arith.constant dense<0.000000e+00> : vector<1x4x64xf32>
    %28 = tpu.matmul %5, %9, %cst_24 {dimension_numbers = #tpu.dot_dimension_numbers<[2], [0], [0, 1], [1], [0, 0, 0, 1, 1, 1], [], []>} : vector<1x4x32xbf16>, vector<32x64xbf16>, vector<1x4x64xf32> -> vector<1x4x64xf32>
    %cst_25 = arith.constant dense<0.000000e+00> : vector<1x4x64xf32>
    %29 = tpu.matmul %3, %11, %cst_25 {dimension_numbers = #tpu.dot_dimension_numbers<[2], [0], [0, 1], [1], [0, 0, 0, 1, 1, 1], [], []>} : vector<1x4x32xbf16>, vector<32x64xbf16>, vector<1x4x64xf32> -> vector<1x4x64xf32>
    "tpu.trace_stop"() : () -> ()
    %30 = arith.addf %28, %29 : vector<1x4x64xf32>
    "tpu.trace_start"() <{level = 10 : i32, message = "blc,cd->bld"}> : () -> ()
    %cst_26 = arith.constant dense<0.000000e+00> : vector<1x4x64xf32>
    %31 = tpu.matmul %7, %13, %cst_26 {dimension_numbers = #tpu.dot_dimension_numbers<[2], [0], [0, 1], [1], [0, 0, 0, 1, 1, 1], [], []>} : vector<1x4x32xbf16>, vector<32x64xbf16>, vector<1x4x64xf32> -> vector<1x4x64xf32>
    "tpu.trace_stop"() : () -> ()
    %32 = arith.addf %30, %31 : vector<1x4x64xf32>
    %c0_27 = arith.constant 0 : index
    %c0_28 = arith.constant 0 : index
    %c0_29 = arith.constant 0 : index
    %33 = vector.load %arg4[%c0_27, %c0_28, %c0_29] : memref<1x1x64xf32, #tpu.memory_space<vmem>>, vector<1x1x64xf32>
    %34 = vector.broadcast %33 : vector<1x1x64xf32> to vector<1x4x64xf32>
    %35 = arith.addf %32, %34 : vector<1x4x64xf32>
    %36 = arith.negf %35 : vector<1x4x64xf32>
    %37 = math.exp %36 : vector<1x4x64xf32>
    %cst_30 = arith.constant 1.000000e+00 : f32
    %38 = vector.broadcast %cst_30 : f32 to vector<1x4x64xf32>
    %39 = arith.addf %38, %37 : vector<1x4x64xf32>
    %40 = arith.divf %38, %39 : vector<1x4x64xf32>
    %41 = arith.mulf %35, %40 : vector<1x4x64xf32>
    %42 = arith.maximumf %27, %41 : vector<1x4x64xf32>
    %c0_31 = arith.constant 0 : index
    %c0_32 = arith.constant 0 : index
    %c0_33 = arith.constant 0 : index
    %43 = vector.load %arg5[%c0_31, %c0_32, %c0_33] : memref<1x4x64xf32, #tpu.memory_space<vmem>>, vector<1x4x64xf32>
    tpu.vector_store %arg5[%c0_31, %c0_32, %c0_33], %42 {strides = array<i32>} : memref<1x4x64xf32, #tpu.memory_space<vmem>>, vector<1x4x64xf32>,
    return
  }
  func.func @transform_0(%arg0: i32) -> (i32, i32, i32) {
    %c0_i32 = arith.constant 0 : i32
    %c0_i32_0 = arith.constant 0 : i32
    %c0_i32_1 = arith.constant 0 : i32
    return %arg0, %c0_i32, %c0_i32_0 : i32, i32, i32
  }
  func.func @transform_1(%arg0: i32) -> (i32, i32, i32) {
    %c0_i32 = arith.constant 0 : i32
    %c0_i32_0 = arith.constant 0 : i32
    %c0_i32_1 = arith.constant 0 : i32
    return %arg0, %c0_i32, %c0_i32_0 : i32, i32, i32
  }
  func.func @transform_2(%arg0: i32) -> (i32, i32, i32) {
    %c0_i32 = arith.constant 0 : i32
    %c0_i32_0 = arith.constant 0 : i32
    %c0_i32_1 = arith.constant 0 : i32
    %c0_i32_2 = arith.constant 0 : i32
    return %c0_i32, %c0_i32_0, %c0_i32_1 : i32, i32, i32
  }
  func.func @transform_3(%arg0: i32) -> (i32, i32, i32) {
    %c0_i32 = arith.constant 0 : i32
    %c0_i32_0 = arith.constant 0 : i32
    %c0_i32_1 = arith.constant 0 : i32
    %c0_i32_2 = arith.constant 0 : i32
    return %c0_i32, %c0_i32_0, %c0_i32_1 : i32, i32, i32
  }
  func.func @transform_4(%arg0: i32) -> (i32, i32, i32) {
    %c0_i32 = arith.constant 0 : i32
    %c0_i32_0 = arith.constant 0 : i32
    %c0_i32_1 = arith.constant 0 : i32
    return %arg0, %c0_i32, %c0_i32_0 : i32, i32, i32
  }
}

module attributes {stable_mosaic.version = 11 : i64} {
  func.func @_down_block_kernel(%arg0: i32, %arg1: memref<1x3x64xf32, #tpu.memory_space<vmem>>, %arg2: memref<1x3x64xf32, #tpu.memory_space<vmem>>, %arg3: memref<3x64x128xbf16, #tpu.memory_space<vmem>>, %arg4: memref<1x1x128xf32, #tpu.memory_space<vmem>>, %arg5: memref<1x2x128xf32, #tpu.memory_space<vmem>>) attributes {dimension_semantics = [#tpu.dimension_semantics<parallel>], iteration_bounds = array<i64: 2>, scalar_prefetch = 0 : i64, scratch_operands = 0 : i64, tpu.core_type = #tpu.core_type<tc>, window_params = [{transform_indices = @transform_0, window_bounds = array<i64: 1, 3, 64>}, {transform_indices = @transform_1, window_bounds = array<i64: 1, 3, 64>}, {pipeline_mode = #tpu.pipeline_mode<synchronous>, transform_indices = @transform_2, window_bounds = array<i64: 3, 64, 128>}, {pipeline_mode = #tpu.pipeline_mode<synchronous>, transform_indices = @transform_3, window_bounds = array<i64: 1, 1, 128>}, {transform_indices = @transform_4, window_bounds = array<i64: 1, 2, 128>}]} {
    %c0 = arith.constant 0 : index
    %c0_0 = arith.constant 0 : index
    %c0_1 = arith.constant 0 : index
    %0 = vector.load %arg1[%c0, %c0_0, %c0_1] : memref<1x3x64xf32, #tpu.memory_space<vmem>>, vector<1x2x64xf32>
    %1 = arith.truncf %0 : vector<1x2x64xf32> to vector<1x2x64xbf16>
    %c0_2 = arith.constant 0 : index
    %c1 = arith.constant 1 : index
    %c0_3 = arith.constant 0 : index
    %2 = vector.load %arg1[%c0_2, %c1, %c0_3] : memref<1x3x64xf32, #tpu.memory_space<vmem>>, vector<1x2x64xf32>
    %3 = arith.truncf %2 : vector<1x2x64xf32> to vector<1x2x64xbf16>
    %c0_4 = arith.constant 0 : index
    %c0_5 = arith.constant 0 : index
    %c0_6 = arith.constant 0 : index
    %4 = vector.load %arg2[%c0_4, %c0_5, %c0_6] : memref<1x3x64xf32, #tpu.memory_space<vmem>>, vector<1x2x64xf32>
    %5 = arith.truncf %4 : vector<1x2x64xf32> to vector<1x2x64xbf16>
    %c0_7 = arith.constant 0 : index
    %c1_8 = arith.constant 1 : index
    %c0_9 = arith.constant 0 : index
    %6 = vector.load %arg2[%c0_7, %c1_8, %c0_9] : memref<1x3x64xf32, #tpu.memory_space<vmem>>, vector<1x2x64xf32>
    %7 = arith.truncf %6 : vector<1x2x64xf32> to vector<1x2x64xbf16>
    %c0_10 = arith.constant 0 : index
    %c0_11 = arith.constant 0 : index
    %c0_12 = arith.constant 0 : index
    %8 = vector.load %arg3[%c0_10, %c0_11, %c0_12] : memref<3x64x128xbf16, #tpu.memory_space<vmem>>, vector<1x64x128xbf16>
    %9 = vector.shape_cast %8 : vector<1x64x128xbf16> to vector<64x128xbf16>
    %c1_13 = arith.constant 1 : index
    %c0_14 = arith.constant 0 : index
    %c0_15 = arith.constant 0 : index
    %10 = vector.load %arg3[%c1_13, %c0_14, %c0_15] : memref<3x64x128xbf16, #tpu.memory_space<vmem>>, vector<1x64x128xbf16>
    %11 = vector.shape_cast %10 : vector<1x64x128xbf16> to vector<64x128xbf16>
    %c2 = arith.constant 2 : index
    %c0_16 = arith.constant 0 : index
    %c0_17 = arith.constant 0 : index
    %12 = vector.load %arg3[%c2, %c0_16, %c0_17] : memref<3x64x128xbf16, #tpu.memory_space<vmem>>, vector<1x64x128xbf16>
    %13 = vector.shape_cast %12 : vector<1x64x128xbf16> to vector<64x128xbf16>
    "tpu.trace_start"() <{level = 10 : i32, message = "blc,cd->bld"}> : () -> ()
    %cst = arith.constant dense<0.000000e+00> : vector<1x2x128xf32>
    %14 = tpu.matmul %1, %9, %cst {dimension_numbers = #tpu.dot_dimension_numbers<[2], [0], [0, 1], [1], [0, 0, 0, 1, 1, 1], [], []>} : vector<1x2x64xbf16>, vector<64x128xbf16>, vector<1x2x128xf32> -> vector<1x2x128xf32>
    %cst_18 = arith.constant dense<0.000000e+00> : vector<1x2x128xf32>
    %15 = tpu.matmul %5, %11, %cst_18 {dimension_numbers = #tpu.dot_dimension_numbers<[2], [0], [0, 1], [1], [0, 0, 0, 1, 1, 1], [], []>} : vector<1x2x64xbf16>, vector<64x128xbf16>, vector<1x2x128xf32> -> vector<1x2x128xf32>
    "tpu.trace_stop"() : () -> ()
    %16 = arith.addf %14, %15 : vector<1x2x128xf32>
    "tpu.trace_start"() <{level = 10 : i32, message = "blc,cd->bld"}> : () -> ()
    %cst_19 = arith.constant dense<0.000000e+00> : vector<1x2x128xf32>
    %17 = tpu.matmul %3, %13, %cst_19 {dimension_numbers = #tpu.dot_dimension_numbers<[2], [0], [0, 1], [1], [0, 0, 0, 1, 1, 1], [], []>} : vector<1x2x64xbf16>, vector<64x128xbf16>, vector<1x2x128xf32> -> vector<1x2x128xf32>
    "tpu.trace_stop"() : () -> ()
    %18 = arith.addf %16, %17 : vector<1x2x128xf32>
    %c0_20 = arith.constant 0 : index
    %c0_21 = arith.constant 0 : index
    %c0_22 = arith.constant 0 : index
    %19 = vector.load %arg4[%c0_20, %c0_21, %c0_22] : memref<1x1x128xf32, #tpu.memory_space<vmem>>, vector<1x1x128xf32>
    %20 = vector.broadcast %19 : vector<1x1x128xf32> to vector<1x2x128xf32>
    %21 = arith.addf %18, %20 : vector<1x2x128xf32>
    %22 = arith.negf %21 : vector<1x2x128xf32>
    %23 = math.exp %22 : vector<1x2x128xf32>
    %cst_23 = arith.constant 1.000000e+00 : f32
    %24 = vector.broadcast %cst_23 : f32 to vector<1x2x128xf32>
    %25 = arith.addf %24, %23 : vector<1x2x128xf32>
    %26 = arith.divf %24, %25 : vector<1x2x128xf32>
    %27 = arith.mulf %21, %26 : vector<1x2x128xf32>
    "tpu.trace_start"() <{level = 10 : i32, message = "blc,cd->bld"}> : () -> ()
    %cst_24 = arith.constant dense<0.000000e+00> : vector<1x2x128xf32>
    %28 = tpu.matmul %5, %9, %cst_24 {dimension_numbers = #tpu.dot_dimension_numbers<[2], [0], [0, 1], [1], [0, 0, 0, 1, 1, 1], [], []>} : vector<1x2x64xbf16>, vector<64x128xbf16>, vector<1x2x128xf32> -> vector<1x2x128xf32>
    %cst_25 = arith.constant dense<0.000000e+00> : vector<1x2x128xf32>
    %29 = tpu.matmul %3, %11, %cst_25 {dimension_numbers = #tpu.dot_dimension_numbers<[2], [0], [0, 1], [1], [0, 0, 0, 1, 1, 1], [], []>} : vector<1x2x64xbf16>, vector<64x128xbf16>, vector<1x2x128xf32> -> vector<1x2x128xf32>
    "tpu.trace_stop"() : () -> ()
    %30 = arith.addf %28, %29 : vector<1x2x128xf32>
    "tpu.trace_start"() <{level = 10 : i32, message = "blc,cd->bld"}> : () -> ()
    %cst_26 = arith.constant dense<0.000000e+00> : vector<1x2x128xf32>
    %31 = tpu.matmul %7, %13, %cst_26 {dimension_numbers = #tpu.dot_dimension_numbers<[2], [0], [0, 1], [1], [0, 0, 0, 1, 1, 1], [], []>} : vector<1x2x64xbf16>, vector<64x128xbf16>, vector<1x2x128xf32> -> vector<1x2x128xf32>
    "tpu.trace_stop"() : () -> ()
    %32 = arith.addf %30, %31 : vector<1x2x128xf32>
    %c0_27 = arith.constant 0 : index
    %c0_28 = arith.constant 0 : index
    %c0_29 = arith.constant 0 : index
    %33 = vector.load %arg4[%c0_27, %c0_28, %c0_29] : memref<1x1x128xf32, #tpu.memory_space<vmem>>, vector<1x1x128xf32>
    %34 = vector.broadcast %33 : vector<1x1x128xf32> to vector<1x2x128xf32>
    %35 = arith.addf %32, %34 : vector<1x2x128xf32>
    %36 = arith.negf %35 : vector<1x2x128xf32>
    %37 = math.exp %36 : vector<1x2x128xf32>
    %cst_30 = arith.constant 1.000000e+00 : f32
    %38 = vector.broadcast %cst_30 : f32 to vector<1x2x128xf32>
    %39 = arith.addf %38, %37 : vector<1x2x128xf32>
    %40 = arith.divf %38, %39 : vector<1x2x128xf32>
    %41 = arith.mulf %35, %40 : vector<1x2x128xf32>
    %42 = arith.maximumf %27, %41 : vector<1x2x128xf32>
    %c0_31 = arith.constant 0 : index
    %c0_32 = arith.constant 0 : index
    %c0_33 = arith.constant 0 : index
    %43 = vector.load %arg5[%c0_31, %c0_32, %c0_33] : memref<1x2x128xf32, #tpu.memory_space<vmem>>, vector<1x2x128xf32>
    tpu.vector_store %arg5[%c0_31, %c0_32, %c0_33], %42 {strides = array<i32>} : memref<1x2x128xf32, #tpu.memory_space<vmem>>, vector<1x2x128xf32>,
    return
  }
  func.func @transform_0(%arg0: i32) -> (i32, i32, i32) {
    %c0_i32 = arith.constant 0 : i32
    %c0_i32_0 = arith.constant 0 : i32
    %c0_i32_1 = arith.constant 0 : i32
    return %arg0, %c0_i32, %c0_i32_0 : i32, i32, i32
  }
  func.func @transform_1(%arg0: i32) -> (i32, i32, i32) {
    %c0_i32 = arith.constant 0 : i32
    %c0_i32_0 = arith.constant 0 : i32
    %c0_i32_1 = arith.constant 0 : i32
    return %arg0, %c0_i32, %c0_i32_0 : i32, i32, i32
  }
  func.func @transform_2(%arg0: i32) -> (i32, i32, i32) {
    %c0_i32 = arith.constant 0 : i32
    %c0_i32_0 = arith.constant 0 : i32
    %c0_i32_1 = arith.constant 0 : i32
    %c0_i32_2 = arith.constant 0 : i32
    return %c0_i32, %c0_i32_0, %c0_i32_1 : i32, i32, i32
  }
  func.func @transform_3(%arg0: i32) -> (i32, i32, i32) {
    %c0_i32 = arith.constant 0 : i32
    %c0_i32_0 = arith.constant 0 : i32
    %c0_i32_1 = arith.constant 0 : i32
    %c0_i32_2 = arith.constant 0 : i32
    return %c0_i32, %c0_i32_0, %c0_i32_1 : i32, i32, i32
  }
  func.func @transform_4(%arg0: i32) -> (i32, i32, i32) {
    %c0_i32 = arith.constant 0 : i32
    %c0_i32_0 = arith.constant 0 : i32
    %c0_i32_1 = arith.constant 0 : i32
    return %arg0, %c0_i32, %c0_i32_0 : i32, i32, i32
  }
}

module attributes {stable_mosaic.version = 11 : i64} {
  func.func @_mid_block_kernel(%arg0: i32, %arg1: memref<1x6x128xf32, #tpu.memory_space<vmem>>, %arg2: memref<3x128x128xbf16, #tpu.memory_space<vmem>>, %arg3: memref<1x1x128xf32, #tpu.memory_space<vmem>>, %arg4: memref<3x128x128xbf16, #tpu.memory_space<vmem>>, %arg5: memref<1x1x128xf32, #tpu.memory_space<vmem>>, %arg6: memref<1x2x128xf32, #tpu.memory_space<vmem>>, %arg7: memref<1x4x128xf32, #tpu.memory_space<vmem>>) attributes {dimension_semantics = [#tpu.dimension_semantics<parallel>], iteration_bounds = array<i64: 2>, scalar_prefetch = 0 : i64, scratch_operands = 1 : i64, tpu.core_type = #tpu.core_type<tc>, window_params = [{transform_indices = @transform_0, window_bounds = array<i64: 1, 6, 128>}, {pipeline_mode = #tpu.pipeline_mode<synchronous>, transform_indices = @transform_1, window_bounds = array<i64: 3, 128, 128>}, {pipeline_mode = #tpu.pipeline_mode<synchronous>, transform_indices = @transform_2, window_bounds = array<i64: 1, 1, 128>}, {pipeline_mode = #tpu.pipeline_mode<synchronous>, transform_indices = @transform_3, window_bounds = array<i64: 3, 128, 128>}, {pipeline_mode = #tpu.pipeline_mode<synchronous>, transform_indices = @transform_4, window_bounds = array<i64: 1, 1, 128>}, {transform_indices = @transform_5, window_bounds = array<i64: 1, 2, 128>}]} {
    %c0 = arith.constant 0 : index
    %c0_0 = arith.constant 0 : index
    %c0_1 = arith.constant 0 : index
    %0 = vector.load %arg3[%c0, %c0_0, %c0_1] : memref<1x1x128xf32, #tpu.memory_space<vmem>>, vector<1x1x128xf32>
    %c0_2 = arith.constant 0 : index
    %c0_3 = arith.constant 0 : index
    %c0_4 = arith.constant 0 : index
    %1 = vector.load %arg1[%c0_2, %c0_3, %c0_4] : memref<1x6x128xf32, #tpu.memory_space<vmem>>, vector<1x2x128xf32>
    %2 = arith.truncf %1 : vector<1x2x128xf32> to vector<1x2x128xbf16>
    %c0_5 = arith.constant 0 : index
    %c0_6 = arith.constant 0 : index
    %c0_7 = arith.constant 0 : index
    %3 = vector.load %arg2[%c0_5, %c0_6, %c0_7] : memref<3x128x128xbf16, #tpu.memory_space<vmem>>, vector<1x128x128xbf16>
    %4 = vector.shape_cast %3 : vector<1x128x128xbf16> to vector<128x128xbf16>
    "tpu.trace_start"() <{level = 10 : i32, message = "blc,cd->bld"}> : () -> ()
    %cst = arith.constant dense<0.000000e+00> : vector<1x2x128xf32>
    %5 = tpu.matmul %2, %4, %cst {dimension_numbers = #tpu.dot_dimension_numbers<[2], [0], [0, 1], [1], [0, 0, 0, 1, 1, 1], [], []>} : vector<1x2x128xbf16>, vector<128x128xbf16>, vector<1x2x128xf32> -> vector<1x2x128xf32>
    "tpu.trace_stop"() : () -> ()
    %6 = vector.broadcast %0 : vector<1x1x128xf32> to vector<1x2x128xf32>
    %7 = arith.addf %6, %5 : vector<1x2x128xf32>
    %c0_8 = arith.constant 0 : index
    %c2 = arith.constant 2 : index
    %c0_9 = arith.constant 0 : index
    %8 = vector.load %arg1[%c0_8, %c2, %c0_9] : memref<1x6x128xf32, #tpu.memory_space<vmem>>, vector<1x2x128xf32>
    %9 = arith.truncf %8 : vector<1x2x128xf32> to vector<1x2x128xbf16>
    %c1 = arith.constant 1 : index
    %c0_10 = arith.constant 0 : index
    %c0_11 = arith.constant 0 : index
    %10 = vector.load %arg2[%c1, %c0_10, %c0_11] : memref<3x128x128xbf16, #tpu.memory_space<vmem>>, vector<1x128x128xbf16>
    %11 = vector.shape_cast %10 : vector<1x128x128xbf16> to vector<128x128xbf16>
    "tpu.trace_start"() <{level = 10 : i32, message = "blc,cd->bld"}> : () -> ()
    %cst_12 = arith.constant dense<0.000000e+00> : vector<1x2x128xf32>
    %12 = tpu.matmul %9, %11, %cst_12 {dimension_numbers = #tpu.dot_dimension_numbers<[2], [0], [0, 1], [1], [0, 0, 0, 1, 1, 1], [], []>} : vector<1x2x128xbf16>, vector<128x128xbf16>, vector<1x2x128xf32> -> vector<1x2x128xf32>
    "tpu.trace_stop"() : () -> ()
    %13 = arith.addf %7, %12 : vector<1x2x128xf32>
    %c0_13 = arith.constant 0 : index
    %c4 = arith.constant 4 : index
    %c0_14 = arith.constant 0 : index
    %14 = vector.load %arg1[%c0_13, %c4, %c0_14] : memref<1x6x128xf32, #tpu.memory_space<vmem>>, vector<1x2x128xf32>
    %15 = arith.truncf %14 : vector<1x2x128xf32> to vector<1x2x128xbf16>
    %c2_15 = arith.constant 2 : index
    %c0_16 = arith.constant 0 : index
    %c0_17 = arith.constant 0 : index
    %16 = vector.load %arg2[%c2_15, %c0_16, %c0_17] : memref<3x128x128xbf16, #tpu.memory_space<vmem>>, vector<1x128x128xbf16>
    %17 = vector.shape_cast %16 : vector<1x128x128xbf16> to vector<128x128xbf16>
    "tpu.trace_start"() <{level = 10 : i32, message = "blc,cd->bld"}> : () -> ()
    %cst_18 = arith.constant dense<0.000000e+00> : vector<1x2x128xf32>
    %18 = tpu.matmul %15, %17, %cst_18 {dimension_numbers = #tpu.dot_dimension_numbers<[2], [0], [0, 1], [1], [0, 0, 0, 1, 1, 1], [], []>} : vector<1x2x128xbf16>, vector<128x128xbf16>, vector<1x2x128xf32> -> vector<1x2x128xf32>
    "tpu.trace_stop"() : () -> ()
    %19 = arith.addf %13, %18 : vector<1x2x128xf32>
    %20 = arith.negf %19 : vector<1x2x128xf32>
    %21 = math.exp %20 : vector<1x2x128xf32>
    %cst_19 = arith.constant 1.000000e+00 : f32
    %22 = vector.broadcast %cst_19 : f32 to vector<1x2x128xf32>
    %23 = arith.addf %22, %21 : vector<1x2x128xf32>
    %24 = arith.divf %22, %23 : vector<1x2x128xf32>
    %25 = arith.mulf %19, %24 : vector<1x2x128xf32>
    %cst_20 = arith.constant 0.000000e+00 : f32
    %26 = vector.broadcast %cst_20 : f32 to vector<1x4x128xf32>
    %c0_21 = arith.constant 0 : index
    %c0_22 = arith.constant 0 : index
    %c0_23 = arith.constant 0 : index
    %27 = vector.load %arg7[%c0_21, %c0_22, %c0_23] : memref<1x4x128xf32, #tpu.memory_space<vmem>>, vector<1x4x128xf32>
    tpu.vector_store %arg7[%c0_21, %c0_22, %c0_23], %26 {strides = array<i32>} : memref<1x4x128xf32, #tpu.memory_space<vmem>>, vector<1x4x128xf32>,
    %c0_24 = arith.constant 0 : index
    %c1_25 = arith.constant 1 : index
    %c0_26 = arith.constant 0 : index
    %28 = vector.load %arg7[%c0_24, %c1_25, %c0_26] : memref<1x4x128xf32, #tpu.memory_space<vmem>>, vector<1x2x128xf32>
    tpu.vector_store %arg7[%c0_24, %c1_25, %c0_26], %25 {strides = array<i32>} : memref<1x4x128xf32, #tpu.memory_space<vmem>>, vector<1x2x128xf32>,
    %c0_27 = arith.constant 0 : index
    %c0_28 = arith.constant 0 : index
    %c0_29 = arith.constant 0 : index
    %29 = vector.load %arg5[%c0_27, %c0_28, %c0_29] : memref<1x1x128xf32, #tpu.memory_space<vmem>>, vector<1x1x128xf32>
    %c0_30 = arith.constant 0 : index
    %c0_31 = arith.constant 0 : index
    %c0_32 = arith.constant 0 : index
    %30 = vector.load %arg7[%c0_30, %c0_31, %c0_32] : memref<1x4x128xf32, #tpu.memory_space<vmem>>, vector<1x2x128xf32>
    %31 = arith.truncf %30 : vector<1x2x128xf32> to vector<1x2x128xbf16>
    %c0_33 = arith.constant 0 : index
    %c0_34 = arith.constant 0 : index
    %c0_35 = arith.constant 0 : index
    %32 = vector.load %arg4[%c0_33, %c0_34, %c0_35] : memref<3x128x128xbf16, #tpu.memory_space<vmem>>, vector<1x128x128xbf16>
    %33 = vector.shape_cast %32 : vector<1x128x128xbf16> to vector<128x128xbf16>
    "tpu.trace_start"() <{level = 10 : i32, message = "blc,cd->bld"}> : () -> ()
    %cst_36 = arith.constant dense<0.000000e+00> : vector<1x2x128xf32>
    %34 = tpu.matmul %31, %33, %cst_36 {dimension_numbers = #tpu.dot_dimension_numbers<[2], [0], [0, 1], [1], [0, 0, 0, 1, 1, 1], [], []>} : vector<1x2x128xbf16>, vector<128x128xbf16>, vector<1x2x128xf32> -> vector<1x2x128xf32>
    "tpu.trace_stop"() : () -> ()
    %35 = vector.broadcast %29 : vector<1x1x128xf32> to vector<1x2x128xf32>
    %36 = arith.addf %35, %34 : vector<1x2x128xf32>
    %c0_37 = arith.constant 0 : index
    %c1_38 = arith.constant 1 : index
    %c0_39 = arith.constant 0 : index
    %37 = vector.load %arg7[%c0_37, %c1_38, %c0_39] : memref<1x4x128xf32, #tpu.memory_space<vmem>>, vector<1x2x128xf32>
    %38 = arith.truncf %37 : vector<1x2x128xf32> to vector<1x2x128xbf16>
    %c1_40 = arith.constant 1 : index
    %c0_41 = arith.constant 0 : index
    %c0_42 = arith.constant 0 : index
    %39 = vector.load %arg4[%c1_40, %c0_41, %c0_42] : memref<3x128x128xbf16, #tpu.memory_space<vmem>>, vector<1x128x128xbf16>
    %40 = vector.shape_cast %39 : vector<1x128x128xbf16> to vector<128x128xbf16>
    "tpu.trace_start"() <{level = 10 : i32, message = "blc,cd->bld"}> : () -> ()
    %cst_43 = arith.constant dense<0.000000e+00> : vector<1x2x128xf32>
    %41 = tpu.matmul %38, %40, %cst_43 {dimension_numbers = #tpu.dot_dimension_numbers<[2], [0], [0, 1], [1], [0, 0, 0, 1, 1, 1], [], []>} : vector<1x2x128xbf16>, vector<128x128xbf16>, vector<1x2x128xf32> -> vector<1x2x128xf32>
    "tpu.trace_stop"() : () -> ()
    %42 = arith.addf %36, %41 : vector<1x2x128xf32>
    %c0_44 = arith.constant 0 : index
    %c2_45 = arith.constant 2 : index
    %c0_46 = arith.constant 0 : index
    %43 = vector.load %arg7[%c0_44, %c2_45, %c0_46] : memref<1x4x128xf32, #tpu.memory_space<vmem>>, vector<1x2x128xf32>
    %44 = arith.truncf %43 : vector<1x2x128xf32> to vector<1x2x128xbf16>
    %c2_47 = arith.constant 2 : index
    %c0_48 = arith.constant 0 : index
    %c0_49 = arith.constant 0 : index
    %45 = vector.load %arg4[%c2_47, %c0_48, %c0_49] : memref<3x128x128xbf16, #tpu.memory_space<vmem>>, vector<1x128x128xbf16>
    %46 = vector.shape_cast %45 : vector<1x128x128xbf16> to vector<128x128xbf16>
    "tpu.trace_start"() <{level = 10 : i32, message = "blc,cd->bld"}> : () -> ()
    %cst_50 = arith.constant dense<0.000000e+00> : vector<1x2x128xf32>
    %47 = tpu.matmul %44, %46, %cst_50 {dimension_numbers = #tpu.dot_dimension_numbers<[2], [0], [0, 1], [1], [0, 0, 0, 1, 1, 1], [], []>} : vector<1x2x128xbf16>, vector<128x128xbf16>, vector<1x2x128xf32> -> vector<1x2x128xf32>
    "tpu.trace_stop"() : () -> ()
    %48 = arith.addf %42, %47 : vector<1x2x128xf32>
    %c0_51 = arith.constant 0 : index
    %c0_52 = arith.constant 0 : index
    %c0_53 = arith.constant 0 : index
    %49 = vector.load %arg6[%c0_51, %c0_52, %c0_53] : memref<1x2x128xf32, #tpu.memory_space<vmem>>, vector<1x2x128xf32>
    tpu.vector_store %arg6[%c0_51, %c0_52, %c0_53], %48 {strides = array<i32>} : memref<1x2x128xf32, #tpu.memory_space<vmem>>, vector<1x2x128xf32>,
    return
  }
  func.func @transform_0(%arg0: i32) -> (i32, i32, i32) {
    %c0_i32 = arith.constant 0 : i32
    %c0_i32_0 = arith.constant 0 : i32
    %c0_i32_1 = arith.constant 0 : i32
    return %arg0, %c0_i32, %c0_i32_0 : i32, i32, i32
  }
  func.func @transform_1(%arg0: i32) -> (i32, i32, i32) {
    %c0_i32 = arith.constant 0 : i32
    %c0_i32_0 = arith.constant 0 : i32
    %c0_i32_1 = arith.constant 0 : i32
    %c0_i32_2 = arith.constant 0 : i32
    return %c0_i32, %c0_i32_0, %c0_i32_1 : i32, i32, i32
  }
  func.func @transform_2(%arg0: i32) -> (i32, i32, i32) {
    %c0_i32 = arith.constant 0 : i32
    %c0_i32_0 = arith.constant 0 : i32
    %c0_i32_1 = arith.constant 0 : i32
    %c0_i32_2 = arith.constant 0 : i32
    return %c0_i32, %c0_i32_0, %c0_i32_1 : i32, i32, i32
  }
  func.func @transform_3(%arg0: i32) -> (i32, i32, i32) {
    %c0_i32 = arith.constant 0 : i32
    %c0_i32_0 = arith.constant 0 : i32
    %c0_i32_1 = arith.constant 0 : i32
    %c0_i32_2 = arith.constant 0 : i32
    return %c0_i32, %c0_i32_0, %c0_i32_1 : i32, i32, i32
  }
  func.func @transform_4(%arg0: i32) -> (i32, i32, i32) {
    %c0_i32 = arith.constant 0 : i32
    %c0_i32_0 = arith.constant 0 : i32
    %c0_i32_1 = arith.constant 0 : i32
    %c0_i32_2 = arith.constant 0 : i32
    return %c0_i32, %c0_i32_0, %c0_i32_1 : i32, i32, i32
  }
  func.func @transform_5(%arg0: i32) -> (i32, i32, i32) {
    %c0_i32 = arith.constant 0 : i32
    %c0_i32_0 = arith.constant 0 : i32
    %c0_i32_1 = arith.constant 0 : i32
    return %arg0, %c0_i32, %c0_i32_0 : i32, i32, i32
  }
}

module attributes {stable_mosaic.version = 11 : i64} {
  func.func @_up_block_kernel(%arg0: i32, %arg1: memref<1x3x128xf32, #tpu.memory_space<vmem>>, %arg2: memref<1x3x128xf32, #tpu.memory_space<vmem>>, %arg3: memref<3x128x64xbf16, #tpu.memory_space<vmem>>, %arg4: memref<3x128x64xbf16, #tpu.memory_space<vmem>>, %arg5: memref<1x1x64xf32, #tpu.memory_space<vmem>>, %arg6: memref<1x2x128xf32, #tpu.memory_space<vmem>>) attributes {dimension_semantics = [#tpu.dimension_semantics<parallel>], iteration_bounds = array<i64: 2>, scalar_prefetch = 0 : i64, scratch_operands = 0 : i64, tpu.core_type = #tpu.core_type<tc>, window_params = [{transform_indices = @transform_0, window_bounds = array<i64: 1, 3, 128>}, {transform_indices = @transform_1, window_bounds = array<i64: 1, 3, 128>}, {pipeline_mode = #tpu.pipeline_mode<synchronous>, transform_indices = @transform_2, window_bounds = array<i64: 3, 128, 64>}, {pipeline_mode = #tpu.pipeline_mode<synchronous>, transform_indices = @transform_3, window_bounds = array<i64: 3, 128, 64>}, {pipeline_mode = #tpu.pipeline_mode<synchronous>, transform_indices = @transform_4, window_bounds = array<i64: 1, 1, 64>}, {transform_indices = @transform_5, window_bounds = array<i64: 1, 2, 128>}]} {
    %c0 = arith.constant 0 : index
    %c0_0 = arith.constant 0 : index
    %c0_1 = arith.constant 0 : index
    %0 = vector.load %arg1[%c0, %c0_0, %c0_1] : memref<1x3x128xf32, #tpu.memory_space<vmem>>, vector<1x2x128xf32>
    %1 = arith.truncf %0 : vector<1x2x128xf32> to vector<1x2x128xbf16>
    %c0_2 = arith.constant 0 : index
    %c1 = arith.constant 1 : index
    %c0_3 = arith.constant 0 : index
    %2 = vector.load %arg1[%c0_2, %c1, %c0_3] : memref<1x3x128xf32, #tpu.memory_space<vmem>>, vector<1x2x128xf32>
    %3 = arith.truncf %2 : vector<1x2x128xf32> to vector<1x2x128xbf16>
    %c0_4 = arith.constant 0 : index
    %c0_5 = arith.constant 0 : index
    %c0_6 = arith.constant 0 : index
    %4 = vector.load %arg2[%c0_4, %c0_5, %c0_6] : memref<1x3x128xf32, #tpu.memory_space<vmem>>, vector<1x2x128xf32>
    %5 = arith.truncf %4 : vector<1x2x128xf32> to vector<1x2x128xbf16>
    %c0_7 = arith.constant 0 : index
    %c1_8 = arith.constant 1 : index
    %c0_9 = arith.constant 0 : index
    %6 = vector.load %arg2[%c0_7, %c1_8, %c0_9] : memref<1x3x128xf32, #tpu.memory_space<vmem>>, vector<1x2x128xf32>
    %7 = arith.truncf %6 : vector<1x2x128xf32> to vector<1x2x128xbf16>
    %c1_10 = arith.constant 1 : index
    %c0_11 = arith.constant 0 : index
    %c0_12 = arith.constant 0 : index
    %8 = vector.load %arg3[%c1_10, %c0_11, %c0_12] : memref<3x128x64xbf16, #tpu.memory_space<vmem>>, vector<1x128x64xbf16>
    %9 = vector.shape_cast %8 : vector<1x128x64xbf16> to vector<128x64xbf16>
    "tpu.trace_start"() <{level = 10 : i32, message = "blc,cd->bld"}> : () -> ()
    %cst = arith.constant dense<0.000000e+00> : vector<1x2x64xf32>
    %10 = tpu.matmul %1, %9, %cst {dimension_numbers = #tpu.dot_dimension_numbers<[2], [0], [0, 1], [1], [0, 0, 0, 1, 1, 1], [], []>} : vector<1x2x128xbf16>, vector<128x64xbf16>, vector<1x2x64xf32> -> vector<1x2x64xf32>
    "tpu.trace_stop"() : () -> ()
    %c1_13 = arith.constant 1 : index
    %c0_14 = arith.constant 0 : index
    %c0_15 = arith.constant 0 : index
    %11 = vector.load %arg4[%c1_13, %c0_14, %c0_15] : memref<3x128x64xbf16, #tpu.memory_space<vmem>>, vector<1x128x64xbf16>
    %12 = vector.shape_cast %11 : vector<1x128x64xbf16> to vector<128x64xbf16>
    "tpu.trace_start"() <{level = 10 : i32, message = "blc,cd->bld"}> : () -> ()
    %cst_16 = arith.constant dense<0.000000e+00> : vector<1x2x64xf32>
    %13 = tpu.matmul %5, %12, %cst_16 {dimension_numbers = #tpu.dot_dimension_numbers<[2], [0], [0, 1], [1], [0, 0, 0, 1, 1, 1], [], []>} : vector<1x2x128xbf16>, vector<128x64xbf16>, vector<1x2x64xf32> -> vector<1x2x64xf32>
    "tpu.trace_stop"() : () -> ()
    %14 = arith.addf %10, %13 : vector<1x2x64xf32>
    %c0_17 = arith.constant 0 : index
    %c0_18 = arith.constant 0 : index
    %c0_19 = arith.constant 0 : index
    %15 = vector.load %arg5[%c0_17, %c0_18, %c0_19] : memref<1x1x64xf32, #tpu.memory_space<vmem>>, vector<1x1x64xf32>
    %16 = vector.broadcast %15 : vector<1x1x64xf32> to vector<1x2x64xf32>
    %17 = arith.addf %14, %16 : vector<1x2x64xf32>
    %c2 = arith.constant 2 : index
    %c0_20 = arith.constant 0 : index
    %c0_21 = arith.constant 0 : index
    %18 = vector.load %arg3[%c2, %c0_20, %c0_21] : memref<3x128x64xbf16, #tpu.memory_space<vmem>>, vector<1x128x64xbf16>
    %19 = vector.shape_cast %18 : vector<1x128x64xbf16> to vector<128x64xbf16>
    "tpu.trace_start"() <{level = 10 : i32, message = "blc,cd->bld"}> : () -> ()
    %cst_22 = arith.constant dense<0.000000e+00> : vector<1x2x64xf32>
    %20 = tpu.matmul %1, %19, %cst_22 {dimension_numbers = #tpu.dot_dimension_numbers<[2], [0], [0, 1], [1], [0, 0, 0, 1, 1, 1], [], []>} : vector<1x2x128xbf16>, vector<128x64xbf16>, vector<1x2x64xf32> -> vector<1x2x64xf32>
    "tpu.trace_stop"() : () -> ()
    %c0_23 = arith.constant 0 : index
    %c0_24 = arith.constant 0 : index
    %c0_25 = arith.constant 0 : index
    %21 = vector.load %arg3[%c0_23, %c0_24, %c0_25] : memref<3x128x64xbf16, #tpu.memory_space<vmem>>, vector<1x128x64xbf16>
    %22 = vector.shape_cast %21 : vector<1x128x64xbf16> to vector<128x64xbf16>
    "tpu.trace_start"() <{level = 10 : i32, message = "blc,cd->bld"}> : () -> ()
    %cst_26 = arith.constant dense<0.000000e+00> : vector<1x2x64xf32>
    %23 = tpu.matmul %3, %22, %cst_26 {dimension_numbers = #tpu.dot_dimension_numbers<[2], [0], [0, 1], [1], [0, 0, 0, 1, 1, 1], [], []>} : vector<1x2x128xbf16>, vector<128x64xbf16>, vector<1x2x64xf32> -> vector<1x2x64xf32>
    "tpu.trace_stop"() : () -> ()
    %24 = arith.addf %20, %23 : vector<1x2x64xf32>
    %c2_27 = arith.constant 2 : index
    %c0_28 = arith.constant 0 : index
    %c0_29 = arith.constant 0 : index
    %25 = vector.load %arg4[%c2_27, %c0_28, %c0_29] : memref<3x128x64xbf16, #tpu.memory_space<vmem>>, vector<1x128x64xbf16>
    %26 = vector.shape_cast %25 : vector<1x128x64xbf16> to vector<128x64xbf16>
    "tpu.trace_start"() <{level = 10 : i32, message = "blc,cd->bld"}> : () -> ()
    %cst_30 = arith.constant dense<0.000000e+00> : vector<1x2x64xf32>
    %27 = tpu.matmul %5, %26, %cst_30 {dimension_numbers = #tpu.dot_dimension_numbers<[2], [0], [0, 1], [1], [0, 0, 0, 1, 1, 1], [], []>} : vector<1x2x128xbf16>, vector<128x64xbf16>, vector<1x2x64xf32> -> vector<1x2x64xf32>
    "tpu.trace_stop"() : () -> ()
    %28 = arith.addf %24, %27 : vector<1x2x64xf32>
    %c0_31 = arith.constant 0 : index
    %c0_32 = arith.constant 0 : index
    %c0_33 = arith.constant 0 : index
    %29 = vector.load %arg4[%c0_31, %c0_32, %c0_33] : memref<3x128x64xbf16, #tpu.memory_space<vmem>>, vector<1x128x64xbf16>
    %30 = vector.shape_cast %29 : vector<1x128x64xbf16> to vector<128x64xbf16>
    "tpu.trace_start"() <{level = 10 : i32, message = "blc,cd->bld"}> : () -> ()
    %cst_34 = arith.constant dense<0.000000e+00> : vector<1x2x64xf32>
    %31 = tpu.matmul %7, %30, %cst_34 {dimension_numbers = #tpu.dot_dimension_numbers<[2], [0], [0, 1], [1], [0, 0, 0, 1, 1, 1], [], []>} : vector<1x2x128xbf16>, vector<128x64xbf16>, vector<1x2x64xf32> -> vector<1x2x64xf32>
    "tpu.trace_stop"() : () -> ()
    %32 = arith.addf %28, %31 : vector<1x2x64xf32>
    %c0_35 = arith.constant 0 : index
    %c0_36 = arith.constant 0 : index
    %c0_37 = arith.constant 0 : index
    %33 = vector.load %arg5[%c0_35, %c0_36, %c0_37] : memref<1x1x64xf32, #tpu.memory_space<vmem>>, vector<1x1x64xf32>
    %34 = vector.broadcast %33 : vector<1x1x64xf32> to vector<1x2x64xf32>
    %35 = arith.addf %32, %34 : vector<1x2x64xf32>
    %36 = arith.negf %17 : vector<1x2x64xf32>
    %37 = math.exp %36 : vector<1x2x64xf32>
    %cst_38 = arith.constant 1.000000e+00 : f32
    %38 = vector.broadcast %cst_38 : f32 to vector<1x2x64xf32>
    %39 = arith.addf %38, %37 : vector<1x2x64xf32>
    %40 = arith.divf %38, %39 : vector<1x2x64xf32>
    %41 = arith.mulf %17, %40 : vector<1x2x64xf32>
    %c0_39 = arith.constant 0 : index
    %c0_40 = arith.constant 0 : index
    %c0_41 = arith.constant 0 : index
    %42 = vector.load %arg6[%c0_39, %c0_40, %c0_41] : memref<1x2x128xf32, #tpu.memory_space<vmem>>, vector<1x2x64xf32>
    tpu.vector_store %arg6[%c0_39, %c0_40, %c0_41], %41 {strides = array<i32>} : memref<1x2x128xf32, #tpu.memory_space<vmem>>, vector<1x2x64xf32>,
    %43 = arith.negf %35 : vector<1x2x64xf32>
    %44 = math.exp %43 : vector<1x2x64xf32>
    %cst_42 = arith.constant 1.000000e+00 : f32
    %45 = vector.broadcast %cst_42 : f32 to vector<1x2x64xf32>
    %46 = arith.addf %45, %44 : vector<1x2x64xf32>
    %47 = arith.divf %45, %46 : vector<1x2x64xf32>
    %48 = arith.mulf %35, %47 : vector<1x2x64xf32>
    %c0_43 = arith.constant 0 : index
    %c0_44 = arith.constant 0 : index
    %c64 = arith.constant 64 : index
    %49 = vector.load %arg6[%c0_43, %c0_44, %c64] : memref<1x2x128xf32, #tpu.memory_space<vmem>>, vector<1x2x64xf32>
    tpu.vector_store %arg6[%c0_43, %c0_44, %c64], %48 {strides = array<i32>} : memref<1x2x128xf32, #tpu.memory_space<vmem>>, vector<1x2x64xf32>,
    return
  }
  func.func @transform_0(%arg0: i32) -> (i32, i32, i32) {
    %c0_i32 = arith.constant 0 : i32
    %c0_i32_0 = arith.constant 0 : i32
    %c0_i32_1 = arith.constant 0 : i32
    return %arg0, %c0_i32, %c0_i32_0 : i32, i32, i32
  }
  func.func @transform_1(%arg0: i32) -> (i32, i32, i32) {
    %c0_i32 = arith.constant 0 : i32
    %c0_i32_0 = arith.constant 0 : i32
    %c0_i32_1 = arith.constant 0 : i32
    return %arg0, %c0_i32, %c0_i32_0 : i32, i32, i32
  }
  func.func @transform_2(%arg0: i32) -> (i32, i32, i32) {
    %c0_i32 = arith.constant 0 : i32
    %c0_i32_0 = arith.constant 0 : i32
    %c0_i32_1 = arith.constant 0 : i32
    %c0_i32_2 = arith.constant 0 : i32
    return %c0_i32, %c0_i32_0, %c0_i32_1 : i32, i32, i32
  }
  func.func @transform_3(%arg0: i32) -> (i32, i32, i32) {
    %c0_i32 = arith.constant 0 : i32
    %c0_i32_0 = arith.constant 0 : i32
    %c0_i32_1 = arith.constant 0 : i32
    %c0_i32_2 = arith.constant 0 : i32
    return %c0_i32, %c0_i32_0, %c0_i32_1 : i32, i32, i32
  }
  func.func @transform_4(%arg0: i32) -> (i32, i32, i32) {
    %c0_i32 = arith.constant 0 : i32
    %c0_i32_0 = arith.constant 0 : i32
    %c0_i32_1 = arith.constant 0 : i32
    %c0_i32_2 = arith.constant 0 : i32
    return %c0_i32, %c0_i32_0, %c0_i32_1 : i32, i32, i32
  }
  func.func @transform_5(%arg0: i32) -> (i32, i32, i32) {
    %c0_i32 = arith.constant 0 : i32
    %c0_i32_0 = arith.constant 0 : i32
    %c0_i32_1 = arith.constant 0 : i32
    return %arg0, %c0_i32, %c0_i32_0 : i32, i32, i32
  }
}

module attributes {stable_mosaic.version = 11 : i64} {
  func.func @_up_block_kernel(%arg0: i32, %arg1: memref<1x5x64xf32, #tpu.memory_space<vmem>>, %arg2: memref<1x5x64xf32, #tpu.memory_space<vmem>>, %arg3: memref<3x64x32xbf16, #tpu.memory_space<vmem>>, %arg4: memref<3x64x32xbf16, #tpu.memory_space<vmem>>, %arg5: memref<1x1x32xf32, #tpu.memory_space<vmem>>, %arg6: memref<1x4x64xf32, #tpu.memory_space<vmem>>) attributes {dimension_semantics = [#tpu.dimension_semantics<parallel>], iteration_bounds = array<i64: 2>, scalar_prefetch = 0 : i64, scratch_operands = 0 : i64, tpu.core_type = #tpu.core_type<tc>, window_params = [{transform_indices = @transform_0, window_bounds = array<i64: 1, 5, 64>}, {transform_indices = @transform_1, window_bounds = array<i64: 1, 5, 64>}, {pipeline_mode = #tpu.pipeline_mode<synchronous>, transform_indices = @transform_2, window_bounds = array<i64: 3, 64, 32>}, {pipeline_mode = #tpu.pipeline_mode<synchronous>, transform_indices = @transform_3, window_bounds = array<i64: 3, 64, 32>}, {pipeline_mode = #tpu.pipeline_mode<synchronous>, transform_indices = @transform_4, window_bounds = array<i64: 1, 1, 32>}, {transform_indices = @transform_5, window_bounds = array<i64: 1, 4, 64>}]} {
    %c0 = arith.constant 0 : index
    %c0_0 = arith.constant 0 : index
    %c0_1 = arith.constant 0 : index
    %0 = vector.load %arg1[%c0, %c0_0, %c0_1] : memref<1x5x64xf32, #tpu.memory_space<vmem>>, vector<1x4x64xf32>
    %1 = arith.truncf %0 : vector<1x4x64xf32> to vector<1x4x64xbf16>
    %c0_2 = arith.constant 0 : index
    %c1 = arith.constant 1 : index
    %c0_3 = arith.constant 0 : index
    %2 = vector.load %arg1[%c0_2, %c1, %c0_3] : memref<1x5x64xf32, #tpu.memory_space<vmem>>, vector<1x4x64xf32>
    %3 = arith.truncf %2 : vector<1x4x64xf32> to vector<1x4x64xbf16>
    %c0_4 = arith.constant 0 : index
    %c0_5 = arith.constant 0 : index
    %c0_6 = arith.constant 0 : index
    %4 = vector.load %arg2[%c0_4, %c0_5, %c0_6] : memref<1x5x64xf32, #tpu.memory_space<vmem>>, vector<1x4x64xf32>
    %5 = arith.truncf %4 : vector<1x4x64xf32> to vector<1x4x64xbf16>
    %c0_7 = arith.constant 0 : index
    %c1_8 = arith.constant 1 : index
    %c0_9 = arith.constant 0 : index
    %6 = vector.load %arg2[%c0_7, %c1_8, %c0_9] : memref<1x5x64xf32, #tpu.memory_space<vmem>>, vector<1x4x64xf32>
    %7 = arith.truncf %6 : vector<1x4x64xf32> to vector<1x4x64xbf16>
    %c1_10 = arith.constant 1 : index
    %c0_11 = arith.constant 0 : index
    %c0_12 = arith.constant 0 : index
    %8 = vector.load %arg3[%c1_10, %c0_11, %c0_12] : memref<3x64x32xbf16, #tpu.memory_space<vmem>>, vector<1x64x32xbf16>
    %9 = vector.shape_cast %8 : vector<1x64x32xbf16> to vector<64x32xbf16>
    "tpu.trace_start"() <{level = 10 : i32, message = "blc,cd->bld"}> : () -> ()
    %cst = arith.constant dense<0.000000e+00> : vector<1x4x32xf32>
    %10 = tpu.matmul %1, %9, %cst {dimension_numbers = #tpu.dot_dimension_numbers<[2], [0], [0, 1], [1], [0, 0, 0, 1, 1, 1], [], []>} : vector<1x4x64xbf16>, vector<64x32xbf16>, vector<1x4x32xf32> -> vector<1x4x32xf32>
    "tpu.trace_stop"() : () -> ()
    %c1_13 = arith.constant 1 : index
    %c0_14 = arith.constant 0 : index
    %c0_15 = arith.constant 0 : index
    %11 = vector.load %arg4[%c1_13, %c0_14, %c0_15] : memref<3x64x32xbf16, #tpu.memory_space<vmem>>, vector<1x64x32xbf16>
    %12 = vector.shape_cast %11 : vector<1x64x32xbf16> to vector<64x32xbf16>
    "tpu.trace_start"() <{level = 10 : i32, message = "blc,cd->bld"}> : () -> ()
    %cst_16 = arith.constant dense<0.000000e+00> : vector<1x4x32xf32>
    %13 = tpu.matmul %5, %12, %cst_16 {dimension_numbers = #tpu.dot_dimension_numbers<[2], [0], [0, 1], [1], [0, 0, 0, 1, 1, 1], [], []>} : vector<1x4x64xbf16>, vector<64x32xbf16>, vector<1x4x32xf32> -> vector<1x4x32xf32>
    "tpu.trace_stop"() : () -> ()
    %14 = arith.addf %10, %13 : vector<1x4x32xf32>
    %c0_17 = arith.constant 0 : index
    %c0_18 = arith.constant 0 : index
    %c0_19 = arith.constant 0 : index
    %15 = vector.load %arg5[%c0_17, %c0_18, %c0_19] : memref<1x1x32xf32, #tpu.memory_space<vmem>>, vector<1x1x32xf32>
    %16 = vector.broadcast %15 : vector<1x1x32xf32> to vector<1x4x32xf32>
    %17 = arith.addf %14, %16 : vector<1x4x32xf32>
    %c2 = arith.constant 2 : index
    %c0_20 = arith.constant 0 : index
    %c0_21 = arith.constant 0 : index
    %18 = vector.load %arg3[%c2, %c0_20, %c0_21] : memref<3x64x32xbf16, #tpu.memory_space<vmem>>, vector<1x64x32xbf16>
    %19 = vector.shape_cast %18 : vector<1x64x32xbf16> to vector<64x32xbf16>
    "tpu.trace_start"() <{level = 10 : i32, message = "blc,cd->bld"}> : () -> ()
    %cst_22 = arith.constant dense<0.000000e+00> : vector<1x4x32xf32>
    %20 = tpu.matmul %1, %19, %cst_22 {dimension_numbers = #tpu.dot_dimension_numbers<[2], [0], [0, 1], [1], [0, 0, 0, 1, 1, 1], [], []>} : vector<1x4x64xbf16>, vector<64x32xbf16>, vector<1x4x32xf32> -> vector<1x4x32xf32>
    "tpu.trace_stop"() : () -> ()
    %c0_23 = arith.constant 0 : index
    %c0_24 = arith.constant 0 : index
    %c0_25 = arith.constant 0 : index
    %21 = vector.load %arg3[%c0_23, %c0_24, %c0_25] : memref<3x64x32xbf16, #tpu.memory_space<vmem>>, vector<1x64x32xbf16>
    %22 = vector.shape_cast %21 : vector<1x64x32xbf16> to vector<64x32xbf16>
    "tpu.trace_start"() <{level = 10 : i32, message = "blc,cd->bld"}> : () -> ()
    %cst_26 = arith.constant dense<0.000000e+00> : vector<1x4x32xf32>
    %23 = tpu.matmul %3, %22, %cst_26 {dimension_numbers = #tpu.dot_dimension_numbers<[2], [0], [0, 1], [1], [0, 0, 0, 1, 1, 1], [], []>} : vector<1x4x64xbf16>, vector<64x32xbf16>, vector<1x4x32xf32> -> vector<1x4x32xf32>
    "tpu.trace_stop"() : () -> ()
    %24 = arith.addf %20, %23 : vector<1x4x32xf32>
    %c2_27 = arith.constant 2 : index
    %c0_28 = arith.constant 0 : index
    %c0_29 = arith.constant 0 : index
    %25 = vector.load %arg4[%c2_27, %c0_28, %c0_29] : memref<3x64x32xbf16, #tpu.memory_space<vmem>>, vector<1x64x32xbf16>
    %26 = vector.shape_cast %25 : vector<1x64x32xbf16> to vector<64x32xbf16>
    "tpu.trace_start"() <{level = 10 : i32, message = "blc,cd->bld"}> : () -> ()
    %cst_30 = arith.constant dense<0.000000e+00> : vector<1x4x32xf32>
    %27 = tpu.matmul %5, %26, %cst_30 {dimension_numbers = #tpu.dot_dimension_numbers<[2], [0], [0, 1], [1], [0, 0, 0, 1, 1, 1], [], []>} : vector<1x4x64xbf16>, vector<64x32xbf16>, vector<1x4x32xf32> -> vector<1x4x32xf32>
    "tpu.trace_stop"() : () -> ()
    %28 = arith.addf %24, %27 : vector<1x4x32xf32>
    %c0_31 = arith.constant 0 : index
    %c0_32 = arith.constant 0 : index
    %c0_33 = arith.constant 0 : index
    %29 = vector.load %arg4[%c0_31, %c0_32, %c0_33] : memref<3x64x32xbf16, #tpu.memory_space<vmem>>, vector<1x64x32xbf16>
    %30 = vector.shape_cast %29 : vector<1x64x32xbf16> to vector<64x32xbf16>
    "tpu.trace_start"() <{level = 10 : i32, message = "blc,cd->bld"}> : () -> ()
    %cst_34 = arith.constant dense<0.000000e+00> : vector<1x4x32xf32>
    %31 = tpu.matmul %7, %30, %cst_34 {dimension_numbers = #tpu.dot_dimension_numbers<[2], [0], [0, 1], [1], [0, 0, 0, 1, 1, 1], [], []>} : vector<1x4x64xbf16>, vector<64x32xbf16>, vector<1x4x32xf32> -> vector<1x4x32xf32>
    "tpu.trace_stop"() : () -> ()
    %32 = arith.addf %28, %31 : vector<1x4x32xf32>
    %c0_35 = arith.constant 0 : index
    %c0_36 = arith.constant 0 : index
    %c0_37 = arith.constant 0 : index
    %33 = vector.load %arg5[%c0_35, %c0_36, %c0_37] : memref<1x1x32xf32, #tpu.memory_space<vmem>>, vector<1x1x32xf32>
    %34 = vector.broadcast %33 : vector<1x1x32xf32> to vector<1x4x32xf32>
    %35 = arith.addf %32, %34 : vector<1x4x32xf32>
    %36 = arith.negf %17 : vector<1x4x32xf32>
    %37 = math.exp %36 : vector<1x4x32xf32>
    %cst_38 = arith.constant 1.000000e+00 : f32
    %38 = vector.broadcast %cst_38 : f32 to vector<1x4x32xf32>
    %39 = arith.addf %38, %37 : vector<1x4x32xf32>
    %40 = arith.divf %38, %39 : vector<1x4x32xf32>
    %41 = arith.mulf %17, %40 : vector<1x4x32xf32>
    %c0_39 = arith.constant 0 : index
    %c0_40 = arith.constant 0 : index
    %c0_41 = arith.constant 0 : index
    %42 = vector.load %arg6[%c0_39, %c0_40, %c0_41] : memref<1x4x64xf32, #tpu.memory_space<vmem>>, vector<1x4x32xf32>
    tpu.vector_store %arg6[%c0_39, %c0_40, %c0_41], %41 {strides = array<i32>} : memref<1x4x64xf32, #tpu.memory_space<vmem>>, vector<1x4x32xf32>,
    %43 = arith.negf %35 : vector<1x4x32xf32>
    %44 = math.exp %43 : vector<1x4x32xf32>
    %cst_42 = arith.constant 1.000000e+00 : f32
    %45 = vector.broadcast %cst_42 : f32 to vector<1x4x32xf32>
    %46 = arith.addf %45, %44 : vector<1x4x32xf32>
    %47 = arith.divf %45, %46 : vector<1x4x32xf32>
    %48 = arith.mulf %35, %47 : vector<1x4x32xf32>
    %c0_43 = arith.constant 0 : index
    %c0_44 = arith.constant 0 : index
    %c32 = arith.constant 32 : index
    %49 = vector.load %arg6[%c0_43, %c0_44, %c32] : memref<1x4x64xf32, #tpu.memory_space<vmem>>, vector<1x4x32xf32>
    tpu.vector_store %arg6[%c0_43, %c0_44, %c32], %48 {strides = array<i32>} : memref<1x4x64xf32, #tpu.memory_space<vmem>>, vector<1x4x32xf32>,
    return
  }
  func.func @transform_0(%arg0: i32) -> (i32, i32, i32) {
    %c0_i32 = arith.constant 0 : i32
    %c0_i32_0 = arith.constant 0 : i32
    %c0_i32_1 = arith.constant 0 : i32
    return %arg0, %c0_i32, %c0_i32_0 : i32, i32, i32
  }
  func.func @transform_1(%arg0: i32) -> (i32, i32, i32) {
    %c0_i32 = arith.constant 0 : i32
    %c0_i32_0 = arith.constant 0 : i32
    %c0_i32_1 = arith.constant 0 : i32
    return %arg0, %c0_i32, %c0_i32_0 : i32, i32, i32
  }
  func.func @transform_2(%arg0: i32) -> (i32, i32, i32) {
    %c0_i32 = arith.constant 0 : i32
    %c0_i32_0 = arith.constant 0 : i32
    %c0_i32_1 = arith.constant 0 : i32
    %c0_i32_2 = arith.constant 0 : i32
    return %c0_i32, %c0_i32_0, %c0_i32_1 : i32, i32, i32
  }
  func.func @transform_3(%arg0: i32) -> (i32, i32, i32) {
    %c0_i32 = arith.constant 0 : i32
    %c0_i32_0 = arith.constant 0 : i32
    %c0_i32_1 = arith.constant 0 : i32
    %c0_i32_2 = arith.constant 0 : i32
    return %c0_i32, %c0_i32_0, %c0_i32_1 : i32, i32, i32
  }
  func.func @transform_4(%arg0: i32) -> (i32, i32, i32) {
    %c0_i32 = arith.constant 0 : i32
    %c0_i32_0 = arith.constant 0 : i32
    %c0_i32_1 = arith.constant 0 : i32
    %c0_i32_2 = arith.constant 0 : i32
    return %c0_i32, %c0_i32_0, %c0_i32_1 : i32, i32, i32
  }
  func.func @transform_5(%arg0: i32) -> (i32, i32, i32) {
    %c0_i32 = arith.constant 0 : i32
    %c0_i32_0 = arith.constant 0 : i32
    %c0_i32_1 = arith.constant 0 : i32
    return %arg0, %c0_i32, %c0_i32_0 : i32, i32, i32
  }
}

module attributes {stable_mosaic.version = 11 : i64} {
  func.func @_norm_logits_kernel(%arg0: i32, %arg1: i32, %arg2: memref<16x32xf32, #tpu.memory_space<vmem>>, %arg3: memref<1x32xf32, #tpu.memory_space<vmem>>, %arg4: memref<1x32xf32, #tpu.memory_space<vmem>>, %arg5: memref<32x128xbf16, #tpu.memory_space<vmem>>, %arg6: memref<1x128xf32, #tpu.memory_space<vmem>>, %arg7: memref<16x128xf32, #tpu.memory_space<vmem>>) attributes {dimension_semantics = [#tpu.dimension_semantics<parallel>, #tpu.dimension_semantics<parallel>], iteration_bounds = array<i64: 1, 1>, scalar_prefetch = 0 : i64, scratch_operands = 0 : i64, tpu.core_type = #tpu.core_type<tc>, window_params = [{transform_indices = @transform_0, window_bounds = array<i64: 16, 32>}, {pipeline_mode = #tpu.pipeline_mode<synchronous>, transform_indices = @transform_1, window_bounds = array<i64: 1, 32>}, {pipeline_mode = #tpu.pipeline_mode<synchronous>, transform_indices = @transform_2, window_bounds = array<i64: 1, 32>}, {transform_indices = @transform_3, window_bounds = array<i64: 32, 128>}, {transform_indices = @transform_4, window_bounds = array<i64: 1, 128>}, {transform_indices = @transform_5, window_bounds = array<i64: 16, 128>}]} {
    %c0 = arith.constant 0 : index
    %c0_0 = arith.constant 0 : index
    %0 = vector.load %arg2[%c0, %c0_0] : memref<16x32xf32, #tpu.memory_space<vmem>>, vector<16x32xf32>
    %cst = arith.constant dense<0.000000e+00> : vector<16xf32>
    %1 = vector.multi_reduction <add>, %0, %cst [1] : vector<16x32xf32> to vector<16xf32>
    %2 = vector.shape_cast %1 : vector<16xf32> to vector<16x1xf32>
    %cst_1 = arith.constant 3.200000e+01 : f32
    %3 = vector.broadcast %cst_1 : f32 to vector<16x1xf32>
    %4 = arith.divf %2, %3 : vector<16x1xf32>
    %5 = vector.broadcast %4 : vector<16x1xf32> to vector<16x32xf32>
    %6 = arith.subf %0, %5 : vector<16x32xf32>
    %7 = arith.mulf %6, %6 : vector<16x32xf32>
    %cst_2 = arith.constant dense<0.000000e+00> : vector<16xf32>
    %8 = vector.multi_reduction <add>, %7, %cst_2 [1] : vector<16x32xf32> to vector<16xf32>
    %9 = vector.shape_cast %8 : vector<16xf32> to vector<16x1xf32>
    %cst_3 = arith.constant 3.200000e+01 : f32
    %10 = vector.broadcast %cst_3 : f32 to vector<16x1xf32>
    %11 = arith.divf %9, %10 : vector<16x1xf32>
    %cst_4 = arith.constant 9.99999974E-6 : f32
    %12 = vector.broadcast %cst_4 : f32 to vector<16x1xf32>
    %13 = arith.addf %11, %12 : vector<16x1xf32>
    %14 = math.rsqrt %13 : vector<16x1xf32>
    %15 = vector.broadcast %14 : vector<16x1xf32> to vector<16x32xf32>
    %16 = arith.mulf %6, %15 : vector<16x32xf32>
    %c0_5 = arith.constant 0 : index
    %c0_6 = arith.constant 0 : index
    %17 = vector.load %arg3[%c0_5, %c0_6] : memref<1x32xf32, #tpu.memory_space<vmem>>, vector<1x32xf32>
    %18 = vector.broadcast %17 : vector<1x32xf32> to vector<16x32xf32>
    %19 = arith.mulf %16, %18 : vector<16x32xf32>
    %c0_7 = arith.constant 0 : index
    %c0_8 = arith.constant 0 : index
    %20 = vector.load %arg4[%c0_7, %c0_8] : memref<1x32xf32, #tpu.memory_space<vmem>>, vector<1x32xf32>
    %21 = vector.broadcast %20 : vector<1x32xf32> to vector<16x32xf32>
    %22 = arith.addf %19, %21 : vector<16x32xf32>
    %23 = arith.truncf %22 : vector<16x32xf32> to vector<16x32xbf16>
    %c0_9 = arith.constant 0 : index
    %c0_10 = arith.constant 0 : index
    %24 = vector.load %arg5[%c0_9, %c0_10] : memref<32x128xbf16, #tpu.memory_space<vmem>>, vector<32x128xbf16>
    %cst_11 = arith.constant dense<0.000000e+00> : vector<16x128xf32>
    %25 = tpu.matmul %23, %24, %cst_11 {dimension_numbers = #tpu.dot_dimension_numbers<[1], [0], [0], [1], [0, 0, 1, 1], [], []>} : vector<16x32xbf16>, vector<32x128xbf16>, vector<16x128xf32> -> vector<16x128xf32>
    %c0_12 = arith.constant 0 : index
    %c0_13 = arith.constant 0 : index
    %26 = vector.load %arg6[%c0_12, %c0_13] : memref<1x128xf32, #tpu.memory_space<vmem>>, vector<1x128xf32>
    %27 = vector.broadcast %26 : vector<1x128xf32> to vector<16x128xf32>
    %28 = arith.addf %25, %27 : vector<16x128xf32>
    %c0_14 = arith.constant 0 : index
    %c0_15 = arith.constant 0 : index
    %29 = vector.load %arg7[%c0_14, %c0_15] : memref<16x128xf32, #tpu.memory_space<vmem>>, vector<16x128xf32>
    tpu.vector_store %arg7[%c0_14, %c0_15], %28 {strides = array<i32>} : memref<16x128xf32, #tpu.memory_space<vmem>>, vector<16x128xf32>,
    return
  }
  func.func @transform_0(%arg0: i32, %arg1: i32) -> (i32, i32) {
    %c0_i32 = arith.constant 0 : i32
    %c0_i32_0 = arith.constant 0 : i32
    return %arg0, %c0_i32 : i32, i32
  }
  func.func @transform_1(%arg0: i32, %arg1: i32) -> (i32, i32) {
    %c0_i32 = arith.constant 0 : i32
    %c0_i32_0 = arith.constant 0 : i32
    %c0_i32_1 = arith.constant 0 : i32
    return %c0_i32, %c0_i32_0 : i32, i32
  }
  func.func @transform_2(%arg0: i32, %arg1: i32) -> (i32, i32) {
    %c0_i32 = arith.constant 0 : i32
    %c0_i32_0 = arith.constant 0 : i32
    %c0_i32_1 = arith.constant 0 : i32
    return %c0_i32, %c0_i32_0 : i32, i32
  }
  func.func @transform_3(%arg0: i32, %arg1: i32) -> (i32, i32) {
    %c0_i32 = arith.constant 0 : i32
    %c0_i32_0 = arith.constant 0 : i32
    return %c0_i32, %arg1 : i32, i32
  }
  func.func @transform_4(%arg0: i32, %arg1: i32) -> (i32, i32) {
    %c0_i32 = arith.constant 0 : i32
    %c0_i32_0 = arith.constant 0 : i32
    return %c0_i32, %arg1 : i32, i32
  }
  func.func @transform_5(%arg0: i32, %arg1: i32) -> (i32, i32) {
    %c0_i32 = arith.constant 0 : i32
    return %arg0, %arg1 : i32, i32
  }
}

module attributes {stable_mosaic.version = 11 : i64} {
  func.func @_concat_linear_kernel(%arg0: memref<16x32xf32, #tpu.memory_space<vmem>>, %arg1: memref<16x32xf32, #tpu.memory_space<vmem>>, %arg2: memref<32x32xbf16, #tpu.memory_space<vmem>>, %arg3: memref<32x32xbf16, #tpu.memory_space<vmem>>, %arg4: memref<1x32xf32, #tpu.memory_space<vmem>>, %arg5: memref<16x32xf32, #tpu.memory_space<vmem>>) attributes {dimension_semantics = [], scalar_prefetch = 0 : i64, scratch_operands = 0 : i64, tpu.core_type = #tpu.core_type<tc>} {
    %c0 = arith.constant 0 : index
    %c0_0 = arith.constant 0 : index
    %0 = vector.load %arg0[%c0, %c0_0] : memref<16x32xf32, #tpu.memory_space<vmem>>, vector<16x32xf32>
    %1 = arith.truncf %0 : vector<16x32xf32> to vector<16x32xbf16>
    %c0_1 = arith.constant 0 : index
    %c0_2 = arith.constant 0 : index
    %2 = vector.load %arg2[%c0_1, %c0_2] : memref<32x32xbf16, #tpu.memory_space<vmem>>, vector<32x32xbf16>
    %cst = arith.constant dense<0.000000e+00> : vector<16x32xf32>
    %3 = tpu.matmul %1, %2, %cst {dimension_numbers = #tpu.dot_dimension_numbers<[1], [0], [0], [1], [0, 0, 1, 1], [], []>} : vector<16x32xbf16>, vector<32x32xbf16>, vector<16x32xf32> -> vector<16x32xf32>
    %c0_3 = arith.constant 0 : index
    %c0_4 = arith.constant 0 : index
    %4 = vector.load %arg1[%c0_3, %c0_4] : memref<16x32xf32, #tpu.memory_space<vmem>>, vector<16x32xf32>
    %5 = arith.truncf %4 : vector<16x32xf32> to vector<16x32xbf16>
    %c0_5 = arith.constant 0 : index
    %c0_6 = arith.constant 0 : index
    %6 = vector.load %arg3[%c0_5, %c0_6] : memref<32x32xbf16, #tpu.memory_space<vmem>>, vector<32x32xbf16>
    %cst_7 = arith.constant dense<0.000000e+00> : vector<16x32xf32>
    %7 = tpu.matmul %5, %6, %cst_7 {dimension_numbers = #tpu.dot_dimension_numbers<[1], [0], [0], [1], [0, 0, 1, 1], [], []>} : vector<16x32xbf16>, vector<32x32xbf16>, vector<16x32xf32> -> vector<16x32xf32>
    %8 = arith.addf %3, %7 : vector<16x32xf32>
    %c0_8 = arith.constant 0 : index
    %c0_9 = arith.constant 0 : index
    %9 = vector.load %arg4[%c0_8, %c0_9] : memref<1x32xf32, #tpu.memory_space<vmem>>, vector<1x32xf32>
    %10 = vector.broadcast %9 : vector<1x32xf32> to vector<16x32xf32>
    %11 = arith.addf %8, %10 : vector<16x32xf32>
    %c0_10 = arith.constant 0 : index
    %c0_11 = arith.constant 0 : index
    %12 = vector.load %arg5[%c0_10, %c0_11] : memref<16x32xf32, #tpu.memory_space<vmem>>, vector<16x32xf32>
    tpu.vector_store %arg5[%c0_10, %c0_11], %11 {strides = array<i32>} : memref<16x32xf32, #tpu.memory_space<vmem>>, vector<16x32xf32>,
    return
  }
}

</mosaic_0001>

<bundles_post_ra>
// kernel: text_diffusion_forward.12
= control target key start
LH: loop header
LB: loop body
LE: loop exit
PB: predicated region body
PF: predicated region fallthrough
CT: control target
= control target key end

     0   :  { %v115_v0 = vmov 0   ;;  %vm70_vm0 = vcmask 1043456   ;;  %vm66_vm5 = vcmask 64512   ;;  %vm97_vm6 = vcmask 261120   ;;  %s178_s1 = inlined_call_operand.vmem [shape: f32[2,1], index: 1, kind: input, shape index: {}]   ;;  %s179_s2 = inlined_call_operand.vmem [shape: f32[1,8], index: 2, kind: input, shape index: {}]   ;;  %s180_s3 = inlined_call_operand.vmem [shape: f32[1,8], index: 3, kind: input, shape index: {}]   ;;  %s181_s5 = inlined_call_operand.vmem [shape: f32[1,32], index: 5, kind: input, shape index: {}]   ;;  %s182_s4 = inlined_call_operand.vmem [shape: bf16[8,32], index: 4, kind: input, shape index: {}]   ;;  %s183_s0 = inlined_call_operand.vmem [shape: f32[2,8,32], index: 0, kind: input, shape index: {}]   ;;  %s184_s6 = inlined_call_operand.vmem [shape: f32[2,8,32], index: 6, kind: output, shape index: {}]  }
   0x1   :  { %107 = vset.pattern.permute.xlu0 %v115_v0  ;;  %v24_v1 = vld [vmem:[%s178_s1] sm:$0x3]  ;;  %v88_v30 = vld [vmem:[%s183_s0 + $0x8] sm:$0xff] }
   0x2   :  { %28 = vperm.xlu0 %107, %v24_v1   ;;  %v61_v2 = vld [vmem:[%s182_s4] sm:$0xf] }
   0x3   :  { %v72_v3 = vsel %vm70_vm0, %v61_v2, 0  ;;  %v108_v4 = vld [vmem:[%s179_s2] ss:$0 sm:$0xff] }
   0x4   :  { %81 = vmatpush.bf16.msra.mxu0 %v72_v3  ;;  %v109_v5 = vld [vmem:[%s180_s3] ss:$0 sm:$0xff] }
   0x5   :  { %v110_v24 = vld [vmem:[%s181_s5] ss:$0 sm:$0xff] }
   0x6   :  { %v87_v27 = vld [vmem:[%s183_s0] sm:$0xff] }
  0x74   :  { %v29_v6 = vpop.permute.xlu0 %28 }
  0x75   :  { %v34_v7 = vmul.f32 %v108_v4, %v29_v6 }
  0x77   :  { %v39_v8 = vadd.f32 %v109_v5, %v34_v7 }
  0x79   :  { %v104_v9 = vmul.f32 -1.442695, %v39_v8 }
  0x7b   :  { %111 = vpow2.f32 %v104_v9 }
  0x81   :  { %v112_v10 = vpop.eup %111 }
  0x82   :  { %v43_v11 = vadd.f32 1.0, %v112_v10 }
  0x84   :  { %113 = vrcp.f32 %v43_v11  ;;  %v55_v15 = vand.u32 2147483648, %v43_v11  ;;  %v53_v17 = vand.u32 2147483647, %v43_v11  ;;  %vm49_vm2 = vweird.f32 %v43_v11 }
  0x86   :  { %v56_v19 = vor.u32 1.1754944e-38, %v55_v15  ;;  %vm54_vm4 = vcmp.eq.f32.partialorder %v53_v17, 8.507059e+37 }
  0x8a   :  { %v114_v12 = vpop.eup %113 }
  0x8b   :  { %v45_v13 = vmul.f32 %v114_v12, %v43_v11  ;;  %vm50_vm1 = vweird.f32 %v114_v12 }
  0x8c   :  { %vm51_vm3 = vmor %vm49_vm2, %vm50_vm1 }
  0x8d   :  { %v46_v14 = vsub.f32 1.0, %v45_v13 }
  0x8f   :  { %v47_v16 = vmul.f32 %v114_v12, %v46_v14 }
  0x91   :  { %v48_v18 = vadd.f32 %v114_v12, %v47_v16 }
  0x93   :  { %v52_v20 = vsel %vm51_vm3, %v114_v12, %v48_v18 }
  0x94   :  { %v57_v21 = vsel %vm54_vm4, %v56_v19, %v52_v20 }
  0x95   :  { %v59_v22 = vmul.f32 %v57_v21, %v39_v8 }
  0x97   :  { %v60_v23 = vpack.c.bf16 %v59_v22, %v59_v22 }
  0x99   :  { %105 = vmatmul.msk.bf16.vlgmr.msra.gmra.mxu0 %vm66_vm5, %v60_v23 }
 0x116   :  { %v83_v25 = vpop.f32.mrf.mxu0 }
 0x117   :  { %v84_v26 = vadd.f32 %v110_v24, %v83_v25 }
 0x119   :  { %v90_v28 = vrot.slane %v84_v26, 1  ;;  %v91_v29 = vperm.slane %v84_v26, 0 }
 0x11b   :  { %v92_v31 = vperm.slane %v90_v28, 0  ;;  %v95_v32 = vadd.f32 %v91_v29, %v87_v27 }
 0x11d   :  { %v96_v33 = vadd.f32 %v92_v31, %v88_v30  ;;  %98 = vst.msk [vmem:[%s184_s6] sm:$0xff] %vm97_vm6, %v95_v32 }
 0x11e   :  { %v85_v34 = vpop.f32.mrf.mxu0 }
 0x11f   :  { %99 = vst.msk [vmem:[%s184_s6 + $0x8] sm:$0xff] %vm97_vm6, %v96_v33 }

// kernel: text_diffusion_forward.13
= control target key start
LH: loop header
LB: loop body
LE: loop exit
PB: predicated region body
PF: predicated region fallthrough
CT: control target
= control target key end

     0   :  { %s587_s15 = smov 0   ;;  %s641_s0 = inlined_call_operand.vmem [shape: f32[2,5,32], index: 0, kind: input, shape index: {}]   ;;  %s642_s1 = inlined_call_operand.vmem [shape: f32[2,5,32], index: 1, kind: input, shape index: {}]   ;;  %s643_s2 = inlined_call_operand.vmem [shape: bf16[3,32,64], index: 2, kind: input, shape index: {}]   ;;  %s644_s3 = inlined_call_operand.vmem [shape: f32[1,1,64], index: 3, kind: input, shape index: {}]   ;;  %s645_s4 = inlined_call_operand.vmem [shape: f32[2,4,64], index: 4, kind: output, shape index: {}]  }
   0x1 LB: > { %s480_s16 = sadd.s32 4294967295, %s560_s15   ;;  %p484_p0 = scmp.ge.s32.totalorder %s560_s15, 1  ;;  %s560_s15 = sphi %s587_s15, %s14_s15  }
   0x2   : > { %p170_p1 = scmp.lt.s32.totalorder %s560_s15, 3 }
   0x4   : > { %p171_p2 = pnand %p484_p0, %p170_p1 }
   0x5   : > { %p198_p3 = scmp.lt.s32.totalorder (!%p171_p2), %s480_s16, 1 }
   0x6   : > { %174 = sbr.rel (%p171_p2) target bundleno = 200 (0xc8), region = 36 }
   0xb   : > { %v533_v0 = vld [vmem:[%s643_s2 + $0x18] sm:$0xff]  ;;  %v531_v1 = vld [vmem:[%s643_s2 + $0x8] sm:$0xff]  ;;  %v532_v3 = vld [vmem:[%s643_s2 + $0x10] sm:$0xff]  ;;  %s647_s16 = smov (!%p198_p3, %s480_s16), 1  ;;  %vm245_vm0 = vcmask 261120   ;;  %vm413_vm9 = vcmask 519168  }
   0xc   : > { %v535_v2 = vld [vmem:[%s643_s2 + $0x28] sm:$0xff]  ;;  %255 = vmatpush.bf16.msra.mxu0 %v533_v0  ;;  %283 = vmatpush.bf16.msra.mxu1 %v531_v1  ;;  %v530_v4 = vld [vmem:[%s643_s2] sm:$0xff]  ;;  %s485_s29 = sshll.u32 %s647_s16, 3  ;;  %s487_s14 = sshll.u32 %s647_s16, 2 }
   0xd   : > { %311 = vmatpush.bf16.msra.mxu2 %v535_v2  ;;  %350 = vmatpush.bf16.msra.mxu3 %v533_v0  ;;  %v534_v5 = vld [vmem:[%s643_s2 + $0x20] sm:$0xff]  ;;  %s205_s6 = scalar_lea.vmem %s642_s1, %s485_s29  ;;  %s201_s9 = scalar_lea.vmem %s641_s0, %s485_s29 }
   0xe   : > { %v215_v6 = vld [vmem:[%s205_s6] sm:$0xf]  ;;  %s209_s19 = scalar_lea.vmem %s645_s4, %s487_s14 }
   0xf   : > { %v216_v7 = vpack.c.bf16 %v215_v6, %v215_v6  ;;  %v211_v8 = vld [vmem:[%s201_s9] sm:$0xf] }
  0x10   : > { %256 = vmatpush.bf16.msra.mxu0 %v532_v3  ;;  %284 = vmatpush.bf16.msra.mxu1 %v530_v4  ;;  %v213_v9 = vld [vmem:[%s201_s9 + $0x1] sm:$0xf]  ;;  %v212_v10 = vpack.c.bf16 %v211_v8, %v211_v8  ;;  %v544_v17 = vld [vmem:[%s644_s3] ss:$0 sm:$0xff] }
  0x11   : > { %312 = vmatpush.bf16.msra.mxu2 %v534_v5  ;;  %351 = vmatpush.bf16.msra.mxu3 %v532_v3  ;;  %v214_v11 = vpack.c.bf16 %v213_v9, %v213_v9  ;;  %v217_v12 = vld [vmem:[%s205_s6 + $0x1] sm:$0xf]  ;;  %v545_v30 = vld [vmem:[%s644_s3] ss:$0 sm:$0xff] }
  0x12   : > { %v218_v13 = vpack.c.bf16 %v217_v12, %v217_v12 }
  0x13   : > { %504 = vmatmul.msk.bf16.vlgmr.msra.gmra.mxu0 %vm245_vm0, %v216_v7  ;;  %513 = vmatmul.msk.bf16.vlgmr.msra.gmra.mxu1 %vm245_vm0, %v212_v10 }
  0x14   : > { %363 = vmatpush.bf16.msrb.mxu0 %v531_v1  ;;  %379 = vmatpush.bf16.msrb.mxu1 %v535_v2 }
  0x15   : > { %522 = vmatmul.msk.bf16.vlgmr.msra.gmra.mxu2 %vm245_vm0, %v214_v11  ;;  %524 = vmatmul.msk.bf16.vlgmr.msra.gmra.mxu3 %vm245_vm0, %v214_v11 }
  0x18   : > { %364 = vmatpush.bf16.msrb.mxu0 %v530_v4  ;;  %380 = vmatpush.bf16.msrb.mxu1 %v534_v5 }
  0x23   : > { %525 = vmatmul.msk.bf16.vlgmr.msrb.gmra.mxu0 %vm245_vm0, %v216_v7  ;;  %526 = vmatmul.msk.bf16.vlgmr.msrb.gmra.mxu1 %vm245_vm0, %v218_v13 }
  0x90   : > { %v258_v14 = vpop.f32.mrf.mxu0  ;;  %v286_v15 = vpop.f32.mrf.mxu1 }
  0x91   : > { %v287_v16 = vadd.f32 %v286_v15, %v258_v14 }
  0x98   : > { %v314_v18 = vpop.f32.mrf.mxu2  ;;  %v260_v20 = vpop.f32.mrf.mxu0 }
  0x99   : > { %v318_v19 = vadd.f32 %v314_v18, %v287_v16  ;;  %v353_v21 = vpop.f32.mrf.mxu3  ;;  %v288_v22 = vpop.f32.mrf.mxu1 }
  0x9b   : > { %v323_v23 = vadd.f32 %v544_v17, %v318_v19 }
  0x9d   : > { %v523_v24 = vmul.f32 -1.442695, %v323_v23 }
  0x9f   : > { %546 = vpow2.f32 %v523_v24 }
  0xa0   : > { %v316_v25 = vpop.f32.mrf.mxu2  ;;  %v366_v27 = vpop.f32.mrf.mxu0 }
  0xa1   : > { %v355_v26 = vpop.f32.mrf.mxu3  ;;  %v367_v28 = vadd.f32 %v366_v27, %v353_v21  ;;  %v382_v29 = vpop.f32.mrf.mxu1 }
  0xa3   : > { %v386_v31 = vadd.f32 %v382_v29, %v367_v28 }
  0xa5   : > { %v547_v32 = vpop.eup %546  ;;  %v391_v34 = vadd.f32 %v545_v30, %v386_v31 }
  0xa6   : > { %v327_v33 = vadd.f32 1.0, %v547_v32 }
  0xa7   : > { %v527_v35 = vmul.f32 -1.442695, %v391_v34 }
  0xa8   : > { %548 = vrcp.f32 %v327_v33  ;;  %v368_v36 = vpop.f32.mrf.mxu0  ;;  %v339_v47 = vand.u32 2147483648, %v327_v33  ;;  %vm333_vm2 = vweird.f32 %v327_v33  ;;  %v337_v48 = vand.u32 2147483647, %v327_v33 }
  0xa9   : > { %v384_v37 = vpop.f32.mrf.mxu1  ;;  %550 = vpow2.f32 %v527_v35 }
  0xaa   : > { %v340_v54 = vor.u32 1.1754944e-38, %v339_v47  ;;  %vm338_vm5 = vcmp.eq.f32.partialorder %v337_v48, 8.507059e+37 }
  0xae   : > { %v549_v38 = vpop.eup %548 }
  0xaf   : > { %v329_v39 = vmul.f32 %v549_v38, %v327_v33  ;;  %v551_v40 = vpop.eup %550  ;;  %vm334_vm1 = vweird.f32 %v549_v38 }
  0xb0   : > { %v395_v41 = vadd.f32 1.0, %v551_v40  ;;  %vm335_vm3 = vmor %vm333_vm2, %vm334_vm1 }
  0xb1   : > { %v330_v42 = vsub.f32 1.0, %v329_v39 }
  0xb2   : > { %552 = vrcp.f32 %v395_v41  ;;  %v407_v50 = vand.u32 2147483648, %v395_v41  ;;  %v405_v53 = vand.u32 2147483647, %v395_v41  ;;  %vm401_vm6 = vweird.f32 %v395_v41 }
  0xb3   : > { %v331_v43 = vmul.f32 %v549_v38, %v330_v42 }
  0xb4   : > { %v408_v57 = vor.u32 1.1754944e-38, %v407_v50  ;;  %vm406_vm8 = vcmp.eq.f32.partialorder %v405_v53, 8.507059e+37 }
  0xb5   : > { %v332_v45 = vadd.f32 %v549_v38, %v331_v43 }
  0xb7   : > { %v336_v51 = vsel %vm335_vm3, %v549_v38, %v332_v45 }
  0xb8   : > { %v553_v44 = vpop.eup %552  ;;  %v341_v56 = vsel %vm338_vm5, %v340_v54, %v336_v51 }
  0xb9   : > { %v397_v46 = vmul.f32 %v553_v44, %v395_v41  ;;  %vm402_vm4 = vweird.f32 %v553_v44  ;;  %v343_v60 = vmul.f32 %v341_v56, %v323_v23 }
  0xba   : > { %vm403_vm7 = vmor %vm401_vm6, %vm402_vm4 }
  0xbb   : > { %v398_v49 = vsub.f32 1.0, %v397_v46 }
  0xbd   : > { %v399_v52 = vmul.f32 %v553_v44, %v398_v49 }
  0xbf   : > { %v400_v55 = vadd.f32 %v553_v44, %v399_v52 }
  0xc1   : > { %v404_v58 = vsel %vm403_vm7, %v553_v44, %v400_v55 }
  0xc2   : > { %v409_v59 = vsel %vm406_vm8, %v408_v57, %v404_v58 }
  0xc3   : > { %v411_v61 = vmul.f32 %v409_v59, %v391_v34 }
  0xc5   : > { %v412_v62 = vmax.f32 %v343_v60, %v411_v61 }
  0xc7   : > { %414 = vst.msk [vmem:[%s209_s19] sm:$0xf] %vm413_vm9, %v412_v62 }
  0xc8 PF: > { %s14_s15 = sadd.s32 1, %s560_s15  }
  0xc9   : > { %p11_p4 = scmp.ge.s32.totalorder %s14_s15, 4  }
  0xcb   :  { %13 = sbr.rel (!%p11_p4) target bundleno = 1 (0x1), region = 71 }

// kernel: text_diffusion_forward.10
= control target key start
LH: loop header
LB: loop body
LE: loop exit
PB: predicated region body
PF: predicated region fallthrough
CT: control target
= control target key end

     0   :  { %s1258_s25 = smov 0   ;;  %s1405_s0 = inlined_call_operand.vmem [shape: f32[2,8,32], index: 0, kind: input, shape index: {}]   ;;  %s1406_s1 = inlined_call_operand.vmem [shape: bf16[32,96], index: 1, kind: input, shape index: {}]   ;;  %s1407_s2 = inlined_call_operand.vmem [shape: f32[1,1,96], index: 2, kind: input, shape index: {}]   ;;  %s1408_s3 = inlined_call_operand.vmem [shape: bf16[32,32], index: 3, kind: input, shape index: {}]   ;;  %s1409_s4 = inlined_call_operand.vmem [shape: f32[1,1,32], index: 4, kind: input, shape index: {}]   ;;  %s1410_s5 = inlined_call_operand.vmem [shape: f32[1,1,32], index: 5, kind: input, shape index: {}]   ;;  %s1411_s6 = inlined_call_operand.vmem [shape: f32[1,1,32], index: 6, kind: input, shape index: {}]   ;;  %s1412_s7 = inlined_call_operand.vmem [shape: bf16[32,128], index: 7, kind: input, shape index: {}]   ;;  %s1413_s8 = inlined_call_operand.vmem [shape: f32[1,1,128], index: 8, kind: input, shape index: {}]   ;;  %s1414_s9 = inlined_call_operand.vmem [shape: bf16[128,32], index: 9, kind: input, shape index: {}]   ;;  %s1415_s10 = inlined_call_operand.vmem [shape: f32[1,1,32], index: 10, kind: input, shape index: {}]   ;;  %s1416_s11 = inlined_call_operand.vmem [shape: f32[1,1,32], index: 11, kind: input, shape index: {}]   ;;  %s1417_s12 = inlined_call_operand.vmem [shape: f32[1,1,32], index: 12, kind: input, shape index: {}]   ;;  %s1418_s13 = inlined_call_operand.vmem [shape: f32[2,8,32], index: 13, kind: output, shape index: {}]  }
   0x1 LB: > { %s1020_s26 = sadd.s32 4294967295, %s1171_s25   ;;  %p1024_p0 = scmp.ge.s32.totalorder %s1171_s25, 1  ;;  %s1171_s25 = sphi %s1258_s25, %s23_s25  }
   0x2   : > { %p386_p1 = scmp.lt.s32.totalorder %s1171_s25, 3 }
   0x4   : > { %p387_p2 = pnand %p1024_p0, %p386_p1 }
   0x5   : > { %p428_p3 = scmp.lt.s32.totalorder (!%p387_p2), %s1020_s26, 1  ;;  %s1173_s20 = smov (!%p387_p2), 88  }
   0x6   : > { %390 = sbr.rel (%p387_p2) target bundleno = 2314 (0x90a), region = 72  ;;  %s1174_s21 = smov (!%p387_p2), 96  }
   0x7   : > { %s1175_s22 = smov (!%p387_p2), 120   ;;  %s1176_s23 = smov (!%p387_p2), 72  }
   0x8   : > { %s1177_s24 = smov (!%p387_p2), 104   ;;  %s1178_s27 = smov (!%p387_p2), 80  }
   0x9   : > { %s1179_s28 = smov (!%p387_p2), 64   ;;  %s1180_s29 = smov (!%p387_p2), 112  }
   0xa   : > { %s1181_s30 = smov (!%p387_p2), 56   ;;  %s1182_s15 = smov (!%p387_p2), 48  }
   0xb   : > { %v1097_v0 = vld [vmem:[%s1406_s1 + $0x8] sm:$0xff]  ;;  %v1096_v1 = vld [vmem:[%s1406_s1] sm:$0xff]  ;;  %s1420_s26 = smov (!%p428_p3, %s1020_s26), 1  ;;  %vm459_vm0 = vcmask 261120   ;;  %vm482_vm1 = vcmask 64512   ;;  %vm520_vm2 = vcmask 1043456  }
   0xc   : > { %469 = vmatpush.bf16.msra.mxu0 %v1097_v0  ;;  %s1025_s14 = sshll.u32 %s1420_s26, 3  ;;  %v1133_v4 = vld [vmem:[%s1407_s2] ss:$0 sm:$0xff]  ;;  %s1183_s16 = smov 40   ;;  %vm599_vm3 = vcmask 130112   ;;  %vm662_vm4 = vcmask 195712  }
   0xd   : > { %s431_s17 = scalar_lea.vmem %s1405_s0, %s1025_s14  ;;  %s1185_s18 = smov 8   ;;  %vm725_vm5 = vcmask 261312  }
   0xe   : > { %v1280_v2 = vld [vmem:[%s431_s17] sm:$0xff]  ;;  %s1184_s17 = smov 16   ;;  %s1186_s19 = smov 24  }
   0xf   : > { %v438_v3 = vpack.c.bf16 %v1280_v2, %v1280_v2 }
  0x10   : > { %470 = vmatpush.bf16.msra.mxu0 %v1096_v1 }
  0x13   : > { %1035 = vmatmul.msk.bf16.vlgmr.msra.gmra.mxu0 %vm459_vm0, %v438_v3 }
  0x90   : > { %v472_v5 = vpop.f32.mrf.mxu0 }
  0x91   : > { %v473_v6 = vadd.f32 %v1133_v4, %v472_v5 }
  0x93   : > { %v476_v7 = vpack.c.bf16 %v473_v6, %v473_v6 }
  0x95   : > { %v478_v8 = vunpack.c.l.b16 %v476_v7 }
  0x97   : > { %v1288_v9 = vpack.c.b16 %v478_v8, %v478_v8 }
  0x98   : > { %v474_v10 = vpop.f32.mrf.mxu0 }
  0x99   : > { %540 = vrot.lane.b32.xlu2 %v1288_v9, %s1173_s20  ;;  %480 = vrot.lane.b32.xlu0 %v1288_v9, %s1174_s21 }
  0xa1   : > { %538 = vrot.lane.b32.xlu2 %v1288_v9, %s1175_s22 }
  0xa9   : > { %666 = vrot.lane.b32.xlu2 %v1288_v9, %s1176_s23 }
  0xb1   : > { %664 = vrot.lane.b32.xlu2 %v1288_v9, %s1177_s24 }
  0xb9   : > { %603 = vrot.lane.b32.xlu2 %v1288_v9, %s1178_s27 }
  0xf3   : > { %v541_v11 = vpop.permute.xlu2 %540 }
  0xf4   : > { %v546_v38 = vsel %vm482_vm1, %v541_v11, 0 }
  0xfb   : > { %v539_v12 = vpop.permute.xlu2 %538 }
 0x103   : > { %v667_v13 = vpop.permute.xlu2 %666 }
 0x104   : > { %v672_v14 = vsel %vm482_vm1, %v667_v13, 0 }
 0x105   : > { %681 = vmatpush.bf16.xpose.msra.mxu3 %v672_v14 }
 0x10b   : > { %v665_v15 = vpop.permute.xlu2 %664  ;;  %v481_v16 = vpop.permute.xlu0 %480 }
 0x10c   : > { %1042 = vmatmul.msk.bf16.vlgmr.msra.gmra.mxu3 %vm482_vm1, %v665_v15  ;;  %v487_v17 = vsel %vm482_vm1, %v481_v16, 0 }
 0x10d   : > { %496 = vmatpush.bf16.xpose.msra.mxu1 %v487_v17 }
 0x113   : > { %v604_v18 = vpop.permute.xlu2 %603 }
 0x114   : > { %1036 = vmatmul.msk.bf16.vlgmr.msra.gmra.mxu1 %vm482_vm1, %v476_v7  ;;  %v609_v19 = vsel %vm482_vm1, %v604_v18, 0 }
 0x115   : > { %618 = vmatpush.bf16.xpose.msrb.mxu0 %v609_v19 }
 0x18f   : > { %v683_v20 = vpop.f32.mrf.mxu3 }
 0x190   : > { %v687_v31 = vmul.f32 0.35355338, %v683_v20 }
 0x191   : > { %v498_v21 = vpop.f32.mrf.mxu1 }
 0x192   : > { %v502_v22 = vmul.f32 0.35355338, %v498_v21  ;;  %v688_v32 = vsel %vm482_vm1, %v687_v31, -inf }
 0x194   : > { %v503_v23 = vsel %vm482_vm1, %v502_v22, -inf }
 0x195   : > { %504 = vmax.xlane.f32.xlu0 %v503_v23 }
 0x197   : > { %v685_v24 = vpop.f32.mrf.mxu3 }
 0x199   : > { %v500_v25 = vpop.f32.mrf.mxu1 }
 0x208   : > { %v505_v26 = vpop.xlane.xlu0 %504 }
 0x209   : > { %v506_v27 = vsub.f32 %v502_v22, %v505_v26 }
 0x20b   : > { %v507_v28 = vmul.f32 1.442695, %v506_v27  ;;  %v1099_v27 = vld [vmem:[%s1408_s3 + $0x8] sm:$0xff] }
 0x20c   : > { %758 = vmatpush.bf16.msra.mxu0 %v1099_v27 }
 0x20d   : > { %1141 = vpow2.f32 %v507_v28  ;;  %v1098_v28 = vld [vmem:[%s1408_s3] sm:$0xff] }
 0x210   : > { %759 = vmatpush.bf16.msra.mxu0 %v1098_v28  ;;  %v1138_v28 = vld [vmem:[%s1415_s10] ss:$0 sm:$0xff] }
 0x213   : > { %v1142_v29 = vpop.eup %1141 }
 0x214   : > { %v509_v30 = vsel %vm482_vm1, %v1142_v29, 0.0 }
 0x215   : > { %510 = vadd.xlane.f32.xlu1 %v509_v30 }
 0x22e   : > { %515 = vrot.lane.b32.xlu1 %v1288_v9, %s1179_s28 }
 0x236   : > { %601 = vrot.lane.b32.xlu1 %v1288_v9, %s1180_s29 }
 0x260   : > { %689 = vmax.xlane.f32.xlu1 %v688_v32 }
 0x288   : > { %v511_v33 = vpop.xlane.xlu1 %510 }
 0x289   : > { %1143 = vrcp.f32 %v511_v33 }
 0x28f   : > { %v1144_v34 = vpop.eup %1143 }
 0x290   : > { %v513_v35 = vmul.f32 %v1144_v34, %v1142_v29  ;;  %v1134_v34 = vld [vmem:[%s1409_s4] ss:$0 sm:$0xff] }
 0x292   : > { %v514_v39 = vpack.c.bf16 %v513_v35, %v513_v35 }
 0x2a0   : > { %v516_v36 = vpop.permute.xlu1 %515 }
 0x2a1   : > { %v522_v37 = vsel %vm520_vm2, %v516_v36, 0 }
 0x2a2   : > { %531 = vmatpush.bf16.msra.mxu2 %v522_v37 }
 0x2a5   : > { %1037 = vmatmul.msk.bf16.vlgmr.msra.gmra.mxu2 %vm482_vm1, %v514_v39 }
 0x2a6   : > { %555 = vmatpush.bf16.xpose.msrb.mxu2 %v546_v38 }
 0x2a8   : > { %v602_v40 = vpop.permute.xlu1 %601 }
 0x2a9   : > { %1040 = vmatmul.msk.bf16.vlgmr.msrb.gmra.mxu0 %vm482_vm1, %v602_v40  ;;  %v1187_v40 = vmov 32.0  }
 0x2b5   : > { %1038 = vmatmul.msk.bf16.vlgmr.msrb.gmra.mxu2 %vm482_vm1, %v539_v12 }
 0x2d3   : > { %v690_v46 = vpop.xlane.xlu1 %689 }
 0x2d4   : > { %v691_v48 = vsub.f32 %v687_v31, %v690_v46 }
 0x2d6   : > { %v692_v49 = vmul.f32 1.442695, %v691_v48 }
 0x2d8   : > { %1145 = vpow2.f32 %v692_v49 }
 0x2de   : > { %v1146_v53 = vpop.eup %1145 }
 0x2df   : > { %v694_v55 = vsel %vm482_vm1, %v1146_v53, 0.0 }
 0x326   : > { %v620_v41 = vpop.f32.mrf.mxu0 }
 0x327   : > { %v624_v42 = vmul.f32 0.35355338, %v620_v41 }
 0x328   : > { %v533_v43 = vpop.f32.mrf.mxu2 }
 0x329   : > { %537 = vst.msk [vmem:[#allocation2] sm:$0xff] %vm482_vm1, %v533_v43  ;;  %v625_v44 = vsel %vm482_vm1, %v624_v42, -inf }
 0x32a   : > { %626 = vmax.xlane.f32.xlu0 %v625_v44 }
 0x32e   : > { %v622_v45 = vpop.f32.mrf.mxu0 }
 0x330   : > { %v535_v47 = vpop.f32.mrf.mxu2 }
 0x338   : > { %v557_v50 = vpop.f32.mrf.mxu2 }
 0x339   : > { %v561_v51 = vmul.f32 0.35355338, %v557_v50 }
 0x33b   : > { %v562_v52 = vsel %vm482_vm1, %v561_v51, -inf }
 0x33c   : > { %563 = vmax.xlane.f32.xlu2 %v562_v52  ;;  %v1100_v52 = vld [vmem:[%s1412_s7] sm:$0xff] }
 0x33e   : > { %574 = vrot.lane.b32.xlu0 %v1288_v9, %s1181_s30 }
 0x340   : > { %v559_v54 = vpop.f32.mrf.mxu2 }
 0x344   : > { %695 = vadd.xlane.f32.xlu2 %v694_v55 }
 0x35c   : > { %637 = vrot.lane.b32.xlu2 %v1288_v9, %s1182_s15 }
 0x39d   : > { %v627_v56 = vpop.xlane.xlu0 %626 }
 0x39e   : > { %v628_v57 = vsub.f32 %v624_v42, %v627_v56 }
 0x3a0   : > { %v629_v58 = vmul.f32 1.442695, %v628_v57 }
 0x3a2   : > { %1147 = vpow2.f32 %v629_v58 }
 0x3a8   : > { %v1148_v59 = vpop.eup %1147 }
 0x3a9   : > { %v631_v60 = vsel %vm482_vm1, %v1148_v59, 0.0 }
 0x3aa   : > { %632 = vadd.xlane.f32.xlu1 %v631_v60 }
 0x3af   : > { %v564_v61 = vpop.xlane.xlu2 %563 }
 0x3b0   : > { %v565_v62 = vsub.f32 %v561_v51, %v564_v61  ;;  %v575_v63 = vpop.permute.xlu0 %574  ;;  %v1101_v51 = vld [vmem:[%s1412_s7 + $0x8] sm:$0xff] }
 0x3b1   : > { %v580_v0 = vsel %vm520_vm2, %v575_v63, 0  ;;  %v1135_v63 = vld [vmem:[%s1410_s5] ss:$0 sm:$0xff] }
 0x3b2   : > { %v566_v1 = vmul.f32 1.442695, %v565_v62  ;;  %589 = vmatpush.bf16.msra.mxu2 %v580_v0 }
 0x3b4   : > { %1149 = vpow2.f32 %v566_v1  ;;  %v1136_v1 = vld [vmem:[%s1411_s6] ss:$0 sm:$0xff] }
 0x3b7   : > { %v696_v3 = vpop.xlane.xlu2 %695 }
 0x3ba   : > { %v1150_v4 = vpop.eup %1149 }
 0x3bb   : > { %v568_v5 = vsel %vm482_vm1, %v1150_v4, 0.0 }
 0x3bc   : > { %569 = vadd.xlane.f32.xlu0 %v568_v5 }
 0x3bf   : > { %v638_v6 = vpop.permute.xlu2 %637 }
 0x3c0   : > { %v643_v7 = vsel %vm520_vm2, %v638_v6, 0 }
 0x3c1   : > { %652 = vmatpush.bf16.msrb.mxu1 %v643_v7  ;;  %v1108_v7 = vld [vmem:[%s1414_s9 + $0x30] sm:$0xff] }
 0x3c5   : > { %835 = vmatpush.bf16.msra.mxu1 %v1101_v51 }
 0x3c9   : > { %836 = vmatpush.bf16.msra.mxu1 %v1100_v52 }
 0x3d0   : > { %700 = vrot.lane.b32.xlu0 %v1288_v9, %s1183_s16 }
 0x41d   : > { %v633_v8 = vpop.xlane.xlu1 %632 }
 0x41e   : > { %1151 = vrcp.f32 %v633_v8  ;;  %v1107_v8 = vld [vmem:[%s1414_s9 + $0x28] sm:$0xff] }
 0x424   : > { %v1152_v10 = vpop.eup %1151 }
 0x425   : > { %v635_v11 = vmul.f32 %v1152_v10, %v1148_v59  ;;  %v1106_v10 = vld [vmem:[%s1414_s9 + $0x20] sm:$0xff] }
 0x427   : > { %v636_v12 = vpack.c.bf16 %v635_v11, %v635_v11  ;;  %v1105_v11 = vld [vmem:[%s1414_s9 + $0x18] sm:$0xff] }
 0x429   : > { %1041 = vmatmul.msk.bf16.vlgmr.msrb.gmra.mxu1 %vm482_vm1, %v636_v12  ;;  %v1104_v12 = vld [vmem:[%s1414_s9 + $0x10] sm:$0xff] }
 0x42f   : > { %v570_v13 = vpop.xlane.xlu0 %569 }
 0x430   : > { %1153 = vrcp.f32 %v570_v13  ;;  %v1103_v13 = vld [vmem:[%s1414_s9 + $0x8] sm:$0xff] }
 0x431   : > { %1155 = vrcp.f32 %v696_v3 }
 0x432   : > { %1157 = vrcp.f32 %v1187_v40 }
 0x436   : > { %v1154_v14 = vpop.eup %1153 }
 0x437   : > { %v572_v15 = vmul.f32 %v1154_v14, %v1150_v4  ;;  %v1156_v17 = vpop.eup %1155  ;;  %v1102_v14 = vld [vmem:[%s1414_s9] sm:$0xff] }
 0x438   : > { %v698_v9 = vmul.f32 %v1156_v17, %v1146_v53  ;;  %v1158_v41 = vpop.eup %1157  ;;  %v1109_v53 = vld [vmem:[%s1414_s9 + $0x38] sm:$0xff] }
 0x439   : > { %v573_v16 = vpack.c.bf16 %v572_v15, %v572_v15  ;;  %v772_v42 = vmul.f32 32.0, %v1158_v41  ;;  %vm776_vm6 = vweird.f32 %v1158_v41  ;;  %920 = vmatpush.bf16.msrb.mxu3 %v1109_v53  ;;  %v1137_v15 = vld [vmem:[%s1413_s8] ss:$0 sm:$0xff] }
 0x43a   : > { %v699_v20 = vpack.c.bf16 %v698_v9, %v698_v9 }
 0x43b   : > { %1039 = vmatmul.msk.bf16.vlgmr.msra.gmra.mxu2 %vm482_vm1, %v573_v16  ;;  %v773_v43 = vsub.f32 1.0, %v772_v42 }
 0x43d   : > { %v774_v44 = vmul.f32 %v1158_v41, %v773_v43  ;;  %921 = vmatpush.bf16.msrb.mxu3 %v1108_v7 }
 0x43f   : > { %v775_v45 = vadd.f32 %v1158_v41, %v774_v44 }
 0x441   : > { %v1338_v46 = vsel %vm776_vm6, %v1158_v41, %v775_v45  ;;  %922 = vmatpush.bf16.msrb.mxu3 %v1107_v8 }
 0x442   : > { %v701_v18 = vpop.permute.xlu0 %700 }
 0x443   : > { %v706_v19 = vsel %vm520_vm2, %v701_v18, 0 }
 0x444   : > { %715 = vmatpush.bf16.msrb.mxu2 %v706_v19 }
 0x445   : > { %923 = vmatpush.bf16.msrb.mxu3 %v1106_v10 }
 0x449   : > { %924 = vmatpush.bf16.msrb.mxu3 %v1105_v11 }
 0x44b   : > { %1043 = vmatmul.msk.bf16.vlgmr.msrb.gmra.mxu2 %vm482_vm1, %v699_v20 }
 0x44d   : > { %925 = vmatpush.bf16.msrb.mxu3 %v1104_v12 }
 0x451   : > { %926 = vmatpush.bf16.msrb.mxu3 %v1103_v13 }
 0x455   : > { %927 = vmatpush.bf16.msrb.mxu3 %v1102_v14 }
 0x4a6   : > { %v654_v21 = vpop.f32.mrf.mxu1 }
 0x4a7   : > { %659 = vrot.lane.b32.xlu0 %v654_v21, %s1184_s17 }
 0x4ae   : > { %v656_v22 = vpop.f32.mrf.mxu1 }
 0x4be   : > { %v591_v23 = vpop.f32.mrf.mxu2 }
 0x4bf   : > { %596 = vrot.lane.b32.xlu1 %v591_v23, %s1185_s18  ;;  %s435_s18 = scalar_lea.vmem %s1418_s13, %s1025_s14 }
 0x4c6   : > { %v593_v24 = vpop.f32.mrf.mxu2 }
 0x4ce   : > { %v717_v25 = vpop.f32.mrf.mxu2 }
 0x4cf   : > { %722 = vrot.lane.b32.xlu0 %v717_v25, %s1186_s19 }
 0x4d6   : > { %v719_v26 = vpop.f32.mrf.mxu2 }
 0x519   : > { %v660_v30 = vpop.permute.xlu0 %659 }
 0x531   : > { %v597_v29 = vpop.permute.xlu1 %596 }
 0x532   : > { %600 = vst.msk [vmem:[#allocation2] sm:$0xff] %vm599_vm3, %v597_v29 }
 0x533   : > { %663 = vst.msk [vmem:[#allocation2] sm:$0xff] %vm662_vm4, %v660_v30 }
 0x541   : > { %v723_v31 = vpop.permute.xlu0 %722 }
 0x542   : > { %726 = vst.msk [vmem:[#allocation2] sm:$0xff] %vm725_vm5, %v723_v31 }
 0x549   : > { %v727_v32 = vld [vmem:[#allocation2] sm:$0xff] }
 0x54a   : > { %v728_v33 = vpack.c.bf16 %v727_v32, %v727_v32 }
 0x54c   : > { %1052 = vmatmul.msk.bf16.vlgmr.msra.gmra.mxu0 %vm459_vm0, %v728_v33 }
 0x5c9   : > { %v761_v35 = vpop.f32.mrf.mxu0 }
 0x5ca   : > { %v762_v36 = vadd.f32 %v1134_v34, %v761_v35 }
 0x5cc   : > { %v765_v37 = vadd.f32 %v762_v36, %v1280_v2 }
 0x5ce   : > { %v768_v38 = vsel %vm459_vm0, %v765_v37, 0.0 }
 0x5cf   : > { %769 = vadd.xlane.f32.xlu0 %v768_v38 }
 0x5d1   : > { %v763_v39 = vpop.f32.mrf.mxu0 }
 0x642   : > { %v770_v47 = vpop.xlane.xlu0 %769 }
 0x643   : > { %v778_v48 = vmul.f32 %v1338_v46, %v770_v47 }
 0x645   : > { %v779_v49 = vsub.f32 %v765_v37, %v778_v48 }
 0x647   : > { %v780_v50 = vmul.f32 %v779_v49, %v779_v49 }
 0x649   : > { %v781_v2 = vsel %vm459_vm0, %v780_v50, 0.0 }
 0x64a   : > { %782 = vadd.xlane.f32.xlu2 %v781_v2 }
 0x6bd   : > { %v783_v54 = vpop.xlane.xlu2 %782 }
 0x6be   : > { %v784_v55 = vmul.f32 %v783_v54, %v1338_v46 }
 0x6c0   : > { %v785_v56 = vadd.f32 1e-12, %v784_v55 }
 0x6c2   : > { %1159 = vrsqrt.f32 %v785_v56  ;;  %vm792_vm8 = vweird.f32 %v785_v56 }
 0x6c8   : > { %v1160_v57 = vpop.eup %1159 }
 0x6c9   : > { %v787_v58 = vmul.f32 %v1160_v57, %v785_v56  ;;  %vm793_vm7 = vweird.f32 %v1160_v57 }
 0x6ca   : > { %vm794_vm9 = vmor %vm792_vm8, %vm793_vm7 }
 0x6cb   : > { %v788_v59 = vmul.f32 %v1160_v57, %v787_v58 }
 0x6cd   : > { %v789_v60 = vmul.f32 0.5, %v788_v59 }
 0x6cf   : > { %v790_v61 = vsub.f32 1.5, %v789_v60 }
 0x6d1   : > { %v791_v62 = vmul.f32 %v1160_v57, %v790_v61 }
 0x6d3   : > { %v795_v0 = vsel %vm794_vm9, %v1160_v57, %v791_v62 }
 0x6d4   : > { %v796_v3 = vmul.f32 %v795_v0, %v779_v49  ;;  %v1139_v49 = vld [vmem:[%s1416_s11] ss:$0 sm:$0xff] }
 0x6d6   : > { %v800_v4 = vmul.f32 %v1135_v63, %v796_v3 }
 0x6d8   : > { %v804_v5 = vadd.f32 %v1136_v1, %v800_v4 }
 0x6da   : > { %v805_v6 = vpack.c.bf16 %v804_v5, %v804_v5 }
 0x6dc   : > { %1061 = vmatmul.msk.bf16.vlgmr.msra.gmra.mxu1 %vm459_vm0, %v805_v6 }
 0x759   : > { %v838_v16 = vpop.f32.mrf.mxu1 }
 0x75a   : > { %v839_v17 = vadd.f32 %v1137_v15, %v838_v16 }
 0x75c   : > { %v842_v18 = vmul.f32 %v839_v17, %v839_v17 }
 0x75e   : > { %v843_v19 = vmul.f32 %v842_v18, %v839_v17 }
 0x760   : > { %v844_v9 = vmul.f32 0.044715, %v843_v19 }
 0x761   : > { %v840_v20 = vpop.f32.mrf.mxu1 }
 0x762   : > { %v845_v21 = vadd.f32 %v844_v9, %v839_v17 }
 0x764   : > { %v846_v22 = vmul.f32 0.7978846, %v845_v21 }
 0x766   : > { %1161 = vtanh.f32 %v846_v22 }
 0x76c   : > { %v1162_v23 = vpop.eup %1161 }
 0x76d   : > { %v848_v24 = vadd.f32 1.0, %v1162_v23 }
 0x76f   : > { %v849_v25 = vmul.f32 0.5, %v848_v24 }
 0x771   : > { %v850_v26 = vmul.f32 %v849_v25, %v839_v17 }
 0x773   : > { %v851_v27 = vpack.c.bf16 %v850_v26, %v850_v26 }
 0x775   : > { %928 = vmatmul.bf16.vlgmr.msrb.gmra.mxu3 %v851_v27 }
 0x7f8   : > { %v929_v29 = vpop.f32.mrf.mxu3 }
 0x7f9   : > { %v930_v30 = vadd.f32 %v1138_v28, %v929_v29 }
 0x7fb   : > { %v933_v31 = vadd.f32 %v930_v30, %v804_v5 }
 0x7fd   : > { %v936_v32 = vsel %vm459_vm0, %v933_v31, 0.0 }
 0x7fe   : > { %937 = vadd.xlane.f32.xlu1 %v936_v32 }
 0x800   : > { %v931_v33 = vpop.f32.mrf.mxu3 }
 0x871   : > { %v938_v34 = vpop.xlane.xlu1 %937 }
 0x872   : > { %v939_v35 = vmul.f32 %v938_v34, %v1338_v46 }
 0x874   : > { %v940_v36 = vsub.f32 %v933_v31, %v939_v35 }
 0x876   : > { %v941_v37 = vmul.f32 %v940_v36, %v940_v36 }
 0x878   : > { %v942_v38 = vsel %vm459_vm0, %v941_v37, 0.0 }
 0x879   : > { %943 = vadd.xlane.f32.xlu0 %v942_v38 }
 0x8ec   : > { %v944_v39 = vpop.xlane.xlu0 %943 }
 0x8ed   : > { %v945_v40 = vmul.f32 %v944_v39, %v1338_v46  ;;  %v1140_v46 = vld [vmem:[%s1417_s12] ss:$0 sm:$0xff] }
 0x8ef   : > { %v946_v41 = vadd.f32 1e-12, %v945_v40 }
 0x8f1   : > { %1163 = vrsqrt.f32 %v946_v41  ;;  %vm953_vm11 = vweird.f32 %v946_v41 }
 0x8f7   : > { %v1164_v42 = vpop.eup %1163 }
 0x8f8   : > { %v948_v43 = vmul.f32 %v1164_v42, %v946_v41  ;;  %vm954_vm10 = vweird.f32 %v1164_v42 }
 0x8f9   : > { %vm955_vm12 = vmor %vm953_vm11, %vm954_vm10 }
 0x8fa   : > { %v949_v44 = vmul.f32 %v1164_v42, %v948_v43 }
 0x8fc   : > { %v950_v45 = vmul.f32 0.5, %v949_v44 }
 0x8fe   : > { %v951_v47 = vsub.f32 1.5, %v950_v45 }
 0x900   : > { %v952_v48 = vmul.f32 %v1164_v42, %v951_v47 }
 0x902   : > { %v956_v50 = vsel %vm955_vm12, %v1164_v42, %v952_v48 }
 0x903   : > { %v957_v2 = vmul.f32 %v956_v50, %v940_v36 }
 0x905   : > { %v961_v51 = vmul.f32 %v1139_v49, %v957_v2 }
 0x907   : > { %v965_v52 = vadd.f32 %v1140_v46, %v961_v51 }
 0x909   : > { %966 = vst.msk [vmem:[%s435_s18] sm:$0xff] %vm459_vm0, %v965_v52 }
 0x90a PF: > { %s23_s25 = sadd.s32 1, %s1171_s25  }
 0x90b   : > { %p20_p4 = scmp.ge.s32.totalorder %s23_s25, 4  }
 0x90d   :  { %22 = sbr.rel (!%p20_p4) target bundleno = 1 (0x1), region = 102 }

// kernel: text_diffusion_forward.14
= control target key start
LH: loop header
LB: loop body
LE: loop exit
PB: predicated region body
PF: predicated region fallthrough
CT: control target
= control target key end

     0   :  { %s672_s15 = smov 0   ;;  %s744_s0 = inlined_call_operand.vmem [shape: f32[2,3,64], index: 0, kind: input, shape index: {}]   ;;  %s745_s1 = inlined_call_operand.vmem [shape: f32[2,3,64], index: 1, kind: input, shape index: {}]   ;;  %s746_s2 = inlined_call_operand.vmem [shape: bf16[3,64,128], index: 2, kind: input, shape index: {}]   ;;  %s747_s3 = inlined_call_operand.vmem [shape: f32[1,1,128], index: 3, kind: input, shape index: {}]   ;;  %s748_s4 = inlined_call_operand.vmem [shape: f32[2,2,128], index: 4, kind: output, shape index: {}]  }
   0x1 LB: > { %s527_s16 = sadd.s32 4294967295, %s645_s15   ;;  %p531_p0 = scmp.ge.s32.totalorder %s645_s15, 1  ;;  %s645_s15 = sphi %s672_s15, %s14_s15  }
   0x2   : > { %p170_p1 = scmp.lt.s32.totalorder %s645_s15, 3 }
   0x4   : > { %p171_p2 = pnand %p531_p0, %p170_p1 }
   0x5   : > { %p198_p3 = scmp.lt.s32.totalorder (!%p171_p2), %s527_s16, 1 }
   0x6   : > { %174 = sbr.rel (%p171_p2) target bundleno = 208 (0xd0), region = 36 }
   0xb   : > { %v616_v0 = vld [vmem:[%s746_s2 + $0x38] sm:$0xff]  ;;  %v615_v3 = vld [vmem:[%s746_s2 + $0x30] sm:$0xff]  ;;  %s750_s16 = smov (!%p198_p3, %s527_s16), 1  ;;  %v614_v6 = vld [vmem:[%s746_s2 + $0x28] sm:$0xff]  ;;  %vm269_vm0 = vcmask 523264  }
   0xc   : > { %v612_v1 = vld [vmem:[%s746_s2 + $0x18] sm:$0xff]  ;;  %277 = vmatpush.bf16.msra.mxu0 %v616_v0  ;;  %v611_v4 = vld [vmem:[%s746_s2 + $0x10] sm:$0xff]  ;;  %396 = vmatpush.bf16.msra.mxu3 %v616_v0  ;;  %s532_s29 = sshll.u32 %s750_s16, 2  ;;  %v610_v7 = vld [vmem:[%s746_s2 + $0x8] sm:$0xff]  ;;  %s534_s28 = sshll.u32 %s750_s16, 1 }
   0xd   : > { %v620_v2 = vld [vmem:[%s746_s2 + $0x58] sm:$0xff]  ;;  %317 = vmatpush.bf16.msra.mxu1 %v612_v1  ;;  %v619_v5 = vld [vmem:[%s746_s2 + $0x50] sm:$0xff]  ;;  %v618_v8 = vld [vmem:[%s746_s2 + $0x48] sm:$0xff]  ;;  %s205_s12 = scalar_lea.vmem %s745_s1, %s532_s29  ;;  %s201_s17 = scalar_lea.vmem %s744_s0, %s532_s29 }
   0xe   : > { %357 = vmatpush.bf16.msra.mxu2 %v620_v2  ;;  %v613_v9 = vld [vmem:[%s746_s2 + $0x20] sm:$0xff]  ;;  %s209_s5 = scalar_lea.vmem %s748_s4, %s534_s28 }
   0xf   : > { %v609_v10 = vld [vmem:[%s746_s2] sm:$0xff] }
  0x10   : > { %278 = vmatpush.bf16.msra.mxu0 %v615_v3  ;;  %397 = vmatpush.bf16.msra.mxu3 %v615_v3  ;;  %v215_v11 = vld [vmem:[%s205_s12] sm:$0x3] }
  0x11   : > { %318 = vmatpush.bf16.msra.mxu1 %v611_v4  ;;  %v211_v12 = vld [vmem:[%s201_s17] sm:$0x3]  ;;  %v216_v15 = vpack.c.bf16 %v215_v11, %v215_v11 }
  0x12   : > { %358 = vmatpush.bf16.msra.mxu2 %v619_v5  ;;  %v617_v13 = vld [vmem:[%s746_s2 + $0x40] sm:$0xff]  ;;  %v212_v16 = vpack.c.bf16 %v211_v12, %v211_v12 }
  0x13   : > { %v213_v14 = vld [vmem:[%s201_s17 + $0x1] sm:$0x3]  ;;  %v629_v23 = vld [vmem:[%s747_s3] ss:$0 sm:$0xff] }
  0x14   : > { %279 = vmatpush.bf16.msra.mxu0 %v614_v6  ;;  %398 = vmatpush.bf16.msra.mxu3 %v614_v6  ;;  %v214_v17 = vpack.c.bf16 %v213_v14, %v213_v14  ;;  %v217_v18 = vld [vmem:[%s205_s12 + $0x1] sm:$0x3]  ;;  %v630_v36 = vld [vmem:[%s747_s3] ss:$0 sm:$0xff] }
  0x15   : > { %319 = vmatpush.bf16.msra.mxu1 %v610_v7  ;;  %v218_v19 = vpack.c.bf16 %v217_v18, %v217_v18 }
  0x16   : > { %359 = vmatpush.bf16.msra.mxu2 %v618_v8 }
  0x18   : > { %280 = vmatpush.bf16.msra.mxu0 %v613_v9  ;;  %399 = vmatpush.bf16.msra.mxu3 %v613_v9 }
  0x19   : > { %320 = vmatpush.bf16.msra.mxu1 %v609_v10 }
  0x1a   : > { %360 = vmatpush.bf16.msra.mxu2 %v617_v13 }
  0x1b   : > { %567 = vmatmul.msk.bf16.vlgmr.msra.gmra.mxu0 %vm269_vm0, %v216_v15  ;;  %603 = vmatmul.msk.bf16.vlgmr.msra.gmra.mxu3 %vm269_vm0, %v214_v17 }
  0x1c   : > { %409 = vmatpush.bf16.msrb.mxu0 %v612_v1  ;;  %584 = vmatmul.msk.bf16.vlgmr.msra.gmra.mxu1 %vm269_vm0, %v212_v16 }
  0x1d   : > { %425 = vmatpush.bf16.msrb.mxu1 %v620_v2  ;;  %601 = vmatmul.msk.bf16.vlgmr.msra.gmra.mxu2 %vm269_vm0, %v214_v17 }
  0x20   : > { %410 = vmatpush.bf16.msrb.mxu0 %v611_v4 }
  0x21   : > { %426 = vmatpush.bf16.msrb.mxu1 %v619_v5 }
  0x24   : > { %411 = vmatpush.bf16.msrb.mxu0 %v610_v7 }
  0x25   : > { %427 = vmatpush.bf16.msrb.mxu1 %v618_v8 }
  0x28   : > { %412 = vmatpush.bf16.msrb.mxu0 %v609_v10 }
  0x29   : > { %428 = vmatpush.bf16.msrb.mxu1 %v617_v13 }
  0x2b   : > { %604 = vmatmul.msk.bf16.vlgmr.msrb.gmra.mxu0 %vm269_vm0, %v216_v15 }
  0x2c   : > { %605 = vmatmul.msk.bf16.vlgmr.msrb.gmra.mxu1 %vm269_vm0, %v218_v19 }
  0x98   : > { %v282_v20 = vpop.f32.mrf.mxu0 }
  0x99   : > { %v322_v21 = vpop.f32.mrf.mxu1 }
  0x9a   : > { %v323_v22 = vadd.f32 %v322_v21, %v282_v20 }
  0x9e   : > { %v401_v25 = vpop.f32.mrf.mxu3 }
  0xa0   : > { %v362_v24 = vpop.f32.mrf.mxu2  ;;  %v284_v27 = vpop.f32.mrf.mxu0 }
  0xa1   : > { %v366_v26 = vadd.f32 %v362_v24, %v323_v22  ;;  %v324_v28 = vpop.f32.mrf.mxu1 }
  0xa3   : > { %v371_v29 = vadd.f32 %v629_v23, %v366_v26 }
  0xa5   : > { %v602_v30 = vmul.f32 -1.442695, %v371_v29 }
  0xa6   : > { %v403_v31 = vpop.f32.mrf.mxu3 }
  0xa7   : > { %631 = vpow2.f32 %v602_v30 }
  0xa8   : > { %v364_v32 = vpop.f32.mrf.mxu2  ;;  %v414_v33 = vpop.f32.mrf.mxu0 }
  0xa9   : > { %v430_v34 = vpop.f32.mrf.mxu1  ;;  %v415_v35 = vadd.f32 %v414_v33, %v401_v25 }
  0xab   : > { %v434_v37 = vadd.f32 %v430_v34, %v415_v35 }
  0xad   : > { %v632_v38 = vpop.eup %631  ;;  %v439_v40 = vadd.f32 %v630_v36, %v434_v37 }
  0xae   : > { %v375_v39 = vadd.f32 1.0, %v632_v38 }
  0xaf   : > { %v606_v41 = vmul.f32 -1.442695, %v439_v40 }
  0xb0   : > { %633 = vrcp.f32 %v375_v39  ;;  %v416_v42 = vpop.f32.mrf.mxu0  ;;  %v387_v53 = vand.u32 2147483648, %v375_v39  ;;  %vm381_vm2 = vweird.f32 %v375_v39  ;;  %v385_v54 = vand.u32 2147483647, %v375_v39 }
  0xb1   : > { %v432_v43 = vpop.f32.mrf.mxu1  ;;  %635 = vpow2.f32 %v606_v41 }
  0xb2   : > { %v388_v60 = vor.u32 1.1754944e-38, %v387_v53  ;;  %vm386_vm5 = vcmp.eq.f32.partialorder %v385_v54, 8.507059e+37 }
  0xb6   : > { %v634_v44 = vpop.eup %633 }
  0xb7   : > { %v377_v45 = vmul.f32 %v634_v44, %v375_v39  ;;  %v636_v46 = vpop.eup %635  ;;  %vm382_vm1 = vweird.f32 %v634_v44 }
  0xb8   : > { %v443_v47 = vadd.f32 1.0, %v636_v46  ;;  %vm383_vm3 = vmor %vm381_vm2, %vm382_vm1 }
  0xb9   : > { %v378_v48 = vsub.f32 1.0, %v377_v45 }
  0xba   : > { %637 = vrcp.f32 %v443_v47  ;;  %v455_v56 = vand.u32 2147483648, %v443_v47  ;;  %v453_v59 = vand.u32 2147483647, %v443_v47  ;;  %vm449_vm6 = vweird.f32 %v443_v47 }
  0xbb   : > { %v379_v49 = vmul.f32 %v634_v44, %v378_v48 }
  0xbc   : > { %v456_v63 = vor.u32 1.1754944e-38, %v455_v56  ;;  %vm454_vm8 = vcmp.eq.f32.partialorder %v453_v59, 8.507059e+37 }
  0xbd   : > { %v380_v51 = vadd.f32 %v634_v44, %v379_v49 }
  0xbf   : > { %v384_v57 = vsel %vm383_vm3, %v634_v44, %v380_v51 }
  0xc0   : > { %v638_v50 = vpop.eup %637  ;;  %v389_v62 = vsel %vm386_vm5, %v388_v60, %v384_v57 }
  0xc1   : > { %v445_v52 = vmul.f32 %v638_v50, %v443_v47  ;;  %vm450_vm4 = vweird.f32 %v638_v50  ;;  %v391_v2 = vmul.f32 %v389_v62, %v371_v29 }
  0xc2   : > { %vm451_vm7 = vmor %vm449_vm6, %vm450_vm4 }
  0xc3   : > { %v446_v55 = vsub.f32 1.0, %v445_v52 }
  0xc5   : > { %v447_v58 = vmul.f32 %v638_v50, %v446_v55 }
  0xc7   : > { %v448_v61 = vadd.f32 %v638_v50, %v447_v58 }
  0xc9   : > { %v452_v0 = vsel %vm451_vm7, %v638_v50, %v448_v61 }
  0xca   : > { %v457_v1 = vsel %vm454_vm8, %v456_v63, %v452_v0 }
  0xcb   : > { %v459_v3 = vmul.f32 %v457_v1, %v439_v40 }
  0xcd   : > { %v460_v4 = vmax.f32 %v391_v2, %v459_v3 }
  0xcf   : > { %461 = vst [vmem:[%s209_s5] sm:$0x3] %v460_v4 }
  0xd0 PF: > { %s14_s15 = sadd.s32 1, %s645_s15  }
  0xd1   : > { %p11_p4 = scmp.ge.s32.totalorder %s14_s15, 4  }
  0xd3   :  { %13 = sbr.rel (!%p11_p4) target bundleno = 1 (0x1), region = 71 }

// kernel: text_diffusion_forward.15
= control target key start
LH: loop header
LB: loop body
LE: loop exit
PB: predicated region body
PF: predicated region fallthrough
CT: control target
= control target key end

     0   :  { %s1156_s18 = smov 0   ;;  %s1331_s0 = inlined_call_operand.vmem [shape: f32[2,6,128], index: 0, kind: input, shape index: {}]   ;;  %s1332_s1 = inlined_call_operand.vmem [shape: bf16[3,128,128], index: 1, kind: input, shape index: {}]   ;;  %s1333_s2 = inlined_call_operand.vmem [shape: f32[1,1,128], index: 2, kind: input, shape index: {}]   ;;  %s1334_s3 = inlined_call_operand.vmem [shape: bf16[3,128,128], index: 3, kind: input, shape index: {}]   ;;  %s1335_s4 = inlined_call_operand.vmem [shape: f32[1,1,128], index: 4, kind: input, shape index: {}]   ;;  %s1336_s5 = inlined_call_operand.vmem [shape: f32[2,2,128], index: 5, kind: output, shape index: {}]  }
   0x1 LB: > { %s788_s19 = sadd.s32 4294967295, %s1123_s18   ;;  %p792_p0 = scmp.ge.s32.totalorder %s1123_s18, 1  ;;  %s1123_s18 = sphi %s1156_s18, %s15_s18  }
   0x2   : > { %p186_p1 = scmp.lt.s32.totalorder %s1123_s18, 3 }
   0x4   : > { %p187_p2 = pnand %p792_p0, %p186_p1 }
   0x5   : > { %p212_p3 = scmp.lt.s32.totalorder (!%p187_p2), %s788_s19, 1 }
   0x6   : > { %190 = sbr.rel (%p187_p2) target bundleno = 359 (0x167), region = 40 }
   0xb   : > { %v1061_v0 = vld [vmem:[%s1332_s1 + $0x38] sm:$0xff]  ;;  %v1060_v3 = vld [vmem:[%s1332_s1 + $0x30] sm:$0xff]  ;;  %v1059_v6 = vld [vmem:[%s1332_s1 + $0x28] sm:$0xff]  ;;  %s1338_s19 = smov (!%p212_p3, %s788_s19), 1  ;;  %v1125_v54 = vmov 0.0  }
   0xc   : > { %v1069_v1 = vld [vmem:[%s1332_s1 + $0x78] sm:$0xff]  ;;  %287 = vmatpush.bf16.msra.mxu0 %v1061_v0  ;;  %v1068_v4 = vld [vmem:[%s1332_s1 + $0x70] sm:$0xff]  ;;  %v1067_v7 = vld [vmem:[%s1332_s1 + $0x68] sm:$0xff]  ;;  %s793_s8 = sshll.u32 %s1338_s19, 3  ;;  %486 = vst [vmem:[#allocation2] sm:$0xf] %v1125_v54 }
   0xd   : > { %v1077_v2 = vld [vmem:[%s1332_s1 + $0xb8] sm:$0xff]  ;;  %371 = vmatpush.bf16.msra.mxu1 %v1069_v1  ;;  %v1076_v5 = vld [vmem:[%s1332_s1 + $0xb0] sm:$0xff]  ;;  %v1075_v8 = vld [vmem:[%s1332_s1 + $0xa8] sm:$0xff]  ;;  %s215_s17 = scalar_lea.vmem %s1331_s0, %s793_s8  ;;  %s794_s7 = sshll.u32 %s1338_s19, 1 }
   0xe   : > { %452 = vmatpush.bf16.msra.mxu2 %v1077_v2  ;;  %v1058_v9 = vld [vmem:[%s1332_s1 + $0x20] sm:$0xff]  ;;  %v1057_v12 = vld [vmem:[%s1332_s1 + $0x18] sm:$0xff]  ;;  %v1056_v15 = vld [vmem:[%s1332_s1 + $0x10] sm:$0xff]  ;;  %s219_s10 = scalar_lea.vmem %s1336_s5, %s794_s7 }
   0xf   : > { %v1066_v10 = vld [vmem:[%s1332_s1 + $0x60] sm:$0xff]  ;;  %v1065_v13 = vld [vmem:[%s1332_s1 + $0x58] sm:$0xff]  ;;  %v1064_v16 = vld [vmem:[%s1332_s1 + $0x50] sm:$0xff] }
  0x10   : > { %288 = vmatpush.bf16.msra.mxu0 %v1060_v3  ;;  %v1074_v11 = vld [vmem:[%s1332_s1 + $0xa0] sm:$0xff]  ;;  %v1073_v14 = vld [vmem:[%s1332_s1 + $0x98] sm:$0xff]  ;;  %v1072_v17 = vld [vmem:[%s1332_s1 + $0x90] sm:$0xff] }
  0x11   : > { %372 = vmatpush.bf16.msra.mxu1 %v1068_v4  ;;  %v1055_v18 = vld [vmem:[%s1332_s1 + $0x8] sm:$0xff]  ;;  %v1054_v21 = vld [vmem:[%s1332_s1] sm:$0xff]  ;;  %v1085_v30 = vld [vmem:[%s1334_s3 + $0x38] sm:$0xff] }
  0x12   : > { %453 = vmatpush.bf16.msra.mxu2 %v1076_v5  ;;  %v1063_v19 = vld [vmem:[%s1332_s1 + $0x48] sm:$0xff]  ;;  %v1062_v22 = vld [vmem:[%s1332_s1 + $0x40] sm:$0xff]  ;;  %v1093_v31 = vld [vmem:[%s1334_s3 + $0x78] sm:$0xff]  ;;  %555 = vmatpush.bf16.msra.mxu3 %v1085_v30 }
  0x13   : > { %v1071_v20 = vld [vmem:[%s1332_s1 + $0x88] sm:$0xff]  ;;  %v221_v23 = vld [vmem:[%s215_s17] sm:$0x3]  ;;  %v304_v24 = vld [vmem:[%s215_s17 + $0x2] sm:$0x3] }
  0x14   : > { %289 = vmatpush.bf16.msra.mxu0 %v1059_v6  ;;  %v1070_v25 = vld [vmem:[%s1332_s1 + $0x80] sm:$0xff]  ;;  %v222_v27 = vpack.c.bf16 %v221_v23, %v221_v23  ;;  %v305_v28 = vpack.c.bf16 %v304_v24, %v304_v24  ;;  %v1101_v32 = vld [vmem:[%s1334_s3 + $0xb8] sm:$0xff]  ;;  %v1084_v33 = vld [vmem:[%s1334_s3 + $0x30] sm:$0xff] }
  0x15   : > { %373 = vmatpush.bf16.msra.mxu1 %v1067_v7  ;;  %v385_v26 = vld [vmem:[%s215_s17 + $0x4] sm:$0x3]  ;;  %v1092_v34 = vld [vmem:[%s1334_s3 + $0x70] sm:$0xff]  ;;  %v1083_v36 = vld [vmem:[%s1334_s3 + $0x28] sm:$0xff] }
  0x16   : > { %454 = vmatpush.bf16.msra.mxu2 %v1075_v8  ;;  %v386_v29 = vpack.c.bf16 %v385_v26, %v385_v26  ;;  %v1100_v35 = vld [vmem:[%s1334_s3 + $0xb0] sm:$0xff]  ;;  %556 = vmatpush.bf16.msra.mxu3 %v1084_v33  ;;  %v1091_v37 = vld [vmem:[%s1334_s3 + $0x68] sm:$0xff]  ;;  %v1111_v39 = vld [vmem:[%s1333_s2] ss:$0 sm:$0xff] }
  0x17   : > { %v1099_v38 = vld [vmem:[%s1334_s3 + $0xa8] sm:$0xff]  ;;  %v1082_v40 = vld [vmem:[%s1334_s3 + $0x20] sm:$0xff]  ;;  %v1081_v46 = vld [vmem:[%s1334_s3 + $0x18] sm:$0xff] }
  0x18   : > { %290 = vmatpush.bf16.msra.mxu0 %v1058_v9  ;;  %v1090_v41 = vld [vmem:[%s1334_s3 + $0x60] sm:$0xff]  ;;  %v1089_v47 = vld [vmem:[%s1334_s3 + $0x58] sm:$0xff]  ;;  %v1080_v50 = vld [vmem:[%s1334_s3 + $0x10] sm:$0xff] }
  0x19   : > { %374 = vmatpush.bf16.msra.mxu1 %v1066_v10  ;;  %v1098_v42 = vld [vmem:[%s1334_s3 + $0xa0] sm:$0xff]  ;;  %v1097_v48 = vld [vmem:[%s1334_s3 + $0x98] sm:$0xff]  ;;  %v1088_v51 = vld [vmem:[%s1334_s3 + $0x50] sm:$0xff] }
  0x1a   : > { %455 = vmatpush.bf16.msra.mxu2 %v1074_v11  ;;  %557 = vmatpush.bf16.msra.mxu3 %v1083_v36  ;;  %v1096_v52 = vld [vmem:[%s1334_s3 + $0x90] sm:$0xff]  ;;  %v1079_v58 = vld [vmem:[%s1334_s3 + $0x8] sm:$0xff]  ;;  %v1078_v62 = vld [vmem:[%s1334_s3] sm:$0xff] }
  0x1b   : > { %v1087_v59 = vld [vmem:[%s1334_s3 + $0x48] sm:$0xff]  ;;  %v1086_v63 = vld [vmem:[%s1334_s3 + $0x40] sm:$0xff] }
  0x1c   : > { %291 = vmatpush.bf16.msra.mxu0 %v1057_v12  ;;  %v1095_v60 = vld [vmem:[%s1334_s3 + $0x88] sm:$0xff]  ;;  %v1094_v0 = vld [vmem:[%s1334_s3 + $0x80] sm:$0xff] }
  0x1d   : > { %375 = vmatpush.bf16.msra.mxu1 %v1065_v13  ;;  %v1112_v23 = vld [vmem:[%s1335_s4] ss:$0 sm:$0xff] }
  0x1e   : > { %456 = vmatpush.bf16.msra.mxu2 %v1073_v14  ;;  %558 = vmatpush.bf16.msra.mxu3 %v1082_v40 }
  0x20   : > { %292 = vmatpush.bf16.msra.mxu0 %v1056_v15 }
  0x21   : > { %376 = vmatpush.bf16.msra.mxu1 %v1064_v16 }
  0x22   : > { %457 = vmatpush.bf16.msra.mxu2 %v1072_v17  ;;  %559 = vmatpush.bf16.msra.mxu3 %v1081_v46 }
  0x24   : > { %293 = vmatpush.bf16.msra.mxu0 %v1055_v18 }
  0x25   : > { %377 = vmatpush.bf16.msra.mxu1 %v1063_v19 }
  0x26   : > { %458 = vmatpush.bf16.msra.mxu2 %v1071_v20  ;;  %560 = vmatpush.bf16.msra.mxu3 %v1080_v50 }
  0x28   : > { %294 = vmatpush.bf16.msra.mxu0 %v1054_v21 }
  0x29   : > { %378 = vmatpush.bf16.msra.mxu1 %v1062_v22 }
  0x2a   : > { %459 = vmatpush.bf16.msra.mxu2 %v1070_v25  ;;  %561 = vmatpush.bf16.msra.mxu3 %v1079_v58 }
  0x2b   : > { %295 = vmatmul.bf16.vlgmr.msra.gmra.mxu0 %v222_v27 }
  0x2c   : > { %379 = vmatmul.bf16.vlgmr.msra.gmra.mxu1 %v305_v28  ;;  %639 = vmatpush.bf16.msrb.mxu0 %v1093_v31 }
  0x2d   : > { %460 = vmatmul.bf16.vlgmr.msra.gmra.mxu2 %v386_v29  ;;  %720 = vmatpush.bf16.msrb.mxu1 %v1101_v32 }
  0x2e   : > { %562 = vmatpush.bf16.msra.mxu3 %v1078_v62 }
  0x30   : > { %640 = vmatpush.bf16.msrb.mxu0 %v1092_v34 }
  0x31   : > { %721 = vmatpush.bf16.msrb.mxu1 %v1100_v35 }
  0x34   : > { %641 = vmatpush.bf16.msrb.mxu0 %v1091_v37 }
  0x35   : > { %722 = vmatpush.bf16.msrb.mxu1 %v1099_v38 }
  0x38   : > { %642 = vmatpush.bf16.msrb.mxu0 %v1090_v41 }
  0x39   : > { %723 = vmatpush.bf16.msrb.mxu1 %v1098_v42 }
  0x3c   : > { %643 = vmatpush.bf16.msrb.mxu0 %v1089_v47 }
  0x3d   : > { %724 = vmatpush.bf16.msrb.mxu1 %v1097_v48 }
  0x40   : > { %644 = vmatpush.bf16.msrb.mxu0 %v1088_v51 }
  0x41   : > { %725 = vmatpush.bf16.msrb.mxu1 %v1096_v52 }
  0x44   : > { %645 = vmatpush.bf16.msrb.mxu0 %v1087_v59 }
  0x45   : > { %726 = vmatpush.bf16.msrb.mxu1 %v1095_v60 }
  0x48   : > { %646 = vmatpush.bf16.msrb.mxu0 %v1086_v63 }
  0x49   : > { %727 = vmatpush.bf16.msrb.mxu1 %v1094_v0 }
  0xa8   : > { %v296_v43 = vpop.f32.mrf.mxu0 }
  0xa9   : > { %v380_v44 = vpop.f32.mrf.mxu1  ;;  %v303_v45 = vadd.f32 %v1111_v39, %v296_v43 }
  0xab   : > { %v384_v49 = vadd.f32 %v380_v44, %v303_v45 }
  0xb0   : > { %v461_v53 = vpop.f32.mrf.mxu2  ;;  %v298_v56 = vpop.f32.mrf.mxu0 }
  0xb1   : > { %v465_v55 = vadd.f32 %v461_v53, %v384_v49  ;;  %v382_v57 = vpop.f32.mrf.mxu1 }
  0xb3   : > { %v923_v61 = vmul.f32 -1.442695, %v465_v55 }
  0xb5   : > { %1113 = vpow2.f32 %v923_v61 }
  0xb8   : > { %v463_v1 = vpop.f32.mrf.mxu2 }
  0xbb   : > { %v1114_v2 = vpop.eup %1113 }
  0xbc   : > { %v469_v3 = vadd.f32 1.0, %v1114_v2 }
  0xbe   : > { %1115 = vrcp.f32 %v469_v3  ;;  %v481_v7 = vand.u32 2147483648, %v469_v3  ;;  %v479_v9 = vand.u32 2147483647, %v469_v3  ;;  %vm475_vm1 = vweird.f32 %v469_v3 }
  0xc0   : > { %v482_v11 = vor.u32 1.1754944e-38, %v481_v7  ;;  %vm480_vm3 = vcmp.eq.f32.partialorder %v479_v9, 8.507059e+37 }
  0xc4   : > { %v1116_v4 = vpop.eup %1115 }
  0xc5   : > { %v471_v5 = vmul.f32 %v1116_v4, %v469_v3  ;;  %vm476_vm0 = vweird.f32 %v1116_v4 }
  0xc6   : > { %vm477_vm2 = vmor %vm475_vm1, %vm476_vm0 }
  0xc7   : > { %v472_v6 = vsub.f32 1.0, %v471_v5 }
  0xc9   : > { %v473_v8 = vmul.f32 %v1116_v4, %v472_v6 }
  0xcb   : > { %v474_v10 = vadd.f32 %v1116_v4, %v473_v8 }
  0xcd   : > { %v478_v12 = vsel %vm477_vm2, %v1116_v4, %v474_v10 }
  0xce   : > { %v483_v13 = vsel %vm480_vm3, %v482_v11, %v478_v12 }
  0xcf   : > { %v485_v14 = vmul.f32 %v483_v13, %v465_v55 }
  0xd1   : > { %487 = vst [vmem:[#allocation2 + $0x1] sm:$0x3] %v485_v14 }
  0xd8   : > { %v489_v15 = vld [vmem:[#allocation2] sm:$0x3]  ;;  %v653_v17 = vld [vmem:[#allocation2 + $0x2] sm:$0x3] }
  0xd9   : > { %v572_v16 = vld [vmem:[#allocation2 + $0x1] sm:$0x3]  ;;  %v490_v18 = vpack.c.bf16 %v489_v15, %v489_v15  ;;  %v654_v20 = vpack.c.bf16 %v653_v17, %v653_v17 }
  0xda   : > { %v573_v19 = vpack.c.bf16 %v572_v16, %v572_v16 }
  0xdb   : > { %563 = vmatmul.bf16.vlgmr.msra.gmra.mxu3 %v490_v18  ;;  %728 = vmatmul.bf16.vlgmr.msrb.gmra.mxu1 %v654_v20 }
  0xdc   : > { %647 = vmatmul.bf16.vlgmr.msrb.gmra.mxu0 %v573_v19 }
 0x158   : > { %v729_v22 = vpop.f32.mrf.mxu1 }
 0x159   : > { %v648_v21 = vpop.f32.mrf.mxu0 }
 0x15e   : > { %v564_v24 = vpop.f32.mrf.mxu3 }
 0x15f   : > { %v571_v25 = vadd.f32 %v1112_v23, %v564_v24 }
 0x160   : > { %v731_v28 = vpop.f32.mrf.mxu1 }
 0x161   : > { %v650_v26 = vpop.f32.mrf.mxu0  ;;  %v652_v27 = vadd.f32 %v648_v21, %v571_v25 }
 0x163   : > { %v733_v29 = vadd.f32 %v729_v22, %v652_v27 }
 0x165   : > { %734 = vst [vmem:[%s219_s10] sm:$0x3] %v733_v29 }
 0x166   : > { %v566_v30 = vpop.f32.mrf.mxu3 }
 0x167 PF: > { %s15_s18 = sadd.s32 1, %s1123_s18  }
 0x168   : > { %p12_p4 = scmp.ge.s32.totalorder %s15_s18, 4  }
 0x16a   :  { %14 = sbr.rel (!%p12_p4) target bundleno = 1 (0x1), region = 74 }

// kernel: text_diffusion_forward.16
= control target key start
LH: loop header
LB: loop body
LE: loop exit
PB: predicated region body
PF: predicated region fallthrough
CT: control target
= control target key end

     0   :  { %s1210_s18 = smov 0   ;;  %s1396_s0 = inlined_call_operand.vmem [shape: f32[2,3,128], index: 0, kind: input, shape index: {}, may-alias: {0,1}]   ;;  %s1397_s1 = inlined_call_operand.vmem [shape: f32[2,3,128], index: 1, kind: input, shape index: {}, may-alias: {0,1}]   ;;  %s1398_s2 = inlined_call_operand.vmem [shape: bf16[3,128,64], index: 2, kind: input, shape index: {}]   ;;  %s1399_s3 = inlined_call_operand.vmem [shape: bf16[3,128,64], index: 3, kind: input, shape index: {}]   ;;  %s1400_s4 = inlined_call_operand.vmem [shape: f32[1,1,64], index: 4, kind: input, shape index: {}]   ;;  %s1401_s5 = inlined_call_operand.vmem [shape: f32[2,2,128], index: 5, kind: output, shape index: {}]  }
   0x1 LB: > { %s836_s19 = sadd.s32 4294967295, %s1177_s18   ;;  %p840_p0 = scmp.ge.s32.totalorder %s1177_s18, 1  ;;  %s1177_s18 = sphi %s1210_s18, %s15_s18  }
   0x2   : > { %p195_p1 = scmp.lt.s32.totalorder %s1177_s18, 3 }
   0x4   : > { %p196_p2 = pnand %p840_p0, %p195_p1 }
   0x5   : > { %p225_p3 = scmp.lt.s32.totalorder (!%p196_p2), %s836_s19, 1 }
   0x6   : > { %199 = sbr.rel (%p196_p2) target bundleno = 353 (0x161), region = 40 }
   0xb   : > { %v1119_v0 = vld [vmem:[%s1399_s3 + $0x78] sm:$0xff]  ;;  %v1118_v2 = vld [vmem:[%s1399_s3 + $0x70] sm:$0xff]  ;;  %v1117_v8 = vld [vmem:[%s1399_s3 + $0x68] sm:$0xff]  ;;  %s1403_s19 = smov (!%p225_p3, %s836_s19), 1  ;;  %vm743_vm4 = vcmask 517120   ;;  %vm769_vm9 = vcmask 1041920  }
   0xc   : > { %v1111_v1 = vld [vmem:[%s1398_s2 + $0x78] sm:$0xff]  ;;  %327 = vmatpush.bf16.msra.mxu0 %v1119_v0  ;;  %v1110_v3 = vld [vmem:[%s1398_s2 + $0x70] sm:$0xff]  ;;  %v1109_v9 = vld [vmem:[%s1398_s2 + $0x68] sm:$0xff]  ;;  %s841_s16 = sshll.u32 %s1403_s19, 2 }
   0xd   : > { %388 = vmatpush.bf16.msra.mxu1 %v1111_v1  ;;  %v1135_v4 = vld [vmem:[%s1398_s2 + $0x38] sm:$0xff]  ;;  %v1134_v6 = vld [vmem:[%s1398_s2 + $0x30] sm:$0xff]  ;;  %v1133_v10 = vld [vmem:[%s1398_s2 + $0x28] sm:$0xff]  ;;  %s1306_s29 = scalar_lea.vmem %s1397_s1, %s841_s16  ;;  %s228_s7 = scalar_lea.vmem %s1396_s0, %s841_s16 }
   0xe   : > { %v1127_v5 = vld [vmem:[%s1398_s2 + $0xb8] sm:$0xff]  ;;  %487 = vmatpush.bf16.msra.mxu2 %v1135_v4  ;;  %v1126_v7 = vld [vmem:[%s1398_s2 + $0xb0] sm:$0xff]  ;;  %v1125_v11 = vld [vmem:[%s1398_s2 + $0xa8] sm:$0xff] }
   0xf   : > { %548 = vmatpush.bf16.msra.mxu3 %v1127_v5  ;;  %v1116_v12 = vld [vmem:[%s1399_s3 + $0x60] sm:$0xff]  ;;  %v1115_v16 = vld [vmem:[%s1399_s3 + $0x58] sm:$0xff]  ;;  %v1114_v20 = vld [vmem:[%s1399_s3 + $0x50] sm:$0xff] }
  0x10   : > { %328 = vmatpush.bf16.msra.mxu0 %v1118_v2  ;;  %v1108_v13 = vld [vmem:[%s1398_s2 + $0x60] sm:$0xff]  ;;  %v1107_v17 = vld [vmem:[%s1398_s2 + $0x58] sm:$0xff]  ;;  %v1106_v21 = vld [vmem:[%s1398_s2 + $0x50] sm:$0xff] }
  0x11   : > { %389 = vmatpush.bf16.msra.mxu1 %v1110_v3  ;;  %v1132_v14 = vld [vmem:[%s1398_s2 + $0x20] sm:$0xff]  ;;  %v1131_v18 = vld [vmem:[%s1398_s2 + $0x18] sm:$0xff]  ;;  %v1130_v22 = vld [vmem:[%s1398_s2 + $0x10] sm:$0xff] }
  0x12   : > { %488 = vmatpush.bf16.msra.mxu2 %v1134_v6  ;;  %v1124_v15 = vld [vmem:[%s1398_s2 + $0xa0] sm:$0xff]  ;;  %v1123_v19 = vld [vmem:[%s1398_s2 + $0x98] sm:$0xff]  ;;  %v1122_v23 = vld [vmem:[%s1398_s2 + $0x90] sm:$0xff] }
  0x13   : > { %549 = vmatpush.bf16.msra.mxu3 %v1126_v7  ;;  %v1113_v24 = vld [vmem:[%s1399_s3 + $0x48] sm:$0xff]  ;;  %v1112_v27 = vld [vmem:[%s1399_s3 + $0x40] sm:$0xff]  ;;  %v1143_v32 = vld [vmem:[%s1399_s3 + $0xb8] sm:$0xff] }
  0x14   : > { %329 = vmatpush.bf16.msra.mxu0 %v1117_v8  ;;  %v1105_v25 = vld [vmem:[%s1398_s2 + $0x48] sm:$0xff]  ;;  %v1104_v29 = vld [vmem:[%s1398_s2 + $0x40] sm:$0xff]  ;;  %v1151_v33 = vld [vmem:[%s1399_s3 + $0x38] sm:$0xff] }
  0x15   : > { %390 = vmatpush.bf16.msra.mxu1 %v1109_v9  ;;  %v1129_v26 = vld [vmem:[%s1398_s2 + $0x8] sm:$0xff]  ;;  %v241_v30 = vld [vmem:[%s1306_s29] sm:$0x3]  ;;  %v1142_v39 = vld [vmem:[%s1399_s3 + $0xb0] sm:$0xff] }
  0x16   : > { %489 = vmatpush.bf16.msra.mxu2 %v1133_v10  ;;  %v1121_v28 = vld [vmem:[%s1398_s2 + $0x88] sm:$0xff]  ;;  %v237_v31 = vld [vmem:[%s228_s7] sm:$0x3]  ;;  %v242_v35 = vpack.c.bf16 %v241_v30, %v241_v30  ;;  %v1150_v40 = vld [vmem:[%s1399_s3 + $0x30] sm:$0xff] }
  0x17   : > { %550 = vmatpush.bf16.msra.mxu3 %v1125_v11  ;;  %v1128_v34 = vld [vmem:[%s1398_s2] sm:$0xff]  ;;  %v238_v36 = vpack.c.bf16 %v237_v31, %v237_v31  ;;  %v1141_v42 = vld [vmem:[%s1399_s3 + $0xa8] sm:$0xff]  ;;  %v1139_v46 = vld [vmem:[%s1399_s3 + $0x98] sm:$0xff] }
  0x18   : > { %330 = vmatpush.bf16.msra.mxu0 %v1116_v12  ;;  %v239_v37 = vld [vmem:[%s228_s7 + $0x1] sm:$0x3]  ;;  %v1149_v43 = vld [vmem:[%s1399_s3 + $0x28] sm:$0xff]  ;;  %v1147_v47 = vld [vmem:[%s1399_s3 + $0x18] sm:$0xff] }
  0x19   : > { %391 = vmatpush.bf16.msra.mxu1 %v1108_v13  ;;  %v1120_v38 = vld [vmem:[%s1398_s2 + $0x80] sm:$0xff]  ;;  %v240_v41 = vpack.c.bf16 %v239_v37, %v239_v37  ;;  %v1138_v48 = vld [vmem:[%s1399_s3 + $0x90] sm:$0xff]  ;;  %v1137_v50 = vld [vmem:[%s1399_s3 + $0x88] sm:$0xff] }
  0x1a   : > { %490 = vmatpush.bf16.msra.mxu2 %v1132_v14  ;;  %v1140_v44 = vld [vmem:[%s1399_s3 + $0xa0] sm:$0xff]  ;;  %v1146_v49 = vld [vmem:[%s1399_s3 + $0x10] sm:$0xff]  ;;  %v1145_v51 = vld [vmem:[%s1399_s3 + $0x8] sm:$0xff] }
  0x1b   : > { %551 = vmatpush.bf16.msra.mxu3 %v1124_v15  ;;  %v1148_v45 = vld [vmem:[%s1399_s3 + $0x20] sm:$0xff] }
  0x1c   : > { %331 = vmatpush.bf16.msra.mxu0 %v1115_v16  ;;  %v243_v52 = vld [vmem:[%s1306_s29 + $0x1] sm:$0x3]  ;;  %v1161_v56 = vld [vmem:[%s1400_s4] ss:$0 sm:$0xff]  ;;  %s843_s29 = sshll.u32 %s1403_s19, 1  ;;  %s1179_s19 = smov 64  }
  0x1d   : > { %392 = vmatpush.bf16.msra.mxu1 %v1107_v17  ;;  %v1136_v53 = vld [vmem:[%s1399_s3 + $0x80] sm:$0xff]  ;;  %v244_v55 = vpack.c.bf16 %v243_v52, %v243_v52  ;;  %s1389_s14 = scalar_lea.vmem %s1401_s5, %s843_s29 }
  0x1e   : > { %491 = vmatpush.bf16.msra.mxu2 %v1131_v18  ;;  %v1144_v54 = vld [vmem:[%s1399_s3] sm:$0xff] }
  0x1f   : > { %552 = vmatpush.bf16.msra.mxu3 %v1123_v19  ;;  %v1162_v18 = vld [vmem:[%s1400_s4] ss:$0 sm:$0xff] }
  0x20   : > { %332 = vmatpush.bf16.msra.mxu0 %v1114_v20 }
  0x21   : > { %393 = vmatpush.bf16.msra.mxu1 %v1106_v21 }
  0x22   : > { %492 = vmatpush.bf16.msra.mxu2 %v1130_v22 }
  0x23   : > { %553 = vmatpush.bf16.msra.mxu3 %v1122_v23 }
  0x24   : > { %333 = vmatpush.bf16.msra.mxu0 %v1113_v24 }
  0x25   : > { %394 = vmatpush.bf16.msra.mxu1 %v1105_v25 }
  0x26   : > { %493 = vmatpush.bf16.msra.mxu2 %v1129_v26 }
  0x27   : > { %554 = vmatpush.bf16.msra.mxu3 %v1121_v28 }
  0x28   : > { %334 = vmatpush.bf16.msra.mxu0 %v1112_v27 }
  0x29   : > { %395 = vmatpush.bf16.msra.mxu1 %v1104_v29 }
  0x2a   : > { %494 = vmatpush.bf16.msra.mxu2 %v1128_v34 }
  0x2b   : > { %335 = vmatmul.bf16.vlgmr.msra.gmra.mxu0 %v242_v35  ;;  %555 = vmatpush.bf16.msra.mxu3 %v1120_v38 }
  0x2c   : > { %626 = vmatpush.bf16.msrb.mxu0 %v1143_v32  ;;  %396 = vmatmul.bf16.vlgmr.msra.gmra.mxu1 %v238_v36 }
  0x2d   : > { %704 = vmatpush.bf16.msrb.mxu1 %v1151_v33  ;;  %495 = vmatmul.bf16.vlgmr.msra.gmra.mxu2 %v240_v41 }
  0x2e   : > { %556 = vmatmul.bf16.vlgmr.msra.gmra.mxu3 %v238_v36 }
  0x30   : > { %627 = vmatpush.bf16.msrb.mxu0 %v1142_v39 }
  0x31   : > { %705 = vmatpush.bf16.msrb.mxu1 %v1150_v40 }
  0x34   : > { %628 = vmatpush.bf16.msrb.mxu0 %v1141_v42 }
  0x35   : > { %706 = vmatpush.bf16.msrb.mxu1 %v1149_v43 }
  0x38   : > { %629 = vmatpush.bf16.msrb.mxu0 %v1140_v44 }
  0x39   : > { %707 = vmatpush.bf16.msrb.mxu1 %v1148_v45 }
  0x3c   : > { %630 = vmatpush.bf16.msrb.mxu0 %v1139_v46 }
  0x3d   : > { %708 = vmatpush.bf16.msrb.mxu1 %v1147_v47 }
  0x40   : > { %631 = vmatpush.bf16.msrb.mxu0 %v1138_v48 }
  0x41   : > { %709 = vmatpush.bf16.msrb.mxu1 %v1146_v49 }
  0x44   : > { %632 = vmatpush.bf16.msrb.mxu0 %v1137_v50 }
  0x45   : > { %710 = vmatpush.bf16.msrb.mxu1 %v1145_v51 }
  0x48   : > { %633 = vmatpush.bf16.msrb.mxu0 %v1136_v53 }
  0x49   : > { %711 = vmatpush.bf16.msrb.mxu1 %v1144_v54 }
  0x4b   : > { %634 = vmatmul.bf16.vlgmr.msrb.gmra.mxu0 %v242_v35 }
  0x4c   : > { %712 = vmatmul.bf16.vlgmr.msrb.gmra.mxu1 %v244_v55 }
  0xa8   : > { %v336_v57 = vpop.f32.mrf.mxu0 }
  0xa9   : > { %v397_v58 = vpop.f32.mrf.mxu1 }
  0xaa   : > { %v398_v59 = vadd.f32 %v397_v58, %v336_v57 }
  0xac   : > { %v405_v60 = vadd.f32 %v1161_v56, %v398_v59 }
  0xae   : > { %v1100_v61 = vmul.f32 -1.442695, %v405_v60 }
  0xb0   : > { %1163 = vpow2.f32 %v1100_v61  ;;  %v338_v62 = vpop.f32.mrf.mxu0  ;;  %v496_v0 = vpop.f32.mrf.mxu2 }
  0xb1   : > { %v399_v63 = vpop.f32.mrf.mxu1  ;;  %v557_v1 = vpop.f32.mrf.mxu3 }
  0xb2   : > { %v558_v11 = vadd.f32 %v557_v1, %v496_v0 }
  0xb6   : > { %v1164_v2 = vpop.eup %1163 }
  0xb7   : > { %v726_v3 = vadd.f32 1.0, %v1164_v2 }
  0xb8   : > { %v498_v4 = vpop.f32.mrf.mxu2 }
  0xb9   : > { %1165 = vrcp.f32 %v726_v3  ;;  %v559_v5 = vpop.f32.mrf.mxu3  ;;  %v738_v8 = vand.u32 2147483648, %v726_v3  ;;  %vm732_vm0 = vweird.f32 %v726_v3  ;;  %v736_v10 = vand.u32 2147483647, %v726_v3 }
  0xbb   : > { %v739_v13 = vor.u32 1.1754944e-38, %v738_v8  ;;  %vm737_vm3 = vcmp.eq.f32.partialorder %v736_v10, 8.507059e+37 }
  0xbf   : > { %v1166_v6 = vpop.eup %1165 }
  0xc0   : > { %v728_v7 = vmul.f32 %v1166_v6, %v726_v3  ;;  %vm733_vm1 = vweird.f32 %v1166_v6 }
  0xc1   : > { %vm734_vm2 = vmor %vm732_vm0, %vm733_vm1 }
  0xc2   : > { %v729_v9 = vsub.f32 1.0, %v728_v7 }
  0xc4   : > { %v730_v12 = vmul.f32 %v1166_v6, %v729_v9 }
  0xc6   : > { %v731_v14 = vadd.f32 %v1166_v6, %v730_v12 }
  0xc8   : > { %v635_v15 = vpop.f32.mrf.mxu0  ;;  %v735_v19 = vsel %vm734_vm2, %v1166_v6, %v731_v14 }
  0xc9   : > { %v713_v16 = vpop.f32.mrf.mxu1  ;;  %v639_v17 = vadd.f32 %v635_v15, %v558_v11  ;;  %v740_v20 = vsel %vm737_vm3, %v739_v13, %v735_v19 }
  0xca   : > { %v742_v22 = vmul.f32 %v740_v20, %v405_v60 }
  0xcb   : > { %v717_v21 = vadd.f32 %v713_v16, %v639_v17 }
  0xcc   : > { %744 = vst.msk [vmem:[%s1389_s14] sm:$0x3] %vm743_vm4, %v742_v22 }
  0xcd   : > { %v722_v23 = vadd.f32 %v1162_v18, %v717_v21 }
  0xcf   : > { %v1101_v24 = vmul.f32 -1.442695, %v722_v23 }
  0xd0   : > { %v637_v25 = vpop.f32.mrf.mxu0 }
  0xd1   : > { %v715_v26 = vpop.f32.mrf.mxu1  ;;  %1167 = vpow2.f32 %v1101_v24 }
  0xd7   : > { %v1168_v27 = vpop.eup %1167 }
  0xd8   : > { %v748_v28 = vadd.f32 1.0, %v1168_v27 }
  0xda   : > { %1169 = vrcp.f32 %v748_v28  ;;  %v760_v32 = vand.u32 2147483648, %v748_v28  ;;  %v758_v34 = vand.u32 2147483647, %v748_v28  ;;  %vm754_vm6 = vweird.f32 %v748_v28 }
  0xdc   : > { %v761_v36 = vor.u32 1.1754944e-38, %v760_v32  ;;  %vm759_vm8 = vcmp.eq.f32.partialorder %v758_v34, 8.507059e+37 }
  0xe0   : > { %v1170_v29 = vpop.eup %1169 }
  0xe1   : > { %v750_v30 = vmul.f32 %v1170_v29, %v748_v28  ;;  %vm755_vm5 = vweird.f32 %v1170_v29 }
  0xe2   : > { %vm756_vm7 = vmor %vm754_vm6, %vm755_vm5 }
  0xe3   : > { %v751_v31 = vsub.f32 1.0, %v750_v30 }
  0xe5   : > { %v752_v33 = vmul.f32 %v1170_v29, %v751_v31 }
  0xe7   : > { %v753_v35 = vadd.f32 %v1170_v29, %v752_v33 }
  0xe9   : > { %v757_v37 = vsel %vm756_vm7, %v1170_v29, %v753_v35 }
  0xea   : > { %v762_v38 = vsel %vm759_vm8, %v761_v36, %v757_v37 }
  0xeb   : > { %v764_v39 = vmul.f32 %v762_v38, %v722_v23 }
  0xed   : > { %766 = vrot.lane.b32.xlu0 %v764_v39, %s1179_s19 }
 0x15f   : > { %v767_v40 = vpop.permute.xlu0 %766 }
 0x160   : > { %770 = vst.msk [vmem:[%s1389_s14] sm:$0x3] %vm769_vm9, %v767_v40 }
 0x161 PF: > { %s15_s18 = sadd.s32 1, %s1177_s18  }
 0x162   : > { %p12_p4 = scmp.ge.s32.totalorder %s15_s18, 4  }
 0x164   :  { %14 = sbr.rel (!%p12_p4) target bundleno = 1 (0x1), region = 77 }

// kernel: text_diffusion_forward.17
= control target key start
LH: loop header
LB: loop body
LE: loop exit
PB: predicated region body
PF: predicated region fallthrough
CT: control target
= control target key end

     0   :  { %s886_s18 = smov 0   ;;  %s998_s0 = inlined_call_operand.vmem [shape: f32[2,5,64], index: 0, kind: input, shape index: {}]   ;;  %s999_s1 = inlined_call_operand.vmem [shape: f32[2,5,64], index: 1, kind: input, shape index: {}]   ;;  %s1000_s2 = inlined_call_operand.vmem [shape: bf16[3,64,32], index: 2, kind: input, shape index: {}]   ;;  %s1001_s3 = inlined_call_operand.vmem [shape: bf16[3,64,32], index: 3, kind: input, shape index: {}]   ;;  %s1002_s4 = inlined_call_operand.vmem [shape: f32[1,1,32], index: 4, kind: input, shape index: {}]   ;;  %s1003_s5 = inlined_call_operand.vmem [shape: f32[2,4,64], index: 5, kind: output, shape index: {}]  }
   0x1 LB: > { %s658_s19 = sadd.s32 4294967295, %s853_s18   ;;  %p662_p0 = scmp.ge.s32.totalorder %s853_s18, 1  ;;  %s853_s18 = sphi %s886_s18, %s15_s18  }
   0x2   : > { %p195_p1 = scmp.lt.s32.totalorder %s853_s18, 3 }
   0x4   : > { %p196_p2 = pnand %p662_p0, %p195_p1 }
   0x5   : > { %p225_p3 = scmp.lt.s32.totalorder (!%p196_p2), %s658_s19, 1 }
   0x6   : > { %199 = sbr.rel (%p196_p2) target bundleno = 321 (0x141), region = 40 }
   0xb   : > { %v811_v0 = vld [vmem:[%s1001_s3 + $0x38] sm:$0xff]  ;;  %v810_v4 = vld [vmem:[%s1001_s3 + $0x30] sm:$0xff]  ;;  %s1005_s19 = smov (!%p225_p3, %s658_s19), 1  ;;  %v809_v8 = vld [vmem:[%s1001_s3 + $0x28] sm:$0xff]  ;;  %vm288_vm0 = vcmask 523264   ;;  %vm565_vm5 = vcmask 257024  }
   0xc   : > { %v807_v1 = vld [vmem:[%s1000_s2 + $0x38] sm:$0xff]  ;;  %296 = vmatpush.bf16.msra.mxu0 %v811_v0  ;;  %v806_v5 = vld [vmem:[%s1000_s2 + $0x30] sm:$0xff]  ;;  %s663_s11 = sshll.u32 %s1005_s19, 3  ;;  %v805_v9 = vld [vmem:[%s1000_s2 + $0x28] sm:$0xff]  ;;  %s665_s8 = sshll.u32 %s1005_s19, 2  ;;  %vm591_vm10 = vcmask 519424  }
   0xd   : > { %v819_v2 = vld [vmem:[%s1000_s2 + $0x18] sm:$0xff]  ;;  %336 = vmatpush.bf16.msra.mxu1 %v807_v1  ;;  %v818_v6 = vld [vmem:[%s1000_s2 + $0x10] sm:$0xff]  ;;  %v817_v10 = vld [vmem:[%s1000_s2 + $0x8] sm:$0xff]  ;;  %s936_s24 = scalar_lea.vmem %s999_s1, %s663_s11  ;;  %s228_s27 = scalar_lea.vmem %s998_s0, %s663_s11 }
   0xe   : > { %v815_v3 = vld [vmem:[%s1000_s2 + $0x58] sm:$0xff]  ;;  %398 = vmatpush.bf16.msra.mxu2 %v819_v2  ;;  %v814_v7 = vld [vmem:[%s1000_s2 + $0x50] sm:$0xff]  ;;  %v813_v11 = vld [vmem:[%s1000_s2 + $0x48] sm:$0xff]  ;;  %s236_s11 = scalar_lea.vmem %s1003_s5, %s665_s8  ;;  %s855_s19 = smov 32  }
   0xf   : > { %435 = vmatpush.bf16.msra.mxu3 %v815_v3  ;;  %v808_v12 = vld [vmem:[%s1001_s3 + $0x20] sm:$0xff]  ;;  %v823_v19 = vld [vmem:[%s1001_s3 + $0x58] sm:$0xff]  ;;  %v822_v24 = vld [vmem:[%s1001_s3 + $0x50] sm:$0xff] }
  0x10   : > { %297 = vmatpush.bf16.msra.mxu0 %v810_v4  ;;  %v804_v13 = vld [vmem:[%s1000_s2 + $0x20] sm:$0xff]  ;;  %v827_v20 = vld [vmem:[%s1001_s3 + $0x18] sm:$0xff]  ;;  %v826_v25 = vld [vmem:[%s1001_s3 + $0x10] sm:$0xff] }
  0x11   : > { %337 = vmatpush.bf16.msra.mxu1 %v806_v5  ;;  %v242_v14 = vld [vmem:[%s936_s24] sm:$0xf]  ;;  %v821_v26 = vld [vmem:[%s1001_s3 + $0x48] sm:$0xff] }
  0x12   : > { %399 = vmatpush.bf16.msra.mxu2 %v818_v6  ;;  %v238_v15 = vld [vmem:[%s228_s27] sm:$0xf]  ;;  %v243_v21 = vpack.c.bf16 %v242_v14, %v242_v14  ;;  %v825_v27 = vld [vmem:[%s1001_s3 + $0x8] sm:$0xff] }
  0x13   : > { %436 = vmatpush.bf16.msra.mxu3 %v814_v7  ;;  %v816_v16 = vld [vmem:[%s1000_s2] sm:$0xff]  ;;  %v239_v22 = vpack.c.bf16 %v238_v15, %v238_v15 }
  0x14   : > { %298 = vmatpush.bf16.msra.mxu0 %v809_v8  ;;  %v812_v17 = vld [vmem:[%s1000_s2 + $0x40] sm:$0xff] }
  0x15   : > { %338 = vmatpush.bf16.msra.mxu1 %v805_v9  ;;  %v240_v18 = vld [vmem:[%s228_s27 + $0x1] sm:$0xf]  ;;  %v837_v32 = vld [vmem:[%s1002_s4] ss:$0 sm:$0xff] }
  0x16   : > { %400 = vmatpush.bf16.msra.mxu2 %v817_v10  ;;  %v241_v23 = vpack.c.bf16 %v240_v18, %v240_v18  ;;  %v820_v28 = vld [vmem:[%s1001_s3 + $0x40] sm:$0xff] }
  0x17   : > { %437 = vmatpush.bf16.msra.mxu3 %v813_v11  ;;  %v824_v29 = vld [vmem:[%s1001_s3] sm:$0xff] }
  0x18   : > { %299 = vmatpush.bf16.msra.mxu0 %v808_v12  ;;  %v244_v30 = vld [vmem:[%s936_s24 + $0x1] sm:$0xf]  ;;  %v838_v50 = vld [vmem:[%s1002_s4] ss:$0 sm:$0xff] }
  0x19   : > { %339 = vmatpush.bf16.msra.mxu1 %v804_v13  ;;  %v245_v31 = vpack.c.bf16 %v244_v30, %v244_v30 }
  0x1a   : > { %401 = vmatpush.bf16.msra.mxu2 %v816_v16 }
  0x1b   : > { %438 = vmatpush.bf16.msra.mxu3 %v812_v17  ;;  %698 = vmatmul.msk.bf16.vlgmr.msra.gmra.mxu0 %vm288_vm0, %v243_v21 }
  0x1c   : > { %481 = vmatpush.bf16.msrb.mxu0 %v823_v19  ;;  %715 = vmatmul.msk.bf16.vlgmr.msra.gmra.mxu1 %vm288_vm0, %v239_v22 }
  0x1d   : > { %530 = vmatpush.bf16.msrb.mxu1 %v827_v20  ;;  %740 = vmatmul.msk.bf16.vlgmr.msra.gmra.mxu2 %vm288_vm0, %v241_v23 }
  0x1e   : > { %757 = vmatmul.msk.bf16.vlgmr.msra.gmra.mxu3 %vm288_vm0, %v239_v22 }
  0x20   : > { %482 = vmatpush.bf16.msrb.mxu0 %v822_v24 }
  0x21   : > { %531 = vmatpush.bf16.msrb.mxu1 %v826_v25 }
  0x24   : > { %483 = vmatpush.bf16.msrb.mxu0 %v821_v26 }
  0x25   : > { %532 = vmatpush.bf16.msrb.mxu1 %v825_v27 }
  0x28   : > { %484 = vmatpush.bf16.msrb.mxu0 %v820_v28 }
  0x29   : > { %533 = vmatpush.bf16.msrb.mxu1 %v824_v29 }
  0x2b   : > { %782 = vmatmul.msk.bf16.vlgmr.msrb.gmra.mxu0 %vm288_vm0, %v243_v21 }
  0x2c   : > { %799 = vmatmul.msk.bf16.vlgmr.msrb.gmra.mxu1 %vm288_vm0, %v245_v31 }
  0x98   : > { %v301_v33 = vpop.f32.mrf.mxu0 }
  0x99   : > { %v341_v34 = vpop.f32.mrf.mxu1 }
  0x9a   : > { %v342_v35 = vadd.f32 %v341_v34, %v301_v33 }
  0x9c   : > { %v349_v36 = vadd.f32 %v837_v32, %v342_v35 }
  0x9e   : > { %v800_v37 = vmul.f32 -1.442695, %v349_v36 }
  0xa0   : > { %839 = vpow2.f32 %v800_v37  ;;  %v403_v38 = vpop.f32.mrf.mxu2  ;;  %v303_v40 = vpop.f32.mrf.mxu0 }
  0xa1   : > { %v440_v39 = vpop.f32.mrf.mxu3  ;;  %v343_v41 = vpop.f32.mrf.mxu1 }
  0xa2   : > { %v441_v43 = vadd.f32 %v440_v39, %v403_v38 }
  0xa6   : > { %v840_v42 = vpop.eup %839 }
  0xa7   : > { %v548_v44 = vadd.f32 1.0, %v840_v42 }
  0xa8   : > { %v405_v45 = vpop.f32.mrf.mxu2  ;;  %v486_v47 = vpop.f32.mrf.mxu0 }
  0xa9   : > { %v442_v46 = vpop.f32.mrf.mxu3  ;;  %841 = vrcp.f32 %v548_v44  ;;  %v535_v48 = vpop.f32.mrf.mxu1  ;;  %v490_v49 = vadd.f32 %v486_v47, %v441_v43  ;;  %v560_v59 = vand.u32 2147483648, %v548_v44  ;;  %v558_v61 = vand.u32 2147483647, %v548_v44 }
  0xaa   : > { %vm554_vm2 = vweird.f32 %v548_v44 }
  0xab   : > { %v539_v51 = vadd.f32 %v535_v48, %v490_v49  ;;  %v561_v63 = vor.u32 1.1754944e-38, %v560_v59  ;;  %vm559_vm4 = vcmp.eq.f32.partialorder %v558_v61, 8.507059e+37 }
  0xad   : > { %v544_v52 = vadd.f32 %v838_v50, %v539_v51 }
  0xaf   : > { %v842_v53 = vpop.eup %841  ;;  %v801_v55 = vmul.f32 -1.442695, %v544_v52 }
  0xb0   : > { %v550_v54 = vmul.f32 %v842_v53, %v548_v44  ;;  %v488_v56 = vpop.f32.mrf.mxu0  ;;  %vm555_vm1 = vweird.f32 %v842_v53 }
  0xb1   : > { %v537_v57 = vpop.f32.mrf.mxu1  ;;  %843 = vpow2.f32 %v801_v55  ;;  %vm556_vm3 = vmor %vm554_vm2, %vm555_vm1 }
  0xb2   : > { %v551_v58 = vsub.f32 1.0, %v550_v54 }
  0xb4   : > { %v552_v60 = vmul.f32 %v842_v53, %v551_v58 }
  0xb6   : > { %v553_v62 = vadd.f32 %v842_v53, %v552_v60 }
  0xb7   : > { %v844_v0 = vpop.eup %843 }
  0xb8   : > { %v557_v1 = vsel %vm556_vm3, %v842_v53, %v553_v62  ;;  %v570_v3 = vadd.f32 1.0, %v844_v0 }
  0xb9   : > { %v562_v2 = vsel %vm559_vm4, %v561_v63, %v557_v1 }
  0xba   : > { %v564_v4 = vmul.f32 %v562_v2, %v349_v36  ;;  %845 = vrcp.f32 %v570_v3  ;;  %v582_v8 = vand.u32 2147483648, %v570_v3  ;;  %v580_v10 = vand.u32 2147483647, %v570_v3 }
  0xbb   : > { %vm576_vm7 = vweird.f32 %v570_v3 }
  0xbc   : > { %566 = vst.msk [vmem:[%s236_s11] sm:$0xf] %vm565_vm5, %v564_v4  ;;  %v583_v12 = vor.u32 1.1754944e-38, %v582_v8  ;;  %vm581_vm9 = vcmp.eq.f32.partialorder %v580_v10, 8.507059e+37 }
  0xc0   : > { %v846_v5 = vpop.eup %845 }
  0xc1   : > { %v572_v6 = vmul.f32 %v846_v5, %v570_v3  ;;  %vm577_vm6 = vweird.f32 %v846_v5 }
  0xc2   : > { %vm578_vm8 = vmor %vm576_vm7, %vm577_vm6 }
  0xc3   : > { %v573_v7 = vsub.f32 1.0, %v572_v6 }
  0xc5   : > { %v574_v9 = vmul.f32 %v846_v5, %v573_v7 }
  0xc7   : > { %v575_v11 = vadd.f32 %v846_v5, %v574_v9 }
  0xc9   : > { %v579_v13 = vsel %vm578_vm8, %v846_v5, %v575_v11 }
  0xca   : > { %v584_v14 = vsel %vm581_vm9, %v583_v12, %v579_v13 }
  0xcb   : > { %v586_v15 = vmul.f32 %v584_v14, %v544_v52 }
  0xcd   : > { %588 = vrot.lane.b32.xlu0 %v586_v15, %s855_s19 }
 0x13f   : > { %v589_v16 = vpop.permute.xlu0 %588 }
 0x140   : > { %592 = vst.msk [vmem:[%s236_s11] sm:$0xf] %vm591_vm10, %v589_v16 }
 0x141 PF: > { %s15_s18 = sadd.s32 1, %s853_s18  }
 0x142   : > { %p12_p4 = scmp.ge.s32.totalorder %s15_s18, 4  }
 0x144   :  { %14 = sbr.rel (!%p12_p4) target bundleno = 1 (0x1), region = 77 }

// kernel: text_diffusion_forward.18
= control target key start
LH: loop header
LB: loop body
LE: loop exit
PB: predicated region body
PF: predicated region fallthrough
CT: control target
= control target key end

     0   :  { %vm47_vm0 = vcmask 261120   ;;  %s192_s3 = inlined_call_operand.vmem [shape: bf16[32,32], index: 3, kind: input, shape index: {}]   ;;  %s193_s2 = inlined_call_operand.vmem [shape: bf16[32,32], index: 2, kind: input, shape index: {}]   ;;  %s194_s1 = inlined_call_operand.vmem [shape: f32[16,32], index: 1, kind: input, shape index: {}]   ;;  %s195_s0 = inlined_call_operand.vmem [shape: f32[16,32], index: 0, kind: input, shape index: {}]   ;;  %s196_s4 = inlined_call_operand.vmem [shape: f32[1,32], index: 4, kind: input, shape index: {}]   ;;  %s197_s5 = inlined_call_operand.vmem [shape: f32[16,32], index: 5, kind: output, shape index: {}]  }
   0x1   :  { %v127_v0 = vld [vmem:[%s192_s3 + $0x8] sm:$0xff]  ;;  %v126_v2 = vld [vmem:[%s192_s3] sm:$0xff] }
   0x2   :  { %v125_v1 = vld [vmem:[%s193_s2 + $0x8] sm:$0xff]  ;;  %v124_v3 = vld [vmem:[%s193_s2] sm:$0xff]  ;;  %57 = vmatpush.bf16.msra.mxu0 %v127_v0 }
   0x3   :  { %v28_v4 = vld [vmem:[%s194_s1] sm:$0xff]  ;;  %86 = vmatpush.bf16.msra.mxu1 %v125_v1  ;;  %v29_v5 = vld [vmem:[%s194_s1 + $0x8] sm:$0xff] }
   0x4   :  { %v21_v6 = vld [vmem:[%s195_s0] sm:$0xff]  ;;  %v22_v7 = vld [vmem:[%s195_s0 + $0x8] sm:$0xff]  ;;  %v30_v8 = vpack.c.bf16 %v29_v5, %v28_v4 }
   0x5   :  { %v23_v9 = vpack.c.bf16 %v22_v7, %v21_v6  ;;  %v128_v10 = vld [vmem:[%s196_s4] ss:$0 sm:$0xff] }
   0x6   :  { %58 = vmatpush.bf16.msra.mxu0 %v126_v2 }
   0x7   :  { %87 = vmatpush.bf16.msra.mxu1 %v124_v3 }
   0x9   :  { %114 = vmatmul.msk.bf16.vlgmr.msra.gmra.mxu0 %vm47_vm0, %v30_v8 }
   0xa   :  { %123 = vmatmul.msk.bf16.vlgmr.msra.gmra.mxu1 %vm47_vm0, %v23_v9 }
  0x86   :  { %v60_v11 = vpop.f32.mrf.mxu0 }
  0x87   :  { %v89_v12 = vpop.f32.mrf.mxu1 }
  0x88   :  { %v90_v13 = vadd.f32 %v89_v12, %v60_v11 }
  0x8a   :  { %v98_v14 = vadd.f32 %v128_v10, %v90_v13 }
  0x8c   :  { %100 = vst.msk [vmem:[%s197_s5] sm:$0xff] %vm47_vm0, %v98_v14 }
  0x8e   :  { %v62_v15 = vpop.f32.mrf.mxu0 }
  0x8f   :  { %v91_v16 = vpop.f32.mrf.mxu1 }
  0x90   :  { %v92_v17 = vadd.f32 %v91_v16, %v62_v15 }
  0x92   :  { %v99_v18 = vadd.f32 %v128_v10, %v92_v17 }
  0x94   :  { %101 = vst.msk [vmem:[%s197_s5 + $0x8] sm:$0xff] %vm47_vm0, %v99_v18 }

// kernel: text_diffusion_forward.19
= control target key start
LH: loop header
LB: loop body
LE: loop exit
PB: predicated region body
PF: predicated region fallthrough
CT: control target
= control target key end

     0   :  { %vm24_vm0 = vcmask 261120   ;;  %s259_s0 = inlined_call_operand.vmem [shape: f32[16,32], index: 0, kind: input, shape index: {}]   ;;  %s260_s1 = inlined_call_operand.vmem [shape: f32[1,32], index: 1, kind: input, shape index: {}]   ;;  %s261_s2 = inlined_call_operand.vmem [shape: f32[1,32], index: 2, kind: input, shape index: {}]   ;;  %s262_s3 = inlined_call_operand.vmem [shape: bf16[32,128], index: 3, kind: input, shape index: {}]   ;;  %s263_s4 = inlined_call_operand.vmem [shape: f32[1,128], index: 4, kind: input, shape index: {}]   ;;  %s264_s5 = inlined_call_operand.hbm [shape: f32[16,128], index: 5, kind: output, shape index: {}]  }
   0x1   :  { %v22_v0 = vld [vmem:[%s259_s0] sm:$0xff] }
   0x2   :  { %v25_v1 = vsel %vm24_vm0, %v22_v0, 0.0 }
   0x3   :  { %26 = vadd.xlane.f32.xlu0 %v25_v1 }
   0x4   :  { %10 = vsyncpa [#allocation3], 0  ;;  %v23_v2 = vld [vmem:[%s259_s0 + $0x8] sm:$0xff]  ;;  %v196_v4 = vmov 32.0   ;;  %v155_v23 = vld [vmem:[%s262_s3] sm:$0xff]  ;;  %s134_s8 = sshll.u32 %s264_s5, 4  ;;  %s135_s8 = int_to_ptr.hbm [resolvable:$true] %s134_s8 }
   0x5   :  { %v28_v3 = vsel %vm24_vm0, %v23_v2, 0.0  ;;  %164 = vrcp.f32 %v196_v4  ;;  %v156_v21 = vld [vmem:[%s262_s3 + $0x8] sm:$0xff]  ;;  %v161_v42 = vld [vmem:[%s260_s1] ss:$0 sm:$0xff]  ;;  %s197_s1 = smov [#allocation2]   ;;  %s199_s9 = smov 8  }
   0x6   :  { %118 = vmatpush.bf16.msra.mxu0 %v156_v21  ;;  %v162_v47 = vld [vmem:[%s261_s2] ss:$0 sm:$0xff]  ;;  %s132_s30 = sshll.u32 %s197_s1, 4  ;;  %s198_s2 = smov 128   ;;  %s133_s30 = int_to_ptr.vmem [resolvable:$true] %s132_s30 }
   0x7   :  { %v163_v52 = vld [vmem:[%s263_s4] ss:$0 sm:$0xff] }
   0xa   :  { %119 = vmatpush.bf16.msra.mxu0 %v155_v23 }
   0xb   :  { %29 = vadd.xlane.f32.xlu0 %v28_v3  ;;  %v165_v5 = vpop.eup %164 }
   0xc   :  { %v32_v6 = vmul.f32 32.0, %v165_v5  ;;  %vm36_vm1 = vweird.f32 %v165_v5 }
   0xe   :  { %v33_v7 = vsub.f32 1.0, %v32_v6 }
  0x10   :  { %v34_v8 = vmul.f32 %v165_v5, %v33_v7 }
  0x12   :  { %v35_v9 = vadd.f32 %v165_v5, %v34_v8 }
  0x14   :  { %v37_v10 = vsel %vm36_vm1, %v165_v5, %v35_v9 }
  0x76   :  { %v27_v11 = vpop.xlane.xlu0 %26 }
  0x77   :  { %v38_v12 = vmul.f32 %v37_v10, %v27_v11 }
  0x79   :  { %v40_v13 = vsub.f32 %v22_v0, %v38_v12 }
  0x7b   :  { %v42_v14 = vmul.f32 %v40_v13, %v40_v13 }
  0x7d   :  { %v44_v15 = vsel %vm24_vm0, %v42_v14, 0.0 }
  0x7e   :  { %45 = vadd.xlane.f32.xlu1 %v44_v15  ;;  %v30_v16 = vpop.xlane.xlu0 %29 }
  0x7f   :  { %v39_v17 = vmul.f32 %v37_v10, %v30_v16 }
  0x81   :  { %v41_v18 = vsub.f32 %v23_v2, %v39_v17 }
  0x83   :  { %v43_v19 = vmul.f32 %v41_v18, %v41_v18 }
  0x85   :  { %v47_v20 = vsel %vm24_vm0, %v43_v19, 0.0 }
  0x86   :  { %48 = vadd.xlane.f32.xlu1 %v47_v20 }
  0xf1   :  { %v46_v22 = vpop.xlane.xlu1 %45 }
  0xf2   :  { %v50_v24 = vmul.f32 %v46_v22, %v37_v10 }
  0xf4   :  { %v52_v25 = vadd.f32 1e-05, %v50_v24 }
  0xf6   :  { %166 = vrsqrt.f32 %v52_v25  ;;  %vm60_vm3 = vweird.f32 %v52_v25 }
  0xf9   :  { %v49_v26 = vpop.xlane.xlu1 %48 }
  0xfa   :  { %v51_v27 = vmul.f32 %v49_v26, %v37_v10 }
  0xfc   :  { %v167_v28 = vpop.eup %166  ;;  %v53_v29 = vadd.f32 1e-05, %v51_v27 }
  0xfd   :  { %v55_v30 = vmul.f32 %v167_v28, %v52_v25  ;;  %vm61_vm2 = vweird.f32 %v167_v28 }
  0xfe   :  { %168 = vrsqrt.f32 %v53_v29  ;;  %vm62_vm4 = vmor %vm60_vm3, %vm61_vm2  ;;  %vm70_vm6 = vweird.f32 %v53_v29 }
  0xff   :  { %v56_v31 = vmul.f32 %v167_v28, %v55_v30 }
 0x101   :  { %v57_v32 = vmul.f32 0.5, %v56_v31 }
 0x103   :  { %v58_v33 = vsub.f32 1.5, %v57_v32 }
 0x104   :  { %v169_v34 = vpop.eup %168 }
 0x105   :  { %v59_v35 = vmul.f32 %v167_v28, %v58_v33  ;;  %v65_v36 = vmul.f32 %v169_v34, %v53_v29  ;;  %vm71_vm5 = vweird.f32 %v169_v34 }
 0x106   :  { %vm72_vm7 = vmor %vm70_vm6, %vm71_vm5 }
 0x107   :  { %v66_v37 = vmul.f32 %v169_v34, %v65_v36  ;;  %v63_v38 = vsel %vm62_vm4, %v167_v28, %v59_v35 }
 0x108   :  { %v74_v41 = vmul.f32 %v63_v38, %v40_v13 }
 0x109   :  { %v67_v39 = vmul.f32 0.5, %v66_v37 }
 0x10a   :  { %v80_v46 = vmul.f32 %v161_v42, %v74_v41 }
 0x10b   :  { %v68_v40 = vsub.f32 1.5, %v67_v39 }
 0x10c   :  { %v86_v49 = vadd.f32 %v162_v47, %v80_v46 }
 0x10d   :  { %v69_v43 = vmul.f32 %v169_v34, %v68_v40 }
 0x10f   :  { %v73_v44 = vsel %vm72_vm7, %v169_v34, %v69_v43 }
 0x110   :  { %v75_v45 = vmul.f32 %v73_v44, %v41_v18 }
 0x112   :  { %v81_v48 = vmul.f32 %v161_v42, %v75_v45 }
 0x114   :  { %v87_v50 = vadd.f32 %v162_v47, %v81_v48 }
 0x116   :  { %v88_v51 = vpack.c.bf16 %v87_v50, %v86_v49 }
 0x118   :  { %154 = vmatmul.msk.bf16.vlgmr.msra.gmra.mxu0 %vm24_vm0, %v88_v51 }
 0x195   :  { %v121_v53 = vpop.f32.mrf.mxu0 }
 0x196   :  { %v122_v54 = vadd.f32 %v163_v52, %v121_v53 }
 0x198   :  { %126 = vst [vmem:[#allocation2] sm:$0xff] %v122_v54 }
 0x19d   :  { %v123_v55 = vpop.f32.mrf.mxu0 }
 0x19e   :  { %v124_v56 = vadd.f32 %v163_v52, %v123_v55 }
 0x1a0   :  { %127 = vst [vmem:[#allocation2 + $0x8] sm:$0xff] %v124_v56 }
 0x1a1   :  { %140 = dma.vmem_to_hbm [thread:$0]  %s133_s30, 256, %s135_s8, [#allocation3], %s198_s2, %s198_s2, %s199_s9  }
 0x1a2   :  { %194 = dma.done.wait [#allocation3], 256  }
 0x1a3   :  { %195 = vsyncadd [#allocation3], 4294967040 }
 0x1a4   :  { %145 = vsyncpa [#allocation3], 1 }

</bundles_post_ra>
